<compile_context>
chip_gen: v6e
topology: v6e:2x2x1
jax: 0.10.0
libtpu: 0.0.40
codegen_flags: <defaults>
</compile_context>

<pallas_src>
import functools

import jax
import jax.numpy as jnp
from jax.experimental import pallas as pl
from jax.experimental.pallas import tpu as pltpu


def _round_up(v, m):
    return ((v + m - 1) // m) * m


# ---------------------------------------------------------------------------
# Fused Pallas kernel: transfer + `blocks` residual blocks + max-pool over s
# ---------------------------------------------------------------------------
def _pre_extraction_kernel(x_ref, wt_ref, bt_ref, w1s_ref, b1s_ref,
                           w2s_ref, b2s_ref, o_ref):
    # x_ref  : (tg, s, d_in)  input tile, channels-last, compute dtype (bf16)
    # wt_ref : (d_in, Cp)     bt_ref : (1, Cp)           folded transfer conv+BN
    # w1s_ref: (blocks, Cp, Cm)       b1s_ref: (blocks, 1, Cm)
    # w2s_ref: (blocks, Cm, Cp)       b2s_ref: (blocks, 1, Cp)
    # o_ref  : (tg, Cp)       max-pooled output tile (f32)
    tg, s, d_in = x_ref.shape
    blocks = w1s_ref.shape[0]
    c_pad = wt_ref.shape[1]
    cdt = x_ref.dtype            # low-precision matmul-input dtype
    f32 = jnp.float32

    x = x_ref[...].reshape(tg * s, d_in)

    # transfer: ReLU(BN(Conv1d(d_in -> C)))   (BN folded, eval mode)
    h = jnp.dot(x, wt_ref[...], preferred_element_type=f32)
    h = jnp.maximum(h + bt_ref[...].astype(f32), 0.0)

    # residual blocks (blocks is static -> unrolled).  MXU inputs in bf16,
    # accumulation / bias / ReLU / residual in f32.
    for blk in range(blocks):
        t = jnp.dot(h.astype(cdt), w1s_ref[blk], preferred_element_type=f32)
        t = jnp.maximum(t + b1s_ref[blk].astype(f32), 0.0)           # ReLU(BN1(Conv1))
        y = jnp.dot(t.astype(cdt), w2s_ref[blk], preferred_element_type=f32)
        h = jnp.maximum(y + b2s_ref[blk].astype(f32) + h, 0.0)       # ReLU(BN2(Conv2)+res)

    # adaptive_max_pool1d(x, 1): max over the s (neighbour) axis, fused here so
    # the full (G, s, C) activation never touches HBM.
    pooled = jnp.max(h.reshape(tg, s, c_pad), axis=1)
    o_ref[...] = pooled.astype(o_ref.dtype)


# ---------------------------------------------------------------------------
# VMEM estimate (padded layouts) and tile-size selection
# ---------------------------------------------------------------------------
def _vmem_bytes_per_step(tile_g, s, d_in, c_pad, cm_pad, blocks, act_bytes):
    """Conservative per-grid-step VMEM estimate using padded layouts:
    last dim -> 128 lanes, second-to-last -> 8 (f32) / 16 (bf16) sublanes."""
    sub_a = 32 // act_bytes                       # sublane multiple, activation dtype
    d_pad = _round_up(d_in, 128)
    # pipelined x block (double-buffered) + its flattened in-kernel copy
    x_bytes = (2 * tile_g * _round_up(s, sub_a) * d_pad
               + tile_g * s * d_pad) * act_bytes
    rows = tile_g * s
    # f32 h / t activations plus their low-precision copies fed to the MXU
    act_tmp_bytes = rows * (c_pad + cm_pad) * (4 + act_bytes)
    # pooled output block, double-buffered, f32
    out_bytes = 2 * _round_up(tile_g, 8) * c_pad * 4
    # weights: resident once (memory_space=VMEM, not pipelined)
    w_bytes = act_bytes * (
        _round_up(d_in, sub_a) * c_pad + sub_a * c_pad
        + blocks * (c_pad * cm_pad + sub_a * cm_pad
                    + cm_pad * c_pad + sub_a * c_pad))
    return x_bytes + act_tmp_bytes + out_bytes + w_bytes


def _pick_tile_g(G, s, d_in, c_pad, cm_pad, blocks, act_bytes, budget):
    """Largest divisor of G that (a) is 8-aligned (or == G) so the (tile_g, Cp)
    output block satisfies the sublane rule, (b) fits the padded-layout VMEM
    budget, and (c) prefers an EVEN number of grid steps so the 'parallel'
    axis splits evenly across v7x's two TensorCores (few large steps also
    amortizes the ~0.35us per-step overhead on v5e/v6e)."""
    def fits(t):
        return _vmem_bytes_per_step(t, s, d_in, c_pad, cm_pad,
                                    blocks, act_bytes) <= budget
    divisors = [t for t in range(1, G + 1) if G % t == 0]
    aligned = [t for t in divisors if t % 8 == 0 or t == G]
    cands = [t for t in aligned if fits(t)]
    if not cands:                       # nothing fits: take the smallest legal tile
        return min(aligned) if aligned else G
    even = [t for t in cands if (G // t) % 2 == 0]
    multi = [t for t in cands if G // t >= 2]
    if even:
        return max(even)
    if multi:
        return max(multi)
    return max(cands)


def _detect_vmem_bytes():
    try:
        return int(pltpu.get_tpu_info().vmem_capacity_bytes)
    except Exception:
        return 64 * 1024 * 1024         # conservative: v7x per-TensorCore VMEM


# ---------------------------------------------------------------------------
# PreExtraction forward
# ---------------------------------------------------------------------------
@functools.partial(jax.jit,
                   static_argnames=("tile_g", "compute_dtype", "vmem_limit_bytes"))
def _pre_extraction_call(x_bnsd, wt, bt, w1s, b1s, w2s, b2s, *,
                         tile_g, compute_dtype, vmem_limit_bytes):
    b, n, s, d_in = x_bnsd.shape
    c_out = wt.shape[1]
    c_mid = w1s.shape[2]
    blocks = w1s.shape[0]
    G = b * n
    cd = compute_dtype
    act_bytes = jnp.dtype(cd).itemsize

    # Lane-dense channels: pad C / C_mid to multiples of 128.  Exact: padded
    # channels stay identically zero through every conv + BN + ReLU + residual.
    c_pad = _round_up(c_out, 128)
    cm_pad = _round_up(c_mid, 128)
    wt_p = jnp.pad(wt, ((0, 0), (0, c_pad - c_out))).astype(cd)
    bt_p = jnp.pad(bt, ((0, 0), (0, c_pad - c_out))).astype(cd)
    w1s_p = jnp.pad(w1s, ((0, 0), (0, c_pad - c_out), (0, cm_pad - c_mid))).astype(cd)
    b1s_p = jnp.pad(b1s, ((0, 0), (0, 0), (0, cm_pad - c_mid))).astype(cd)
    w2s_p = jnp.pad(w2s, ((0, 0), (0, cm_pad - c_mid), (0, c_pad - c_out))).astype(cd)
    b2s_p = jnp.pad(b2s, ((0, 0), (0, 0), (0, c_pad - c_out))).astype(cd)

    # permute(0,1,3,2).reshape(-1,d,s) in NCW == the channels-last (G, s, d)
    # view of the original input: a free reshape, no transpose pass.
    x = x_bnsd.reshape(G, s, d_in).astype(cd)

    assert G % tile_g == 0, (G, tile_g)
    grid = (G // tile_g,)

    flops = 2 * G * s * (d_in * c_pad + blocks * 2 * c_pad * cm_pad)
    bytes_accessed = (x.size * act_bytes + G * c_pad * 4
                      + act_bytes * (wt_p.size + bt_p.size + w1s_p.size
                                     + b1s_p.size + w2s_p.size + b2s_p.size))

    # Weights / biases: whole-array VMEM residency, single-buffered (constant
    # across the grid, so no pipeline double-buffers are wasted on them).
    weight_spec = pl.BlockSpec(memory_space=pltpu.MemorySpace.VMEM)

    # TODO(synk): on v5e, if the (tile_g, s, d_in) DMA shows exposed memory
    # time from short rows, flatten the x BlockSpec to (tile_g, s*d_in) and
    # re-layout in-kernel.
    pooled = pl.pallas_call(
        _pre_extraction_kernel,
        out_shape=jax.ShapeDtypeStruct((G, c_pad), x_bnsd.dtype),
        grid_spec=pltpu.PrefetchScalarGridSpec(
            num_scalar_prefetch=0,
            grid=grid,
            in_specs=[
                pl.BlockSpec((tile_g, s, d_in), lambda i: (i, 0, 0)),
                weight_spec, weight_spec, weight_spec,
                weight_spec, weight_spec, weight_spec,
            ],
            out_specs=pl.BlockSpec((tile_g, c_pad), lambda i: (i, 0)),
        ),
        compiler_params=pltpu.CompilerParams(
            dimension_semantics=("parallel",),
            vmem_limit_bytes=vmem_limit_bytes,
        ),
        cost_estimate=pl.CostEstimate(
            flops=flops, transcendentals=0, bytes_accessed=bytes_accessed),
    )(x, wt_p, bt_p, w1s_p, b1s_p, w2s_p, b2s_p)

    # only the tiny pooled tensor is sliced / reshaped to PyTorch's [b, C, n]
    return pooled[:, :c_out].reshape(b, n, c_out).transpose(0, 2, 1)


def pre_extraction_forward(x_bnsd, params, *, tile_g=None,
                           compute_dtype=jnp.bfloat16):
    """x_bnsd: (b, n, s, d) as in the PyTorch module.  Returns (b, C, n)."""
    b, n, s, d_in = x_bnsd.shape
    wt, bt, w1s, b1s, w2s, b2s = params
    c_out = wt.shape[1]
    c_mid = w1s.shape[2]
    blocks = w1s.shape[0]
    G = b * n
    c_pad = _round_up(c_out, 128)
    cm_pad = _round_up(c_mid, 128)
    act_bytes = jnp.dtype(compute_dtype).itemsize

    # generation-aware budgets: vmem_limit = 75% of physical VMEM
    # (v7x: 64 MiB -> 48 MiB, v5e/v6e: 128 MiB -> 96 MiB); tile budget = 85% of that.
    phys_vmem = _detect_vmem_bytes()
    vmem_limit_bytes = int(phys_vmem * 3 // 4)
    if tile_g is None:
        tile_g = _pick_tile_g(G, s, d_in, c_pad, cm_pad, blocks, act_bytes,
                              budget=int(vmem_limit_bytes * 0.85))
    return _pre_extraction_call(x_bnsd, wt, bt, w1s, b1s, w2s, b2s,
                                tile_g=tile_g, compute_dtype=compute_dtype,
                                vmem_limit_bytes=vmem_limit_bytes)


# ---------------------------------------------------------------------------
# Parameter construction (deterministic, matches the PyTorch module shapes)
# ---------------------------------------------------------------------------
def _fold_bn(w, b, gamma, beta, mean, var, eps=1e-5):
    """Fold eval-mode BatchNorm1d into a 1x1 Conv1d (channels-last weight)."""
    scale = gamma / jnp.sqrt(var + eps)
    return w * scale[None, :], (b - mean) * scale + beta


def make_pre_extraction_params(key, channels, out_channels, blocks=1,
                               res_expansion=1.0, use_xyz=True):
    d_in = 3 + 2 * channels if use_xyz else 2 * channels
    c = out_channels
    cmid = int(out_channels * res_expansion)

    def conv_bn(k, cin, cout):
        ks = jax.random.split(k, 6)
        w = 0.1 * jax.random.normal(ks[0], (cin, cout), jnp.float32)
        b = 0.1 * jax.random.normal(ks[1], (cout,), jnp.float32)
        g = 1.0 + 0.1 * jax.random.normal(ks[2], (cout,), jnp.float32)
        be = 0.1 * jax.random.normal(ks[3], (cout,), jnp.float32)
        m = 0.1 * jax.random.normal(ks[4], (cout,), jnp.float32)
        v = jnp.abs(1.0 + 0.1 * jax.random.normal(ks[5], (cout,), jnp.float32))
        return _fold_bn(w, b, g, be, m, v)

    keys = jax.random.split(key, 2 * blocks + 1)
    wt, bt = conv_bn(keys[0], d_in, c)

    w1s, b1s, w2s, b2s = [], [], [], []
    for blk in range(blocks):
        w1, b1 = conv_bn(keys[1 + 2 * blk], c, cmid)
        w2, b2 = conv_bn(keys[2 + 2 * blk], cmid, c)
        w1s.append(w1); b1s.append(b1.reshape(1, cmid))
        w2s.append(w2); b2s.append(b2.reshape(1, c))

    # TODO(synk): groups>1 grouped convs and non-ReLU activations are not
    # implemented (module defaults groups=1 / 'relu' are).
    return (wt, bt.reshape(1, c),
            jnp.stack(w1s), jnp.stack(b1s),
            jnp.stack(w2s), jnp.stack(b2s))


# ---------------------------------------------------------------------------
# Pure-JAX reference.  compute_dtype=bf16 mirrors the kernel's bf16 matmul
# inputs (f32 accumulation); compute_dtype=f32 is the exact module math.
# ---------------------------------------------------------------------------
def _reference(x_bnsd, params, compute_dtype=jnp.float32):
    b, n, s, d_in = x_bnsd.shape
    wt, bt, w1s, b1s, w2s, b2s = params
    cd, f32 = compute_dtype, jnp.float32
    h = x_bnsd.reshape(b * n, s, d_in).astype(cd)
    h = jnp.maximum(jnp.dot(h, wt.astype(cd), preferred_element_type=f32)
                    + bt.astype(cd).astype(f32), 0.0)
    for blk in range(w1s.shape[0]):
        t = jnp.maximum(
            jnp.dot(h.astype(cd), w1s[blk].astype(cd), preferred_element_type=f32)
            + b1s[blk].astype(cd).astype(f32), 0.0)
        y = jnp.dot(t.astype(cd), w2s[blk].astype(cd), preferred_element_type=f32)
        h = jnp.maximum(y + b2s[blk].astype(cd).astype(f32) + h, 0.0)
    pooled = jnp.max(h, axis=1)                       # adaptive_max_pool1d(., 1)
    return pooled.reshape(b, n, -1).transpose(0, 2, 1)


if __name__ == "__main__":
    # small, module-consistent shapes: input [b, n, s, d], d = 3 + 2*channels
    b, n, s = 2, 32, 16
    channels = 14                 # -> d_in = 31 (use_xyz=True)
    out_channels = 32
    blocks = 2
    d_in = 3 + 2 * channels

    key = jax.random.PRNGKey(0)
    kx, kp = jax.random.split(key)
    x = jax.random.normal(kx, (b, n, s, d_in), jnp.float32)
    params = make_pre_extraction_params(kp, channels, out_channels,
                                        blocks=blocks, res_expansion=1.0,
                                        use_xyz=True)

    out = pre_extraction_forward(x, params)
    out = jax.block_until_ready(out)
    assert out.shape == (b, out_channels, n)

    # tight check against the bf16-mirrored reference (same rounding points)
    ref_bf16 = _reference(x, params, compute_dtype=jnp.bfloat16)
    assert jnp.allclose(out, ref_bf16, atol=1e-2, rtol=1e-2), \
        float(jnp.max(jnp.abs(out - ref_bf16)))
    # loose sanity check against the exact f32 module math
    ref_f32 = _reference(x, params, compute_dtype=jnp.float32)
    assert jnp.allclose(out, ref_f32, atol=1e-1, rtol=1e-1), \
        float(jnp.max(jnp.abs(out - ref_f32)))

    print("KERNEL_OK")
</pallas_src>

<mosaic_0001>
module attributes {stable_mosaic.version = 11 : i64} {
  func.func @_pre_extraction_kernel(%arg0: i32, %arg1: memref<32x16x31xbf16, #tpu.memory_space<vmem>>, %arg2: memref<31x128xbf16, #tpu.memory_space<vmem>>, %arg3: memref<1x128xbf16, #tpu.memory_space<vmem>>, %arg4: memref<2x128x128xbf16, #tpu.memory_space<vmem>>, %arg5: memref<2x1x128xbf16, #tpu.memory_space<vmem>>, %arg6: memref<2x128x128xbf16, #tpu.memory_space<vmem>>, %arg7: memref<2x1x128xbf16, #tpu.memory_space<vmem>>, %arg8: memref<32x128xf32, #tpu.memory_space<vmem>>) attributes {dimension_semantics = [#tpu.dimension_semantics<parallel>], iteration_bounds = array<i64: 2>, scalar_prefetch = 0 : i64, scratch_operands = 0 : i64, tpu.core_type = #tpu.core_type<tc>, window_params = [{transform_indices = @transform_0, window_bounds = array<i64: 32, 16, 31>}, {pipeline_mode = #tpu.pipeline_mode<synchronous>, transform_indices = @transform_1, window_bounds = array<i64: 31, 128>}, {pipeline_mode = #tpu.pipeline_mode<synchronous>, transform_indices = @transform_2, window_bounds = array<i64: 1, 128>}, {pipeline_mode = #tpu.pipeline_mode<synchronous>, transform_indices = @transform_3, window_bounds = array<i64: 2, 128, 128>}, {pipeline_mode = #tpu.pipeline_mode<synchronous>, transform_indices = @transform_4, window_bounds = array<i64: 2, 1, 128>}, {pipeline_mode = #tpu.pipeline_mode<synchronous>, transform_indices = @transform_5, window_bounds = array<i64: 2, 128, 128>}, {pipeline_mode = #tpu.pipeline_mode<synchronous>, transform_indices = @transform_6, window_bounds = array<i64: 2, 1, 128>}, {transform_indices = @transform_7, window_bounds = array<i64: 32, 128>}]} {
    %c0 = arith.constant 0 : index
    %c0_0 = arith.constant 0 : index
    %c0_1 = arith.constant 0 : index
    %0 = vector.load %arg1[%c0, %c0_0, %c0_1] : memref<32x16x31xbf16, #tpu.memory_space<vmem>>, vector<32x16x31xbf16>
    %1 = vector.shape_cast %0 : vector<32x16x31xbf16> to vector<512x31xbf16>
    %c0_2 = arith.constant 0 : index
    %c0_3 = arith.constant 0 : index
    %2 = vector.load %arg2[%c0_2, %c0_3] : memref<31x128xbf16, #tpu.memory_space<vmem>>, vector<31x128xbf16>
    %cst = arith.constant dense<0.000000e+00> : vector<512x128xf32>
    %3 = tpu.matmul %1, %2, %cst {dimension_numbers = #tpu.dot_dimension_numbers<[1], [0], [0], [1], [0, 0, 1, 1], [], []>} : vector<512x31xbf16>, vector<31x128xbf16>, vector<512x128xf32> -> vector<512x128xf32>
    %c0_4 = arith.constant 0 : index
    %c0_5 = arith.constant 0 : index
    %4 = vector.load %arg3[%c0_4, %c0_5] : memref<1x128xbf16, #tpu.memory_space<vmem>>, vector<1x128xbf16>
    %5 = arith.extf %4 : vector<1x128xbf16> to vector<1x128xf32>
    %6 = vector.broadcast %5 : vector<1x128xf32> to vector<512x128xf32>
    %7 = arith.addf %3, %6 : vector<512x128xf32>
    %cst_6 = arith.constant 0.000000e+00 : f32
    %8 = vector.broadcast %cst_6 : f32 to vector<512x128xf32>
    %9 = arith.maximumf %7, %8 : vector<512x128xf32>
    %10 = arith.truncf %9 : vector<512x128xf32> to vector<512x128xbf16>
    %c0_7 = arith.constant 0 : index
    %c0_8 = arith.constant 0 : index
    %c0_9 = arith.constant 0 : index
    %11 = vector.load %arg4[%c0_7, %c0_8, %c0_9] : memref<2x128x128xbf16, #tpu.memory_space<vmem>>, vector<1x128x128xbf16>
    %12 = vector.shape_cast %11 : vector<1x128x128xbf16> to vector<128x128xbf16>
    %cst_10 = arith.constant dense<0.000000e+00> : vector<512x128xf32>
    %13 = tpu.matmul %10, %12, %cst_10 {dimension_numbers = #tpu.dot_dimension_numbers<[1], [0], [0], [1], [0, 0, 1, 1], [], []>} : vector<512x128xbf16>, vector<128x128xbf16>, vector<512x128xf32> -> vector<512x128xf32>
    %c0_11 = arith.constant 0 : index
    %c0_12 = arith.constant 0 : index
    %c0_13 = arith.constant 0 : index
    %14 = vector.load %arg5[%c0_11, %c0_12, %c0_13] : memref<2x1x128xbf16, #tpu.memory_space<vmem>>, vector<1x1x128xbf16>
    %15 = vector.shape_cast %14 : vector<1x1x128xbf16> to vector<1x128xbf16>
    %16 = arith.extf %15 : vector<1x128xbf16> to vector<1x128xf32>
    %17 = vector.broadcast %16 : vector<1x128xf32> to vector<512x128xf32>
    %18 = arith.addf %13, %17 : vector<512x128xf32>
    %cst_14 = arith.constant 0.000000e+00 : f32
    %19 = vector.broadcast %cst_14 : f32 to vector<512x128xf32>
    %20 = arith.maximumf %18, %19 : vector<512x128xf32>
    %21 = arith.truncf %20 : vector<512x128xf32> to vector<512x128xbf16>
    %c0_15 = arith.constant 0 : index
    %c0_16 = arith.constant 0 : index
    %c0_17 = arith.constant 0 : index
    %22 = vector.load %arg6[%c0_15, %c0_16, %c0_17] : memref<2x128x128xbf16, #tpu.memory_space<vmem>>, vector<1x128x128xbf16>
    %23 = vector.shape_cast %22 : vector<1x128x128xbf16> to vector<128x128xbf16>
    %cst_18 = arith.constant dense<0.000000e+00> : vector<512x128xf32>
    %24 = tpu.matmul %21, %23, %cst_18 {dimension_numbers = #tpu.dot_dimension_numbers<[1], [0], [0], [1], [0, 0, 1, 1], [], []>} : vector<512x128xbf16>, vector<128x128xbf16>, vector<512x128xf32> -> vector<512x128xf32>
    %c0_19 = arith.constant 0 : index
    %c0_20 = arith.constant 0 : index
    %c0_21 = arith.constant 0 : index
    %25 = vector.load %arg7[%c0_19, %c0_20, %c0_21] : memref<2x1x128xbf16, #tpu.memory_space<vmem>>, vector<1x1x128xbf16>
    %26 = vector.shape_cast %25 : vector<1x1x128xbf16> to vector<1x128xbf16>
    %27 = arith.extf %26 : vector<1x128xbf16> to vector<1x128xf32>
    %28 = vector.broadcast %27 : vector<1x128xf32> to vector<512x128xf32>
    %29 = arith.addf %24, %28 : vector<512x128xf32>
    %30 = arith.addf %29, %9 : vector<512x128xf32>
    %cst_22 = arith.constant 0.000000e+00 : f32
    %31 = vector.broadcast %cst_22 : f32 to vector<512x128xf32>
    %32 = arith.maximumf %30, %31 : vector<512x128xf32>
    %33 = arith.truncf %32 : vector<512x128xf32> to vector<512x128xbf16>
    %c1 = arith.constant 1 : index
    %c0_23 = arith.constant 0 : index
    %c0_24 = arith.constant 0 : index
    %34 = vector.load %arg4[%c1, %c0_23, %c0_24] : memref<2x128x128xbf16, #tpu.memory_space<vmem>>, vector<1x128x128xbf16>
    %35 = vector.shape_cast %34 : vector<1x128x128xbf16> to vector<128x128xbf16>
    %cst_25 = arith.constant dense<0.000000e+00> : vector<512x128xf32>
    %36 = tpu.matmul %33, %35, %cst_25 {dimension_numbers = #tpu.dot_dimension_numbers<[1], [0], [0], [1], [0, 0, 1, 1], [], []>} : vector<512x128xbf16>, vector<128x128xbf16>, vector<512x128xf32> -> vector<512x128xf32>
    %c1_26 = arith.constant 1 : index
    %c0_27 = arith.constant 0 : index
    %c0_28 = arith.constant 0 : index
    %37 = vector.load %arg5[%c1_26, %c0_27, %c0_28] : memref<2x1x128xbf16, #tpu.memory_space<vmem>>, vector<1x1x128xbf16>
    %38 = vector.shape_cast %37 : vector<1x1x128xbf16> to vector<1x128xbf16>
    %39 = arith.extf %38 : vector<1x128xbf16> to vector<1x128xf32>
    %40 = vector.broadcast %39 : vector<1x128xf32> to vector<512x128xf32>
    %41 = arith.addf %36, %40 : vector<512x128xf32>
    %cst_29 = arith.constant 0.000000e+00 : f32
    %42 = vector.broadcast %cst_29 : f32 to vector<512x128xf32>
    %43 = arith.maximumf %41, %42 : vector<512x128xf32>
    %44 = arith.truncf %43 : vector<512x128xf32> to vector<512x128xbf16>
    %c1_30 = arith.constant 1 : index
    %c0_31 = arith.constant 0 : index
    %c0_32 = arith.constant 0 : index
    %45 = vector.load %arg6[%c1_30, %c0_31, %c0_32] : memref<2x128x128xbf16, #tpu.memory_space<vmem>>, vector<1x128x128xbf16>
    %46 = vector.shape_cast %45 : vector<1x128x128xbf16> to vector<128x128xbf16>
    %cst_33 = arith.constant dense<0.000000e+00> : vector<512x128xf32>
    %47 = tpu.matmul %44, %46, %cst_33 {dimension_numbers = #tpu.dot_dimension_numbers<[1], [0], [0], [1], [0, 0, 1, 1], [], []>} : vector<512x128xbf16>, vector<128x128xbf16>, vector<512x128xf32> -> vector<512x128xf32>
    %c1_34 = arith.constant 1 : index
    %c0_35 = arith.constant 0 : index
    %c0_36 = arith.constant 0 : index
    %48 = vector.load %arg7[%c1_34, %c0_35, %c0_36] : memref<2x1x128xbf16, #tpu.memory_space<vmem>>, vector<1x1x128xbf16>
    %49 = vector.shape_cast %48 : vector<1x1x128xbf16> to vector<1x128xbf16>
    %50 = arith.extf %49 : vector<1x128xbf16> to vector<1x128xf32>
    %51 = vector.broadcast %50 : vector<1x128xf32> to vector<512x128xf32>
    %52 = arith.addf %47, %51 : vector<512x128xf32>
    %53 = arith.addf %52, %32 : vector<512x128xf32>
    %cst_37 = arith.constant 0.000000e+00 : f32
    %54 = vector.broadcast %cst_37 : f32 to vector<512x128xf32>
    %55 = arith.maximumf %53, %54 : vector<512x128xf32>
    %56 = vector.shape_cast %55 : vector<512x128xf32> to vector<32x16x128xf32>
    %cst_38 = arith.constant dense<0xFF800000> : vector<32x128xf32>
    %57 = vector.multi_reduction <maximumf>, %56, %cst_38 [1] : vector<32x16x128xf32> to vector<32x128xf32>
    %c0_39 = arith.constant 0 : index
    %c0_40 = arith.constant 0 : index
    %58 = vector.load %arg8[%c0_39, %c0_40] : memref<32x128xf32, #tpu.memory_space<vmem>>, vector<32x128xf32>
    tpu.vector_store %arg8[%c0_39, %c0_40], %57 {strides = array<i32>} : memref<32x128xf32, #tpu.memory_space<vmem>>, vector<32x128xf32>,
    return
  }
  func.func @transform_0(%arg0: i32) -> (i32, i32, i32) {
    %c0_i32 = arith.constant 0 : i32
    %c0_i32_0 = arith.constant 0 : i32
    %c0_i32_1 = arith.constant 0 : i32
    return %arg0, %c0_i32, %c0_i32_0 : i32, i32, i32
  }
  func.func @transform_1(%arg0: i32) -> (i32, i32) {
    %c0_i32 = arith.constant 0 : i32
    %c0_i32_0 = arith.constant 0 : i32
    %c0_i32_1 = arith.constant 0 : i32
    return %c0_i32, %c0_i32_0 : i32, i32
  }
  func.func @transform_2(%arg0: i32) -> (i32, i32) {
    %c0_i32 = arith.constant 0 : i32
    %c0_i32_0 = arith.constant 0 : i32
    %c0_i32_1 = arith.constant 0 : i32
    return %c0_i32, %c0_i32_0 : i32, i32
  }
  func.func @transform_3(%arg0: i32) -> (i32, i32, i32) {
    %c0_i32 = arith.constant 0 : i32
    %c0_i32_0 = arith.constant 0 : i32
    %c0_i32_1 = arith.constant 0 : i32
    %c0_i32_2 = arith.constant 0 : i32
    return %c0_i32, %c0_i32_0, %c0_i32_1 : i32, i32, i32
  }
  func.func @transform_4(%arg0: i32) -> (i32, i32, i32) {
    %c0_i32 = arith.constant 0 : i32
    %c0_i32_0 = arith.constant 0 : i32
    %c0_i32_1 = arith.constant 0 : i32
    %c0_i32_2 = arith.constant 0 : i32
    return %c0_i32, %c0_i32_0, %c0_i32_1 : i32, i32, i32
  }
  func.func @transform_5(%arg0: i32) -> (i32, i32, i32) {
    %c0_i32 = arith.constant 0 : i32
    %c0_i32_0 = arith.constant 0 : i32
    %c0_i32_1 = arith.constant 0 : i32
    %c0_i32_2 = arith.constant 0 : i32
    return %c0_i32, %c0_i32_0, %c0_i32_1 : i32, i32, i32
  }
  func.func @transform_6(%arg0: i32) -> (i32, i32, i32) {
    %c0_i32 = arith.constant 0 : i32
    %c0_i32_0 = arith.constant 0 : i32
    %c0_i32_1 = arith.constant 0 : i32
    %c0_i32_2 = arith.constant 0 : i32
    return %c0_i32, %c0_i32_0, %c0_i32_1 : i32, i32, i32
  }
  func.func @transform_7(%arg0: i32) -> (i32, i32) {
    %c0_i32 = arith.constant 0 : i32
    %c0_i32_0 = arith.constant 0 : i32
    return %arg0, %c0_i32 : i32, i32
  }
}

</mosaic_0001>

<bundles_post_ra>
// kernel: _pre_extraction_call.1
= control target key start
LH: loop header
LB: loop body
LE: loop exit
PB: predicated region body
PF: predicated region fallthrough
CT: control target
= control target key end

     0   :  { %s4150_s24 = smov 0   ;;  %s5690_s0 = inlined_call_operand.vmem [shape: bf16[64,16,31], index: 0, kind: input, shape index: {}]   ;;  %s5691_s1 = inlined_call_operand.vmem [shape: bf16[31,128], index: 1, kind: input, shape index: {}]   ;;  %s5692_s2 = inlined_call_operand.vmem [shape: bf16[1,128], index: 2, kind: input, shape index: {}]   ;;  %s5693_s3 = inlined_call_operand.vmem [shape: bf16[2,128,128], index: 3, kind: input, shape index: {}]   ;;  %s5694_s4 = inlined_call_operand.vmem [shape: bf16[2,1,128], index: 4, kind: input, shape index: {}]   ;;  %s5695_s5 = inlined_call_operand.vmem [shape: bf16[2,128,128], index: 5, kind: input, shape index: {}]   ;;  %s5696_s6 = inlined_call_operand.vmem [shape: bf16[2,1,128], index: 6, kind: input, shape index: {}]   ;;  %s5697_s7 = inlined_call_operand.vmem [shape: f32[64,128], index: 7, kind: output, shape index: {}]  }
   0x1 LB: > { %s3295_s25 = sadd.s32 4294967295, %s4107_s24   ;;  %p3299_p0 = scmp.ge.s32.totalorder %s4107_s24, 1  ;;  %s4107_s24 = sphi %s4150_s24, %s17_s24  }
   0x2   : > { %p239_p1 = scmp.lt.s32.totalorder %s4107_s24, 3 }
   0x4   : > { %p240_p2 = pnand %p3299_p0, %p239_p1 }
   0x6   : > { %243 = sbr.rel (%p240_p2) target bundleno = 1192 (0x4a8), region = 48 }
   0xb   : > { %v4035_v0 = vld [vmem:[%s5691_s1 + $0x8] sm:$0xff]   ;;  %vm628_vm0 = vcmask 1046528   ;;  %vm629_vm1 = vcmask 1047552   ;;  %v4109_v1 = vmov 65535   ;;  %s3300_s28 = sshll.u32 %s3295_s25, 5  ;;  %v4036_v4 = vld [vmem:[%s5691_s1] sm:$0xff]   ;;  %v356_v46 = vlaneseq }
   0xc   : > { %v630_v2 = vsel %vm628_vm0, 4294967295, %v4109_v1  ;;  %p273_p3 = scmp.lt.s32.totalorder %s3300_s28, 63  ;;  %vm531_vm2 = vcmask 252928   ;;  %v4069_v6 = vld [vmem:[%s5693_s3 + $0x38] sm:$0xff]   ;;  %v4070_v13 = vld [vmem:[%s5693_s3 + $0x30] sm:$0xff]   ;;  %v4071_v18 = vld [vmem:[%s5693_s3 + $0x28] sm:$0xff]  }
   0xd   : > { %v631_v3 = vsel %vm629_vm1, %v630_v2, 0  ;;  %v4072_v20 = vld [vmem:[%s5693_s3 + $0x20] sm:$0xff]   ;;  %v4073_v24 = vld [vmem:[%s5693_s3 + $0x18] sm:$0xff]   ;;  %v4074_v27 = vld [vmem:[%s5693_s3 + $0x10] sm:$0xff]   ;;  %v357_v47 = vshrl.u32 %v356_v46, 7  ;;  %vm3196_vm3 = vcmask 1041409  }
   0xe   : > { %v633_v5 = vand.u32 %v4035_v0, %v631_v3  ;;  %s6087_s28 = smov (!%p273_p3, %s3300_s28), 63  ;;  %v4075_v30 = vld [vmem:[%s5693_s3 + $0x8] sm:$0xff]   ;;  %v4076_v45 = vld [vmem:[%s5693_s3] sm:$0xff]   ;;  %v4077_v59 = vld [vmem:[%s5695_s5 + $0x38] sm:$0xff]   ;;  %vm3198_vm4 = vcmask 1042434   ;;  %vm3200_vm5 = vcmask 1043459  }
   0xf   : > { %s3439_s8 = sshll.u32 %s6087_s28, 3  ;;  %v354_v48 = vld [vmem:[%s5692_s2] sm:$0x1]  ;;  %v4262_v50 = vsub.s32 0, %v357_v47  ;;  %v4078_v60 = vld [vmem:[%s5695_s5 + $0x30] sm:$0xff]   ;;  %s5498_s23 = sshll.u32 %s3295_s25, 2 }
  0x10   : > { %3634 = vmatprep.subr.bf16.mxu0 %v633_v5  ;;  %4022 = vmatprep.subr.bf16.mxu1 %v633_v5  ;;  %s4169_s11 = scalar_lea.vmem %s5690_s0, %s3439_s8  ;;  %v355_v49 = vunpack.c.l.bf16 %v354_v48  ;;  %vm3202_vm6 = vcmask 1044484   ;;  %p280_p4 = scmp.lt.s32.totalorder %s5498_s23, 7  ;;  %vm3204_vm7 = vcmask 1045509   ;;  %vm3206_vm8 = vcmask 1046534  }
  0x11   : > { %3635 = vmatpush3.bf16.msra.mxu0 %v633_v5  ;;  %4024 = vmatpush3.bf16.msra.mxu1 %v633_v5  ;;  %v4037_v7 = vld [vmem:[%s4169_s11] sm:$0xff]   ;;  %v4038_v8 = vld [vmem:[%s4169_s11 + $0x8] sm:$0xff]   ;;  %v4039_v9 = vld [vmem:[%s4169_s11 + $0x10] sm:$0xff]   ;;  %vm3208_vm9 = vcmask 1047559  }
  0x12   : > { %3636 = vmatprep.subr.bf16.mxu0 %v4036_v4  ;;  %4023 = vmatprep.subr.bf16.mxu1 %v4036_v4  ;;  %v4040_v10 = vld [vmem:[%s4169_s11 + $0x18] sm:$0xff]   ;;  %v4041_v11 = vld [vmem:[%s4169_s11 + $0x20] sm:$0xff]   ;;  %v4042_v12 = vld [vmem:[%s4169_s11 + $0x28] sm:$0xff]   ;;  %v4265_v52 = vrot.slane %v355_v49, %v4262_v50  ;;  %s6089_s23 = smov (!%p280_p4, %s5498_s23), 7 }
  0x13   : > { %3638 = vmatprep.mubr.msk.bf16.mxu0 %vm531_vm2, %v4037_v7  ;;  %v4043_v14 = vld [vmem:[%s4169_s11 + $0x30] sm:$0xff]   ;;  %v4053_v15 = vld [vmem:[%s4169_s11 + $0x80] sm:$0xff]   ;;  %v4054_v16 = vld [vmem:[%s4169_s11 + $0x88] sm:$0xff]   ;;  %s3304_s25 = sshll.u32 %s6089_s23, 3 }
  0x14   : > { %3670 = vmatprep.mubr.msk.bf16.mxu1 %vm531_vm2, %v4053_v15  ;;  %v4055_v17 = vld [vmem:[%s4169_s11 + $0x90] sm:$0xff]   ;;  %v4056_v19 = vld [vmem:[%s4169_s11 + $0x98] sm:$0xff]   ;;  %v4057_v21 = vld [vmem:[%s4169_s11 + $0xa0] sm:$0xff]   ;;  %s5536_s28 = scalar_lea.vmem %s5697_s7, %s3304_s25 }
  0x15   : > { %3637 = vmatpush3.bf16.msra.mxu0 %v4036_v4  ;;  %4025 = vmatpush3.bf16.msra.mxu1 %v4036_v4  ;;  %v4044_v22 = vld [vmem:[%s4169_s11 + $0x38] sm:$0xff]   ;;  %v4045_v23 = vld [vmem:[%s4169_s11 + $0x40] sm:$0xff]   ;;  %v4046_v25 = vld [vmem:[%s4169_s11 + $0x48] sm:$0xff]  }
  0x16   : > { %3702 = vmatprep.subr.bf16.mxu1 %v4069_v6  ;;  %v4058_v26 = vld [vmem:[%s4169_s11 + $0xa8] sm:$0xff]   ;;  %v4047_v28 = vld [vmem:[%s4169_s11 + $0x50] sm:$0xff]   ;;  %v4060_v31 = vld [vmem:[%s4169_s11 + $0xb8] sm:$0xff]   ;;  %3782 = vmatprep.subr.bf16.mxu0 %v4077_v59 }
  0x17   : > { %v4059_v29 = vld [vmem:[%s4169_s11 + $0xb0] sm:$0xff]   ;;  %v4061_v32 = vld [vmem:[%s4169_s11 + $0xc0] sm:$0xff]   ;;  %v4048_v33 = vld [vmem:[%s4169_s11 + $0x58] sm:$0xff]  }
  0x18   : > { %3639 = vmatmul.mubr.msk.bf16.vlgmr.msra.gmra.mxu0 %vm531_vm2, %v4038_v8  ;;  %3671 = vmatmul.mubr.msk.bf16.vlgmr.msra.gmra.mxu1 %vm531_vm2, %v4054_v16  ;;  %v4049_v34 = vld [vmem:[%s4169_s11 + $0x60] sm:$0xff]   ;;  %v4062_v35 = vld [vmem:[%s4169_s11 + $0xc8] sm:$0xff]   ;;  %v4063_v36 = vld [vmem:[%s4169_s11 + $0xd0] sm:$0xff]  }
  0x19   : > { %3642 = vmatprep.mubr.msk.bf16.mxu0 %vm531_vm2, %v4039_v9  ;;  %3674 = vmatprep.mubr.msk.bf16.mxu1 %vm531_vm2, %v4055_v17  ;;  %v4050_v37 = vld [vmem:[%s4169_s11 + $0x68] sm:$0xff]   ;;  %v4051_v38 = vld [vmem:[%s4169_s11 + $0x70] sm:$0xff]   ;;  %v4064_v39 = vld [vmem:[%s4169_s11 + $0xd8] sm:$0xff]  }
  0x1a   : > { %3703 = vmatpush3.bf16.msra.mxu1 %v4069_v6  ;;  %v4065_v40 = vld [vmem:[%s4169_s11 + $0xe0] sm:$0xff]   ;;  %v4052_v41 = vld [vmem:[%s4169_s11 + $0x78] sm:$0xff]   ;;  %v4066_v42 = vld [vmem:[%s4169_s11 + $0xe8] sm:$0xff]   ;;  %3783 = vmatpush3.bf16.msra.mxu0 %v4077_v59 }
  0x1b   : > { %3704 = vmatprep.subr.bf16.mxu1 %v4070_v13  ;;  %v4067_v43 = vld [vmem:[%s4169_s11 + $0xf0] sm:$0xff]   ;;  %v4068_v44 = vld [vmem:[%s4169_s11 + $0xf8] sm:$0xff]   ;;  %3784 = vmatprep.subr.bf16.mxu0 %v4078_v60  ;;  %v4079_v4 = vld [vmem:[%s5695_s5 + $0x28] sm:$0xff]  }
  0x1e   : > { %3705 = vmatpush3.bf16.msra.mxu1 %v4070_v13  ;;  %3785 = vmatpush3.bf16.msra.mxu0 %v4078_v60  ;;  %v4080_v13 = vld [vmem:[%s5695_s5 + $0x20] sm:$0xff]  }
  0x1f   : > { %3706 = vmatprep.subr.bf16.mxu1 %v4071_v18  ;;  %3786 = vmatprep.subr.bf16.mxu0 %v4079_v4 }
  0x20   : > { %3643 = vmatmul.mubr.msk.bf16.gmra.mxu0 %vm531_vm2, %v4040_v10  ;;  %3675 = vmatmul.mubr.msk.bf16.gmra.mxu1 %vm531_vm2, %v4056_v19 }
  0x21   : > { %3646 = vmatprep.mubr.msk.bf16.mxu0 %vm531_vm2, %v4041_v11  ;;  %3678 = vmatprep.mubr.msk.bf16.mxu1 %vm531_vm2, %v4057_v21 }
  0x22   : > { %3707 = vmatpush3.bf16.msra.mxu1 %v4071_v18  ;;  %3787 = vmatpush3.bf16.msra.mxu0 %v4079_v4 }
  0x23   : > { %3708 = vmatprep.subr.bf16.mxu1 %v4072_v20  ;;  %3788 = vmatprep.subr.bf16.mxu0 %v4080_v13 }
  0x26   : > { %3709 = vmatpush3.bf16.msra.mxu1 %v4072_v20  ;;  %3789 = vmatpush3.bf16.msra.mxu0 %v4080_v13 }
  0x27   : > { %3710 = vmatprep.subr.bf16.mxu1 %v4073_v24 }
  0x28   : > { %3647 = vmatmul.mubr.msk.bf16.gmra.mxu0 %vm531_vm2, %v4042_v12  ;;  %3679 = vmatmul.mubr.msk.bf16.gmra.mxu1 %vm531_vm2, %v4058_v26 }
  0x29   : > { %3650 = vmatprep.mubr.msk.bf16.mxu0 %vm531_vm2, %v4043_v14  ;;  %3682 = vmatprep.mubr.msk.bf16.mxu1 %vm531_vm2, %v4059_v29 }
  0x2a   : > { %3711 = vmatpush3.bf16.msra.mxu1 %v4073_v24 }
  0x2b   : > { %3712 = vmatprep.subr.bf16.mxu1 %v4074_v27 }
  0x2e   : > { %3713 = vmatpush3.bf16.msra.mxu1 %v4074_v27 }
  0x2f   : > { %3714 = vmatprep.subr.bf16.mxu1 %v4075_v30 }
  0x30   : > { %3651 = vmatmul.mubr.msk.bf16.gmra.mxu0 %vm531_vm2, %v4044_v22  ;;  %3683 = vmatmul.mubr.msk.bf16.gmra.mxu1 %vm531_vm2, %v4060_v31 }
  0x31   : > { %3654 = vmatprep.mubr.msk.bf16.mxu0 %vm531_vm2, %v4045_v23  ;;  %3686 = vmatprep.mubr.msk.bf16.mxu1 %vm531_vm2, %v4061_v32  ;;  %v4081_v23 = vld [vmem:[%s5695_s5 + $0x18] sm:$0xff]  }
  0x32   : > { %3715 = vmatpush3.bf16.msra.mxu1 %v4075_v30  ;;  %3790 = vmatprep.subr.bf16.mxu0 %v4081_v23 }
  0x33   : > { %3716 = vmatprep.subr.bf16.mxu1 %v4076_v45  ;;  %3791 = vmatpush3.bf16.msra.mxu0 %v4081_v23 }
  0x36   : > { %3717 = vmatpush3.bf16.msra.mxu1 %v4076_v45 }
  0x38   : > { %3655 = vmatmul.mubr.msk.bf16.gmra.mxu0 %vm531_vm2, %v4046_v25  ;;  %3687 = vmatmul.mubr.msk.bf16.gmra.mxu1 %vm531_vm2, %v4062_v35 }
  0x39   : > { %3658 = vmatprep.mubr.msk.bf16.mxu0 %vm531_vm2, %v4047_v28  ;;  %3690 = vmatprep.mubr.msk.bf16.mxu1 %vm531_vm2, %v4063_v36 }
  0x40   : > { %3659 = vmatmul.mubr.msk.bf16.gmra.mxu0 %vm531_vm2, %v4048_v33  ;;  %3691 = vmatmul.mubr.msk.bf16.gmra.mxu1 %vm531_vm2, %v4064_v39  ;;  %v4082_v33 = vld [vmem:[%s5695_s5 + $0x10] sm:$0xff]  }
  0x41   : > { %3662 = vmatprep.mubr.msk.bf16.mxu0 %vm531_vm2, %v4049_v34  ;;  %3694 = vmatprep.mubr.msk.bf16.mxu1 %vm531_vm2, %v4065_v40 }
  0x42   : > { %3792 = vmatprep.subr.bf16.mxu0 %v4082_v33 }
  0x43   : > { %3793 = vmatpush3.bf16.msra.mxu0 %v4082_v33 }
  0x48   : > { %3663 = vmatmul.mubr.msk.bf16.gmra.mxu0 %vm531_vm2, %v4050_v37  ;;  %3695 = vmatmul.mubr.msk.bf16.gmra.mxu1 %vm531_vm2, %v4066_v42 }
  0x49   : > { %3666 = vmatprep.mubr.msk.bf16.mxu0 %vm531_vm2, %v4051_v38  ;;  %3698 = vmatprep.mubr.msk.bf16.mxu1 %vm531_vm2, %v4067_v43  ;;  %v4083_v43 = vld [vmem:[%s5695_s5 + $0x8] sm:$0xff]  }
  0x4a   : > { %3794 = vmatprep.subr.bf16.mxu0 %v4083_v43 }
  0x4b   : > { %3795 = vmatpush3.bf16.msra.mxu0 %v4083_v43 }
  0x50   : > { %3667 = vmatmul.mubr.msk.bf16.gmra.mxu0 %vm531_vm2, %v4052_v41  ;;  %3699 = vmatmul.mubr.msk.bf16.gmra.mxu1 %vm531_vm2, %v4068_v44 }
  0xd8   : > { %v3640_v51 = vpop.f32.mrf.mxu0  ;;  %v4309_v12 = vpop.f32.mrf.mxu1 }
  0xd9   : > { %v4274_v57 = vadd.f32 %v3640_v51, %v4265_v52 }
  0xda   : > { %v669_v53 = vpop.f32.mrf.mxu0  ;;  %v4318_v17 = vpop.f32.mrf.mxu1 }
  0xdb   : > { %v4268_v55 = vadd.f32 %v669_v53, %v4265_v52  ;;  %v5721_v2 = vmax.f32 %v4274_v57, 0.0 }
  0xdc   : > { %v3641_v54 = vpop.f32.mrf.mxu0  ;;  %v4323_v22 = vpop.f32.mrf.mxu1 }
  0xdd   : > { %v4271_v56 = vadd.f32 %v3641_v54, %v4265_v52  ;;  %v5725_v0 = vmax.f32 %v4268_v55, 0.0 }
  0xde   : > { %v672_v58 = vpop.f32.mrf.mxu0  ;;  %v4336_v27 = vpop.f32.mrf.mxu1 }
  0xdf   : > { %v4283_v61 = vadd.f32 %v672_v58, %v4265_v52  ;;  %v5724_v62 = vmax.f32 %v4271_v56, 0.0 }
  0xe0   : > { %v3644_v63 = vpop.f32.mrf.mxu0  ;;  %v4347_v32 = vpop.f32.mrf.mxu1 }
  0xe1   : > { %v5718_v1 = vmax.f32 %v4283_v61, 0.0  ;;  %v989_v6 = vpack.c.bf16 %v5724_v62, %v5721_v2  ;;  %v4307_v10 = vadd.f32 %v3644_v63, %v4265_v52 }
  0xe2   : > { %v685_v3 = vpop.f32.mrf.mxu0  ;;  %v4356_v37 = vpop.f32.mrf.mxu1 }
  0xe3   : > { %v988_v5 = vpack.c.bf16 %v5718_v1, %v5725_v0  ;;  %v4301_v8 = vadd.f32 %v685_v3, %v4265_v52  ;;  %v5715_v20 = vmax.f32 %v4307_v10, 0.0 }
  0xe4   : > { %v3645_v7 = vpop.f32.mrf.mxu0  ;;  %v4361_v42 = vpop.f32.mrf.mxu1 }
  0xe5   : > { %v4304_v9 = vadd.f32 %v3645_v7, %v4265_v52  ;;  %3718 = vmatprep.mubr.bf16.mxu1 %v988_v5  ;;  %v5717_v18 = vmax.f32 %v4301_v8, 0.0 }
  0xe6   : > { %v688_v11 = vpop.f32.mrf.mxu0  ;;  %3719 = vmatmul.mubr.bf16.vlgmr.msra.gmra.mxu1 %v989_v6  ;;  %v4374_v47 = vpop.f32.mrf.mxu1 }
  0xe7   : > { %v4315_v14 = vadd.f32 %v688_v11, %v4265_v52  ;;  %v5716_v15 = vmax.f32 %v4304_v9, 0.0  ;;  %v4534_v0 = vadd.f32 %v4374_v47, %v4265_v52 }
  0xe8   : > { %v3648_v16 = vpop.f32.mrf.mxu0  ;;  %v4385_v54 = vpop.f32.mrf.mxu1 }
  0xe9   : > { %v5714_v19 = vmax.f32 %v4315_v14, 0.0  ;;  %v991_v25 = vpack.c.bf16 %v5716_v15, %v5715_v20  ;;  %v4345_v30 = vadd.f32 %v3648_v16, %v4265_v52  ;;  %5871 = vst [vmem:[#allocation4_spill] sm:$0xff] %v4534_v0 }
  0xea   : > { %v701_v21 = vpop.f32.mrf.mxu0  ;;  %v4391_v63 = vpop.f32.mrf.mxu1 }
  0xeb   : > { %v990_v24 = vpack.c.bf16 %v5714_v19, %v5717_v18  ;;  %v4339_v28 = vadd.f32 %v701_v21, %v4265_v52  ;;  %v5707_v40 = vmax.f32 %v4345_v30, 0.0 }
  0xec   : > { %v3649_v26 = vpop.f32.mrf.mxu0  ;;  %v4396_v7 = vpop.f32.mrf.mxu1 }
  0xed   : > { %v4342_v29 = vadd.f32 %v3649_v26, %v4265_v52  ;;  %3722 = vmatprep.mubr.bf16.mxu1 %v990_v24  ;;  %v5709_v38 = vmax.f32 %v4339_v28, 0.0 }
  0xee   : > { %v704_v31 = vpop.f32.mrf.mxu0  ;;  %3723 = vmatmul.mubr.bf16.gmra.mxu1 %v991_v25  ;;  %v4406_v21 = vpop.f32.mrf.mxu1 }
  0xef   : > { %v4353_v34 = vadd.f32 %v704_v31, %v4265_v52  ;;  %v5708_v35 = vmax.f32 %v4342_v29, 0.0 }
  0xf0   : > { %v3652_v36 = vpop.f32.mrf.mxu0  ;;  %v4417_v31 = vpop.f32.mrf.mxu1 }
  0xf1   : > { %v5706_v39 = vmax.f32 %v4353_v34, 0.0  ;;  %v993_v45 = vpack.c.bf16 %v5708_v35, %v5707_v40  ;;  %v4383_v51 = vadd.f32 %v3652_v36, %v4265_v52 }
  0xf2   : > { %v717_v41 = vpop.f32.mrf.mxu0  ;;  %v4423_v43 = vpop.f32.mrf.mxu1 }
  0xf3   : > { %v992_v44 = vpack.c.bf16 %v5706_v39, %v5709_v38  ;;  %v4377_v48 = vadd.f32 %v717_v41, %v4265_v52  ;;  %v5699_v5 = vmax.f32 %v4383_v51, 0.0 }
  0xf4   : > { %v3653_v46 = vpop.f32.mrf.mxu0 }
  0xf5   : > { %v4380_v49 = vadd.f32 %v3653_v46, %v4265_v52  ;;  %3726 = vmatprep.mubr.bf16.mxu1 %v992_v44  ;;  %v5705_v3 = vmax.f32 %v4377_v48, 0.0 }
  0xf6   : > { %v720_v53 = vpop.f32.mrf.mxu0  ;;  %3727 = vmatmul.mubr.bf16.gmra.mxu1 %v993_v45 }
  0xf7   : > { %v4388_v58 = vadd.f32 %v720_v53, %v4265_v52  ;;  %v5704_v59 = vmax.f32 %v4380_v49, 0.0 }
  0xf8   : > { %v3656_v60 = vpop.f32.mrf.mxu0 }
  0xf9   : > { %v5698_v4 = vmax.f32 %v4388_v58, 0.0  ;;  %v995_v13 = vpack.c.bf16 %v5704_v59, %v5699_v5  ;;  %v4415_v25 = vadd.f32 %v3656_v60, %v4265_v52 }
  0xfa   : > { %v733_v6 = vpop.f32.mrf.mxu0 }
  0xfb   : > { %v994_v11 = vpack.c.bf16 %v5698_v4, %v5705_v3  ;;  %v4409_v23 = vadd.f32 %v733_v6, %v4265_v52  ;;  %v5701_v46 = vmax.f32 %v4415_v25, 0.0 }
  0xfc   : > { %v3657_v16 = vpop.f32.mrf.mxu0 }
  0xfd   : > { %v4412_v24 = vadd.f32 %v3657_v16, %v4265_v52  ;;  %3730 = vmatprep.mubr.bf16.mxu1 %v994_v11  ;;  %v5703_v44 = vmax.f32 %v4409_v23, 0.0 }
  0xfe   : > { %v736_v26 = vpop.f32.mrf.mxu0  ;;  %3731 = vmatmul.mubr.bf16.gmra.mxu1 %v995_v13  ;;  %v4436_v13 = vpop.f32.mrf.mxu1 }
  0xff   : > { %v4420_v33 = vadd.f32 %v736_v26, %v4265_v52  ;;  %v5702_v36 = vmax.f32 %v4412_v24, 0.0 }
 0x100   : > { %v3660_v41 = vpop.f32.mrf.mxu0 }
 0x101   : > { %v5700_v45 = vmax.f32 %v4420_v33, 0.0  ;;  %v997_v6 = vpack.c.bf16 %v5702_v36, %v5701_v46  ;;  %v4445_v4 = vadd.f32 %v3660_v41, %v4265_v52 }
 0x102   : > { %v749_v53 = vpop.f32.mrf.mxu0 }
 0x103   : > { %v996_v60 = vpack.c.bf16 %v5700_v45, %v5703_v44  ;;  %v4439_v16 = vadd.f32 %v749_v53, %v4265_v52  ;;  %v4451_v44 = vpop.f32.mrf.mxu1 }
 0x104   : > { %v3661_v11 = vpop.f32.mrf.mxu0 }
 0x105   : > { %v4442_v26 = vadd.f32 %v3661_v11, %v4265_v52  ;;  %3734 = vmatprep.mubr.bf16.mxu1 %v996_v60  ;;  %v5713_v53 = vmax.f32 %v4439_v16, 0.0  ;;  %v5711_v11 = vmax.f32 %v4445_v4, 0.0  ;;  %v4464_v3 = vpop.f32.mrf.mxu1 }
 0x106   : > { %v752_v5 = vpop.f32.mrf.mxu0  ;;  %3735 = vmatmul.mubr.bf16.gmra.mxu1 %v997_v6 }
 0x107   : > { %v4448_v45 = vadd.f32 %v752_v5, %v4265_v52  ;;  %v5712_v46 = vmax.f32 %v4442_v26, 0.0 }
 0x108   : > { %v3664_v36 = vpop.f32.mrf.mxu0 }
 0x109   : > { %v5710_v59 = vmax.f32 %v4448_v45, 0.0  ;;  %v999_v5 = vpack.c.bf16 %v5712_v46, %v5711_v11  ;;  %v4473_v35 = vadd.f32 %v3664_v36, %v4265_v52  ;;  %v4486_v36 = vadd.f32 %v4318_v17, %v4265_v52 }
 0x10a   : > { %v765_v60 = vpop.f32.mrf.mxu0 }
 0x10b   : > { %v998_v41 = vpack.c.bf16 %v5710_v59, %v5713_v53  ;;  %v4467_v39 = vadd.f32 %v765_v60, %v4265_v52  ;;  %v4479_v53 = vpop.f32.mrf.mxu1 }
 0x10c   : > { %v3665_v6 = vpop.f32.mrf.mxu0 }
 0x10d   : > { %v4470_v40 = vadd.f32 %v3665_v6, %v4265_v52  ;;  %3738 = vmatprep.mubr.bf16.mxu1 %v998_v41  ;;  %v5720_v60 = vmax.f32 %v4467_v39, 0.0  ;;  %v5722_v6 = vmax.f32 %v4473_v35, 0.0  ;;  %v4500_v18 = vpop.f32.mrf.mxu1 }
 0x10e   : > { %v768_v38 = vpop.f32.mrf.mxu0  ;;  %3739 = vmatmul.mubr.bf16.gmra.mxu1 %v999_v5  ;;  %v4494_v5 = vadd.f32 %v4336_v27, %v4265_v52 }
 0x10f   : > { %v4476_v59 = vadd.f32 %v768_v38, %v4265_v52  ;;  %v5723_v11 = vmax.f32 %v4470_v40, 0.0 }
 0x110   : > { %v3668_v46 = vpop.f32.mrf.mxu0  ;;  %5869 = vst [vmem:[#allocation2_spill] sm:$0xff] %v4494_v5 }
 0x111   : > { %v5719_v19 = vmax.f32 %v4476_v59, 0.0  ;;  %v1001_v20 = vpack.c.bf16 %v5723_v11, %v5722_v6  ;;  %v5729_v6 = vmax.f32 %v4494_v5, 0.0  ;;  %v4538_v11 = vadd.f32 %v4309_v12, %v4265_v52 }
 0x112   : > { %v781_v41 = vpop.f32.mrf.mxu0 }
 0x113   : > { %v1000_v38 = vpack.c.bf16 %v5719_v19, %v5720_v60  ;;  %v4503_v17 = vadd.f32 %v781_v41, %v4265_v52  ;;  %v4509_v19 = vadd.f32 %v3668_v46, %v4265_v52  ;;  %v5730_v60 = vmax.f32 %v4486_v36, 0.0  ;;  %v864_v41 = vpop.f32.mrf.mxu1 }
 0x114   : > { %v3669_v15 = vpop.f32.mrf.mxu0  ;;  %v4522_v46 = vadd.f32 %v4356_v37, %v4265_v52  ;;  %v5736_v12 = vmax.f32 %v4538_v11, 0.0 }
 0x115   : > { %5870 = vst [vmem:[#allocation3_spill] sm:$0xff] %v4503_v17  ;;  %v4506_v1 = vadd.f32 %v3669_v15, %v4265_v52  ;;  %3742 = vmatprep.mubr.bf16.mxu1 %v1000_v38  ;;  %v5728_v62 = vmax.f32 %v4503_v17, 0.0  ;;  %v5732_v38 = vmax.f32 %v4509_v19, 0.0 }
 0x116   : > { %v784_v27 = vpop.f32.mrf.mxu0  ;;  %3743 = vmatmul.mubr.bf16.gmra.mxu1 %v1001_v20  ;;  %v5734_v47 = vmax.f32 %v4522_v46, 0.0 }
 0x117   : > { %v4513_v2 = vadd.f32 %v784_v27, %v4265_v52  ;;  %v1004_v27 = vpack.c.bf16 %v5729_v6, %v5730_v60  ;;  %v5872_v37 = vmax.f32 %v4506_v1, 0.0  ;;  %v5733_v6 = vmax.f32 %v4534_v0, 0.0 }
 0x119   : > { %v5727_v15 = vmax.f32 %v4513_v2, 0.0  ;;  %v1003_v17 = vpack.c.bf16 %v5872_v37, %v5732_v38  ;;  %v4556_v37 = vadd.f32 %v4391_v63, %v4265_v52  ;;  %v4576_v63 = vadd.f32 %v4361_v42, %v4265_v52 }
 0x11b   : > { %v1002_v20 = vpack.c.bf16 %v5727_v15, %v5728_v62  ;;  %v4546_v15 = vadd.f32 %v4323_v22, %v4265_v52  ;;  %v4548_v62 = vpop.f32.mrf.mxu1  ;;  %5873 = vst [vmem:[#allocation5_spill] sm:$0xff] %v4556_v37  ;;  %v1006_v22 = vpack.c.bf16 %v5733_v6, %v5734_v47  ;;  %v5740_v6 = vmax.f32 %v4556_v37, 0.0 }
 0x11c   : > { %v5742_v0 = vmax.f32 %v4576_v63, 0.0 }
 0x11d   : > { %3746 = vmatprep.mubr.bf16.mxu1 %v1002_v20  ;;  %v5737_v60 = vmax.f32 %v4546_v15, 0.0  ;;  %v877_v5 = vpop.f32.mrf.mxu1 }
 0x11e   : > { %3747 = vmatmul.mubr.bf16.gmra.mxu1 %v1003_v17  ;;  %v4564_v17 = vadd.f32 %v4406_v21, %v4265_v52 }
 0x11f   : > { %3750 = vmatprep.mubr.bf16.mxu1 %v1004_v27  ;;  %v1005_v20 = vpack.c.bf16 %v5737_v60, %v5736_v12  ;;  %v4572_v27 = vadd.f32 %v4347_v32, %v4265_v52  ;;  %v3693_v38 = vpop.f32.mrf.mxu1  ;;  %v4584_v32 = vadd.f32 %v4423_v43, %v4265_v52  ;;  %v4600_v60 = vadd.f32 %v4385_v54, %v4265_v52 }
 0x120   : > { %5874 = vst [vmem:[#allocation6_spill] sm:$0xff] %v4564_v17  ;;  %v5739_v21 = vmax.f32 %v4564_v17, 0.0  ;;  %v4604_v43 = vadd.f32 %v4396_v7, %v4265_v52  ;;  %v4615_v7 = vadd.f32 %v4479_v53, %v4265_v52  ;;  %v4634_v53 = vadd.f32 %v4436_v13, %v4265_v52 }
 0x121   : > { %v5741_v47 = vmax.f32 %v4572_v27, 0.0  ;;  %v880_v12 = vpop.f32.mrf.mxu1  ;;  %5875 = vst [vmem:[#allocation7_spill] sm:$0xff] %v4584_v32 }
 0x122   : > { %v1008_v42 = vpack.c.bf16 %v5739_v21, %v5740_v6  ;;  %v5746_v21 = vmax.f32 %v4584_v32, 0.0  ;;  %v5749_v54 = vmax.f32 %v4604_v43, 0.0  ;;  %5877 = vst [vmem:[#allocation9_spill] sm:$0xff] %v4615_v7  ;;  %v4648_v13 = vadd.f32 %v880_v12, %v4265_v52 }
 0x123   : > { %v3696_v37 = vpop.f32.mrf.mxu1 }
 0x124   : > { %5881 = vst [vmem:[#allocation13_spill] sm:$0xff] %v4648_v13  ;;  %v5758_v12 = vmax.f32 %v4648_v13, 0.0 }
 0x126   : > { %3751 = vmatmul.mubr.bf16.gmra.mxu1 %v1005_v20  ;;  %v4592_v20 = vadd.f32 %v4451_v44, %v4265_v52  ;;  %v4084_v44 = vld [vmem:[%s5695_s5] sm:$0xff]  }
 0x127   : > { %3754 = vmatprep.mubr.bf16.mxu1 %v1006_v22  ;;  %v1007_v22 = vpack.c.bf16 %v5742_v0, %v5741_v47  ;;  %v5748_v47 = vmax.f32 %v4600_v60, 0.0  ;;  %v893_v0 = vpop.f32.mrf.mxu1  ;;  %3796 = vmatprep.subr.bf16.mxu0 %v4084_v44 }
 0x128   : > { %5876 = vst [vmem:[#allocation8_spill] sm:$0xff] %v4592_v20  ;;  %v5745_v6 = vmax.f32 %v4592_v20, 0.0  ;;  %3797 = vmatpush3.bf16.msra.mxu0 %v4084_v44  ;;  %v4630_v44 = vadd.f32 %v4417_v31, %v4265_v52  ;;  %v5755_v20 = vmax.f32 %v4634_v53, 0.0 }
 0x129   : > { %v1009_v17 = vpack.c.bf16 %v5749_v54, %v5748_v47  ;;  %v3697_v32 = vpop.f32.mrf.mxu1  ;;  %v4641_v54 = vadd.f32 %v877_v5, %v4265_v52  ;;  %v4660_v5 = vadd.f32 %v4500_v18, %v4265_v52 }
 0x12a   : > { %5879 = vst [vmem:[#allocation11_spill] sm:$0xff] %v4630_v44 }
 0x12b   : > { %v896_v47 = vpop.f32.mrf.mxu1  ;;  %5880 = vst [vmem:[#allocation12_spill] sm:$0xff] %v4641_v54 }
 0x12e   : > { %3755 = vmatmul.mubr.bf16.gmra.mxu1 %v1007_v22  ;;  %v1010_v22 = vpack.c.bf16 %v5745_v6, %v5746_v21  ;;  %v5752_v6 = vmax.f32 %v4615_v7, 0.0  ;;  %v5754_v21 = vmax.f32 %v4630_v44, 0.0  ;;  %v3700_v7 = vpop.f32.mrf.mxu1 }
 0x12f   : > { %3758 = vmatprep.mubr.bf16.mxu1 %v1008_v42  ;;  %v4622_v42 = vadd.f32 %v864_v41, %v4265_v52 }
 0x131   : > { %5878 = vst [vmem:[#allocation10_spill] sm:$0xff] %v4622_v42  ;;  %v5751_v41 = vmax.f32 %v4622_v42, 0.0  ;;  %v5762_v42 = vmax.f32 %v4660_v5, 0.0 }
 0x133   : > { %v1012_v31 = vpack.c.bf16 %v5751_v41, %v5752_v6  ;;  %v5759_v41 = vmax.f32 %v4641_v54, 0.0 }
 0x135   : > { %v1014_v18 = vpack.c.bf16 %v5758_v12, %v5759_v41 }
 0x136   : > { %3759 = vmatmul.mubr.bf16.gmra.mxu1 %v1009_v17  ;;  %v1011_v17 = vpack.c.bf16 %v5755_v20, %v5754_v21  ;;  %v909_v21 = vpop.f32.mrf.mxu1  ;;  %v4667_v20 = vadd.f32 %v893_v0, %v4265_v52  ;;  %v4685_v0 = vadd.f32 %v3693_v38, %v4265_v52 }
 0x137   : > { %3762 = vmatprep.mubr.bf16.mxu1 %v1010_v22  ;;  %v4656_v22 = vadd.f32 %v4464_v3, %v4265_v52  ;;  %v4674_v3 = vadd.f32 %v896_v47, %v4265_v52 }
 0x138   : > { %5882 = vst [vmem:[#allocation14_spill] sm:$0xff] %v4667_v20  ;;  %5885 = vst [vmem:[#allocation17_spill] sm:$0xff] %v4685_v0  ;;  %v3701_v44 = vpop.f32.mrf.mxu1  ;;  %v5764_v13 = vmax.f32 %v4667_v20, 0.0  ;;  %v5766_v41 = vmax.f32 %v4685_v0, 0.0 }
 0x139   : > { %v5761_v6 = vmax.f32 %v4656_v22, 0.0  ;;  %5883 = vst [vmem:[#allocation15_spill] sm:$0xff] %v4674_v3  ;;  %v5763_v47 = vmax.f32 %v4674_v3, 0.0 }
 0x13a   : > { %v912_v54 = vpop.f32.mrf.mxu1 }
 0x13b   : > { %v4699_v38 = vadd.f32 %v912_v54, %v4265_v52 }
 0x13d   : > { %5887 = vst [vmem:[#allocation19_spill] sm:$0xff] %v4699_v38 }
 0x13e   : > { %3763 = vmatmul.mubr.bf16.gmra.mxu1 %v1011_v17  ;;  %v4682_v17 = vadd.f32 %v4548_v62, %v4265_v52  ;;  %v1016_v62 = vpack.c.bf16 %v5763_v47, %v5764_v13  ;;  %v5767_v47 = vmax.f32 %v4699_v38, 0.0 }
 0x13f   : > { %3766 = vmatprep.mubr.bf16.mxu1 %v1012_v31  ;;  %v1013_v31 = vpack.c.bf16 %v5762_v42, %v5761_v6  ;;  %v4692_v6 = vadd.f32 %v909_v21, %v4265_v52  ;;  %v4709_v42 = vadd.f32 %v3697_v32, %v4265_v52  ;;  %v4724_v32 = vadd.f32 %v3700_v7, %v4265_v52  ;;  %v4085_v7 = vld [vmem:[%s5693_s3 + $0x78] sm:$0xff]  }
 0x140   : > { %5884 = vst [vmem:[#allocation16_spill] sm:$0xff] %v4682_v17  ;;  %v5765_v12 = vmax.f32 %v4682_v17, 0.0  ;;  %3862 = vmatprep.subr.bf16.mxu1 %v4085_v7 }
 0x141   : > { %5886 = vst [vmem:[#allocation18_spill] sm:$0xff] %v4692_v6  ;;  %5889 = vst [vmem:[#allocation21_spill] sm:$0xff] %v4709_v42  ;;  %v5770_v21 = vmax.f32 %v4692_v6, 0.0  ;;  %v5772_v13 = vmax.f32 %v4709_v42, 0.0  ;;  %3863 = vmatpush3.bf16.msra.mxu1 %v4085_v7 }
 0x142   : > { %5890 = vst [vmem:[#allocation22_spill] sm:$0xff] %v4724_v32 }
 0x146   : > { %3767 = vmatmul.mubr.bf16.gmra.mxu1 %v1013_v31  ;;  %v4706_v31 = vadd.f32 %v3696_v37, %v4265_v52 }
 0x147   : > { %3770 = vmatprep.mubr.bf16.mxu1 %v1014_v18  ;;  %v1015_v18 = vpack.c.bf16 %v5766_v41, %v5765_v12  ;;  %v1018_v12 = vpack.c.bf16 %v5767_v47, %v5770_v21 }
 0x148   : > { %5888 = vst [vmem:[#allocation20_spill] sm:$0xff] %v4706_v31  ;;  %v5771_v54 = vmax.f32 %v4706_v31, 0.0 }
 0x14a   : > { %v1017_v37 = vpack.c.bf16 %v5772_v13, %v5771_v54 }
 0x14e   : > { %3771 = vmatmul.mubr.bf16.gmra.mxu1 %v1015_v18  ;;  %v5768_v18 = vmax.f32 %v4724_v32, 0.0 }
 0x14f   : > { %3774 = vmatprep.mubr.bf16.mxu1 %v1016_v62  ;;  %v4727_v62 = vadd.f32 %v3701_v44, %v4265_v52  ;;  %v4086_v52 = vld [vmem:[%s5693_s3 + $0x70] sm:$0xff]   ;;  %v1036_v44 = vld [vmem:[%s5694_s4] sm:$0x1] }
 0x150   : > { %3864 = vmatprep.subr.bf16.mxu1 %v4086_v52 }
 0x151   : > { %5891 = vst [vmem:[#allocation23_spill] sm:$0xff] %v4727_v62  ;;  %v5769_v41 = vmax.f32 %v4727_v62, 0.0  ;;  %3865 = vmatpush3.bf16.msra.mxu1 %v4086_v52 }
 0x153   : > { %v1019_v47 = vpack.c.bf16 %v5769_v41, %v5768_v18 }
 0x156   : > { %3775 = vmatmul.mubr.bf16.gmra.mxu1 %v1017_v37 }
 0x157   : > { %3778 = vmatprep.mubr.bf16.mxu1 %v1018_v12  ;;  %v1037_v12 = vunpack.c.l.bf16 %v1036_v44  ;;  %v4088_v44 = vld [vmem:[%s5693_s3 + $0x60] sm:$0xff]  }
 0x159   : > { %v4748_v18 = vrot.slane %v1037_v12, %v4262_v50  ;;  %v4089_v12 = vld [vmem:[%s5693_s3 + $0x58] sm:$0xff]  }
 0x15e   : > { %3779 = vmatmul.mubr.bf16.gmra.mxu1 %v1019_v47  ;;  %v4087_v47 = vld [vmem:[%s5693_s3 + $0x68] sm:$0xff]  }
 0x15f   : > { %3866 = vmatprep.subr.bf16.mxu1 %v4087_v47 }
 0x160   : > { %3867 = vmatpush3.bf16.msra.mxu1 %v4087_v47 }
 0x161   : > { %3868 = vmatprep.subr.bf16.mxu1 %v4088_v44 }
 0x164   : > { %3869 = vmatpush3.bf16.msra.mxu1 %v4088_v44 }
 0x165   : > { %3870 = vmatprep.subr.bf16.mxu1 %v4089_v12 }
 0x168   : > { %3871 = vmatpush3.bf16.msra.mxu1 %v4089_v12 }
 0x1a6   : > { %v3720_v37 = vpop.f32.mrf.mxu1 }
 0x1a7   : > { %v1133_v54 = vadd.f32 %v3720_v37, %v4748_v18  ;;  %v4090_v37 = vld [vmem:[%s5693_s3 + $0x50] sm:$0xff]  }
 0x1a8   : > { %v1124_v7 = vpop.f32.mrf.mxu1  ;;  %3872 = vmatprep.subr.bf16.mxu1 %v4090_v37 }
 0x1a9   : > { %v1125_v21 = vadd.f32 %v1124_v7, %v4748_v18  ;;  %3873 = vmatpush3.bf16.msra.mxu1 %v4090_v37 }
 0x1aa   : > { %v3721_v41 = vpop.f32.mrf.mxu1 }
 0x1ab   : > { %v1136_v52 = vadd.f32 %v3721_v41, %v4748_v18  ;;  %v1379_v47 = vmax.f32 %v1125_v21, 0.0  ;;  %v1381_v41 = vmax.f32 %v1133_v54, 0.0  ;;  %v4091_v54 = vld [vmem:[%s5693_s3 + $0x48] sm:$0xff]  }
 0x1ac   : > { %v1127_v13 = vpop.f32.mrf.mxu1  ;;  %3874 = vmatprep.subr.bf16.mxu1 %v4091_v54 }
 0x1ad   : > { %v1128_v38 = vadd.f32 %v1127_v13, %v4748_v18  ;;  %v1382_v32 = vmax.f32 %v1136_v52, 0.0  ;;  %3875 = vmatpush3.bf16.msra.mxu1 %v4091_v54 }
 0x1ae   : > { %v3724_v62 = vpop.f32.mrf.mxu1 }
 0x1af   : > { %v1380_v7 = vmax.f32 %v1128_v38, 0.0  ;;  %v1444_v31 = vpack.c.bf16 %v1382_v32, %v1381_v41  ;;  %v1149_v21 = vadd.f32 %v3724_v62, %v4748_v18 }
 0x1b0   : > { %v1140_v6 = vpop.f32.mrf.mxu1 }
 0x1b1   : > { %v1443_v3 = vpack.c.bf16 %v1380_v7, %v1379_v47  ;;  %v1141_v20 = vadd.f32 %v1140_v6, %v4748_v18  ;;  %v1385_v6 = vmax.f32 %v1149_v21, 0.0 }
 0x1b2   : > { %v3725_v42 = vpop.f32.mrf.mxu1 }
 0x1b3   : > { %v1152_v13 = vadd.f32 %v3725_v42, %v4748_v18  ;;  %3798 = vmatprep.mubr.bf16.mxu0 %v1443_v3  ;;  %v1383_v47 = vmax.f32 %v1141_v20, 0.0  ;;  %v4092_v3 = vld [vmem:[%s5693_s3 + $0x40] sm:$0xff]  }
 0x1b4   : > { %v1143_v38 = vpop.f32.mrf.mxu1  ;;  %3799 = vmatmul.mubr.bf16.vlgmr.msra.gmra.mxu0 %v1444_v31  ;;  %3876 = vmatprep.subr.bf16.mxu1 %v4092_v3 }
 0x1b5   : > { %v1144_v52 = vadd.f32 %v1143_v38, %v4748_v18  ;;  %v1386_v44 = vmax.f32 %v1152_v13, 0.0  ;;  %3877 = vmatpush3.bf16.msra.mxu1 %v4092_v3 }
 0x1b6   : > { %v3728_v32 = vpop.f32.mrf.mxu1 }
 0x1b7   : > { %v1384_v7 = vmax.f32 %v1144_v52, 0.0  ;;  %v1446_v62 = vpack.c.bf16 %v1386_v44, %v1385_v6  ;;  %v1165_v20 = vadd.f32 %v3728_v32, %v4748_v18 }
 0x1b8   : > { %v1156_v42 = vpop.f32.mrf.mxu1 }
 0x1b9   : > { %v1445_v31 = vpack.c.bf16 %v1384_v7, %v1383_v47  ;;  %v1157_v41 = vadd.f32 %v1156_v42, %v4748_v18  ;;  %v1389_v44 = vmax.f32 %v1165_v20, 0.0 }
 0x1ba   : > { %v3729_v12 = vpop.f32.mrf.mxu1 }
 0x1bb   : > { %v1168_v17 = vadd.f32 %v3729_v12, %v4748_v18  ;;  %3802 = vmatprep.mubr.bf16.mxu0 %v1445_v31  ;;  %v1387_v52 = vmax.f32 %v1157_v41, 0.0 }
 0x1bc   : > { %v1159_v13 = vpop.f32.mrf.mxu1  ;;  %3803 = vmatmul.mubr.bf16.gmra.mxu0 %v1446_v62 }
 0x1bd   : > { %v1160_v37 = vadd.f32 %v1159_v13, %v4748_v18  ;;  %v1390_v21 = vmax.f32 %v1168_v17, 0.0 }
 0x1be   : > { %v3732_v38 = vpop.f32.mrf.mxu1 }
 0x1bf   : > { %v1388_v0 = vmax.f32 %v1160_v37, 0.0  ;;  %v1448_v6 = vpack.c.bf16 %v1390_v21, %v1389_v44  ;;  %v1181_v32 = vadd.f32 %v3732_v38, %v4748_v18 }
 0x1c0   : > { %v1172_v47 = vpop.f32.mrf.mxu1 }
 0x1c1   : > { %v1447_v7 = vpack.c.bf16 %v1388_v0, %v1387_v52  ;;  %v1173_v31 = vadd.f32 %v1172_v47, %v4748_v18  ;;  %v1393_v20 = vmax.f32 %v1181_v32, 0.0 }
 0x1c2   : > { %v3733_v42 = vpop.f32.mrf.mxu1 }
 0x1c3   : > { %v1184_v54 = vadd.f32 %v3733_v42, %v4748_v18  ;;  %3806 = vmatprep.mubr.bf16.mxu0 %v1447_v7  ;;  %v1391_v13 = vmax.f32 %v1173_v31, 0.0 }
 0x1c4   : > { %v1175_v62 = vpop.f32.mrf.mxu1  ;;  %3807 = vmatmul.mubr.bf16.gmra.mxu0 %v1448_v6 }
 0x1c5   : > { %v1176_v17 = vadd.f32 %v1175_v62, %v4748_v18  ;;  %v1394_v12 = vmax.f32 %v1184_v54, 0.0 }
 0x1c6   : > { %v3736_v41 = vpop.f32.mrf.mxu1 }
 0x1c7   : > { %v1392_v3 = vmax.f32 %v1176_v17, 0.0  ;;  %v1450_v21 = vpack.c.bf16 %v1394_v12, %v1393_v20  ;;  %v1197_v38 = vadd.f32 %v3736_v41, %v4748_v18 }
 0x1c8   : > { %v1188_v37 = vpop.f32.mrf.mxu1 }
 0x1c9   : > { %v1449_v0 = vpack.c.bf16 %v1392_v3, %v1391_v13  ;;  %v1189_v44 = vadd.f32 %v1188_v37, %v4748_v18  ;;  %v1397_v32 = vmax.f32 %v1197_v38, 0.0 }
 0x1ca   : > { %v3737_v52 = vpop.f32.mrf.mxu1 }
 0x1cb   : > { %v1200_v47 = vadd.f32 %v3737_v52, %v4748_v18  ;;  %3810 = vmatprep.mubr.bf16.mxu0 %v1449_v0  ;;  %v1395_v31 = vmax.f32 %v1189_v44, 0.0 }
 0x1cc   : > { %v1191_v7 = vpop.f32.mrf.mxu1  ;;  %3811 = vmatmul.mubr.bf16.gmra.mxu0 %v1450_v21 }
 0x1cd   : > { %v1192_v6 = vadd.f32 %v1191_v7, %v4748_v18  ;;  %v1398_v42 = vmax.f32 %v1200_v47, 0.0 }
 0x1ce   : > { %v3740_v54 = vpop.f32.mrf.mxu1 }
 0x1cf   : > { %v1396_v62 = vmax.f32 %v1192_v6, 0.0  ;;  %v1452_v12 = vpack.c.bf16 %v1398_v42, %v1397_v32  ;;  %v1213_v41 = vadd.f32 %v3740_v54, %v4748_v18 }
 0x1d0   : > { %v1204_v17 = vpop.f32.mrf.mxu1 }
 0x1d1   : > { %v1451_v13 = vpack.c.bf16 %v1396_v62, %v1395_v31  ;;  %v1205_v20 = vadd.f32 %v1204_v17, %v4748_v18  ;;  %v1401_v38 = vmax.f32 %v1213_v41, 0.0 }
 0x1d2   : > { %v3741_v3 = vpop.f32.mrf.mxu1 }
 0x1d3   : > { %v1216_v37 = vadd.f32 %v3741_v3, %v4748_v18  ;;  %3814 = vmatprep.mubr.bf16.mxu0 %v1451_v13  ;;  %v1399_v44 = vmax.f32 %v1205_v20, 0.0 }
 0x1d4   : > { %v1207_v0 = vpop.f32.mrf.mxu1  ;;  %3815 = vmatmul.mubr.bf16.gmra.mxu0 %v1452_v12 }
 0x1d5   : > { %v1208_v21 = vadd.f32 %v1207_v0, %v4748_v18  ;;  %v1402_v52 = vmax.f32 %v1216_v37, 0.0 }
 0x1d6   : > { %v3744_v47 = vpop.f32.mrf.mxu1 }
 0x1d7   : > { %v1400_v7 = vmax.f32 %v1208_v21, 0.0  ;;  %v1454_v42 = vpack.c.bf16 %v1402_v52, %v1401_v38  ;;  %v1229_v54 = vadd.f32 %v3744_v47, %v4748_v18 }
 0x1d8   : > { %v1220_v6 = vpop.f32.mrf.mxu1 }
 0x1d9   : > { %v1453_v31 = vpack.c.bf16 %v1400_v7, %v1399_v44  ;;  %v1221_v32 = vadd.f32 %v1220_v6, %v4748_v18  ;;  %v1405_v41 = vmax.f32 %v1229_v54, 0.0 }
 0x1da   : > { %v3745_v62 = vpop.f32.mrf.mxu1 }
 0x1db   : > { %v1232_v17 = vadd.f32 %v3745_v62, %v4748_v18  ;;  %3818 = vmatprep.mubr.bf16.mxu0 %v1453_v31  ;;  %v1403_v20 = vmax.f32 %v1221_v32, 0.0 }
 0x1dc   : > { %v1223_v13 = vpop.f32.mrf.mxu1  ;;  %3819 = vmatmul.mubr.bf16.gmra.mxu0 %v1454_v42 }
 0x1dd   : > { %v1224_v12 = vadd.f32 %v1223_v13, %v4748_v18  ;;  %v1406_v3 = vmax.f32 %v1232_v17, 0.0 }
 0x1de   : > { %v3748_v37 = vpop.f32.mrf.mxu1 }
 0x1df   : > { %v1404_v0 = vmax.f32 %v1224_v12, 0.0  ;;  %v1456_v52 = vpack.c.bf16 %v1406_v3, %v1405_v41  ;;  %v1245_v47 = vadd.f32 %v3748_v37, %v4748_v18 }
 0x1e0   : > { %v1236_v21 = vpop.f32.mrf.mxu1 }
 0x1e1   : > { %v1455_v44 = vpack.c.bf16 %v1404_v0, %v1403_v20  ;;  %v1237_v38 = vadd.f32 %v1236_v21, %v4748_v18  ;;  %v1409_v54 = vmax.f32 %v1245_v47, 0.0 }
 0x1e2   : > { %v3749_v7 = vpop.f32.mrf.mxu1 }
 0x1e3   : > { %v1248_v6 = vadd.f32 %v3749_v7, %v4748_v18  ;;  %3822 = vmatprep.mubr.bf16.mxu0 %v1455_v44  ;;  %v1407_v32 = vmax.f32 %v1237_v38, 0.0 }
 0x1e4   : > { %v1239_v31 = vpop.f32.mrf.mxu1  ;;  %3823 = vmatmul.mubr.bf16.gmra.mxu0 %v1456_v52 }
 0x1e5   : > { %v1240_v42 = vadd.f32 %v1239_v31, %v4748_v18  ;;  %v1410_v62 = vmax.f32 %v1248_v6, 0.0 }
 0x1e6   : > { %v3752_v17 = vpop.f32.mrf.mxu1 }
 0x1e7   : > { %v1408_v13 = vmax.f32 %v1240_v42, 0.0  ;;  %v1458_v3 = vpack.c.bf16 %v1410_v62, %v1409_v54  ;;  %v1261_v37 = vadd.f32 %v3752_v17, %v4748_v18 }
 0x1e8   : > { %v1252_v12 = vpop.f32.mrf.mxu1 }
 0x1e9   : > { %v1457_v20 = vpack.c.bf16 %v1408_v13, %v1407_v32  ;;  %v1253_v41 = vadd.f32 %v1252_v12, %v4748_v18  ;;  %v1413_v47 = vmax.f32 %v1261_v37, 0.0 }
 0x1ea   : > { %v3753_v0 = vpop.f32.mrf.mxu1 }
 0x1eb   : > { %v1264_v21 = vadd.f32 %v3753_v0, %v4748_v18  ;;  %3826 = vmatprep.mubr.bf16.mxu0 %v1457_v20  ;;  %v1411_v38 = vmax.f32 %v1253_v41, 0.0 }
 0x1ec   : > { %v1255_v44 = vpop.f32.mrf.mxu1  ;;  %3827 = vmatmul.mubr.bf16.gmra.mxu0 %v1458_v3 }
 0x1ed   : > { %v1256_v52 = vadd.f32 %v1255_v44, %v4748_v18  ;;  %v1414_v7 = vmax.f32 %v1264_v21, 0.0 }
 0x1ee   : > { %v3756_v6 = vpop.f32.mrf.mxu1 }
 0x1ef   : > { %v1412_v31 = vmax.f32 %v1256_v52, 0.0  ;;  %v1460_v62 = vpack.c.bf16 %v1414_v7, %v1413_v47  ;;  %v1277_v17 = vadd.f32 %v3756_v6, %v4748_v18 }
 0x1f0   : > { %v1268_v42 = vpop.f32.mrf.mxu1 }
 0x1f1   : > { %v1459_v32 = vpack.c.bf16 %v1412_v31, %v1411_v38  ;;  %v1269_v54 = vadd.f32 %v1268_v42, %v4748_v18  ;;  %v1417_v37 = vmax.f32 %v1277_v17, 0.0 }
 0x1f2   : > { %v3757_v13 = vpop.f32.mrf.mxu1 }
 0x1f3   : > { %v1280_v12 = vadd.f32 %v3757_v13, %v4748_v18  ;;  %3830 = vmatprep.mubr.bf16.mxu0 %v1459_v32  ;;  %v1415_v41 = vmax.f32 %v1269_v54, 0.0 }
 0x1f4   : > { %v1271_v20 = vpop.f32.mrf.mxu1  ;;  %3831 = vmatmul.mubr.bf16.gmra.mxu0 %v1460_v62 }
 0x1f5   : > { %v1272_v3 = vadd.f32 %v1271_v20, %v4748_v18  ;;  %v1418_v0 = vmax.f32 %v1280_v12, 0.0 }
 0x1f6   : > { %v3760_v21 = vpop.f32.mrf.mxu1 }
 0x1f7   : > { %v1416_v44 = vmax.f32 %v1272_v3, 0.0  ;;  %v1462_v7 = vpack.c.bf16 %v1418_v0, %v1417_v37  ;;  %v1293_v6 = vadd.f32 %v3760_v21, %v4748_v18 }
 0x1f8   : > { %v1284_v52 = vpop.f32.mrf.mxu1 }
 0x1f9   : > { %v1461_v38 = vpack.c.bf16 %v1416_v44, %v1415_v41  ;;  %v1285_v47 = vadd.f32 %v1284_v52, %v4748_v18  ;;  %v1421_v17 = vmax.f32 %v1293_v6, 0.0 }
 0x1fa   : > { %v3761_v31 = vpop.f32.mrf.mxu1 }
 0x1fb   : > { %v1296_v42 = vadd.f32 %v3761_v31, %v4748_v18  ;;  %3834 = vmatprep.mubr.bf16.mxu0 %v1461_v38  ;;  %v1419_v54 = vmax.f32 %v1285_v47, 0.0 }
 0x1fc   : > { %v1287_v32 = vpop.f32.mrf.mxu1  ;;  %3835 = vmatmul.mubr.bf16.gmra.mxu0 %v1462_v7 }
 0x1fd   : > { %v1288_v62 = vadd.f32 %v1287_v32, %v4748_v18  ;;  %v1422_v13 = vmax.f32 %v1296_v42, 0.0 }
 0x1fe   : > { %v3764_v12 = vpop.f32.mrf.mxu1 }
 0x1ff   : > { %v1420_v20 = vmax.f32 %v1288_v62, 0.0  ;;  %v1464_v0 = vpack.c.bf16 %v1422_v13, %v1421_v17  ;;  %v1309_v21 = vadd.f32 %v3764_v12, %v4748_v18 }
 0x200   : > { %v1300_v3 = vpop.f32.mrf.mxu1 }
 0x201   : > { %v1463_v41 = vpack.c.bf16 %v1420_v20, %v1419_v54  ;;  %v1301_v37 = vadd.f32 %v1300_v3, %v4748_v18  ;;  %v1425_v6 = vmax.f32 %v1309_v21, 0.0 }
 0x202   : > { %v3765_v44 = vpop.f32.mrf.mxu1 }
 0x203   : > { %v1312_v52 = vadd.f32 %v3765_v44, %v4748_v18  ;;  %3838 = vmatprep.mubr.bf16.mxu0 %v1463_v41  ;;  %v1423_v47 = vmax.f32 %v1301_v37, 0.0 }
 0x204   : > { %v1303_v38 = vpop.f32.mrf.mxu1  ;;  %3839 = vmatmul.mubr.bf16.gmra.mxu0 %v1464_v0 }
 0x205   : > { %v1304_v7 = vadd.f32 %v1303_v38, %v4748_v18  ;;  %v1426_v31 = vmax.f32 %v1312_v52, 0.0 }
 0x206   : > { %v3768_v42 = vpop.f32.mrf.mxu1 }
 0x207   : > { %v1424_v32 = vmax.f32 %v1304_v7, 0.0  ;;  %v1466_v13 = vpack.c.bf16 %v1426_v31, %v1425_v6  ;;  %v1325_v12 = vadd.f32 %v3768_v42, %v4748_v18 }
 0x208   : > { %v1316_v62 = vpop.f32.mrf.mxu1 }
 0x209   : > { %v1465_v54 = vpack.c.bf16 %v1424_v32, %v1423_v47  ;;  %v1317_v17 = vadd.f32 %v1316_v62, %v4748_v18  ;;  %v1429_v21 = vmax.f32 %v1325_v12, 0.0 }
 0x20a   : > { %v3769_v20 = vpop.f32.mrf.mxu1 }
 0x20b   : > { %v1328_v3 = vadd.f32 %v3769_v20, %v4748_v18  ;;  %3842 = vmatprep.mubr.bf16.mxu0 %v1465_v54  ;;  %v1427_v37 = vmax.f32 %v1317_v17, 0.0 }
 0x20c   : > { %v1319_v41 = vpop.f32.mrf.mxu1  ;;  %3843 = vmatmul.mubr.bf16.gmra.mxu0 %v1466_v13 }
 0x20d   : > { %v1320_v0 = vadd.f32 %v1319_v41, %v4748_v18  ;;  %v1430_v44 = vmax.f32 %v1328_v3, 0.0 }
 0x20e   : > { %v3772_v52 = vpop.f32.mrf.mxu1 }
 0x20f   : > { %v1428_v38 = vmax.f32 %v1320_v0, 0.0  ;;  %v1468_v31 = vpack.c.bf16 %v1430_v44, %v1429_v21  ;;  %v1341_v42 = vadd.f32 %v3772_v52, %v4748_v18 }
 0x210   : > { %v1332_v7 = vpop.f32.mrf.mxu1 }
 0x211   : > { %v1467_v47 = vpack.c.bf16 %v1428_v38, %v1427_v37  ;;  %v1333_v6 = vadd.f32 %v1332_v7, %v4748_v18  ;;  %v1433_v12 = vmax.f32 %v1341_v42, 0.0 }
 0x212   : > { %v3773_v32 = vpop.f32.mrf.mxu1 }
 0x213   : > { %v1344_v62 = vadd.f32 %v3773_v32, %v4748_v18  ;;  %3846 = vmatprep.mubr.bf16.mxu0 %v1467_v47  ;;  %v1431_v17 = vmax.f32 %v1333_v6, 0.0 }
 0x214   : > { %v1335_v54 = vpop.f32.mrf.mxu1  ;;  %3847 = vmatmul.mubr.bf16.gmra.mxu0 %v1468_v31 }
 0x215   : > { %v1336_v13 = vadd.f32 %v1335_v54, %v4748_v18  ;;  %v1434_v20 = vmax.f32 %v1344_v62, 0.0 }
 0x216   : > { %v3776_v3 = vpop.f32.mrf.mxu1 }
 0x217   : > { %v1432_v41 = vmax.f32 %v1336_v13, 0.0  ;;  %v1470_v44 = vpack.c.bf16 %v1434_v20, %v1433_v12  ;;  %v1357_v52 = vadd.f32 %v3776_v3, %v4748_v18 }
 0x218   : > { %v1348_v0 = vpop.f32.mrf.mxu1 }
 0x219   : > { %v1469_v37 = vpack.c.bf16 %v1432_v41, %v1431_v17  ;;  %v1349_v21 = vadd.f32 %v1348_v0, %v4748_v18  ;;  %v1437_v42 = vmax.f32 %v1357_v52, 0.0 }
 0x21a   : > { %v3777_v38 = vpop.f32.mrf.mxu1 }
 0x21b   : > { %v1360_v7 = vadd.f32 %v3777_v38, %v4748_v18  ;;  %3850 = vmatprep.mubr.bf16.mxu0 %v1469_v37  ;;  %v1435_v6 = vmax.f32 %v1349_v21, 0.0 }
 0x21c   : > { %v1351_v47 = vpop.f32.mrf.mxu1  ;;  %3851 = vmatmul.mubr.bf16.gmra.mxu0 %v1470_v44 }
 0x21d   : > { %v1352_v31 = vadd.f32 %v1351_v47, %v4748_v18  ;;  %v1438_v32 = vmax.f32 %v1360_v7, 0.0 }
 0x21e   : > { %v3780_v62 = vpop.f32.mrf.mxu1 }
 0x21f   : > { %v1436_v54 = vmax.f32 %v1352_v31, 0.0  ;;  %v1472_v20 = vpack.c.bf16 %v1438_v32, %v1437_v42  ;;  %v1373_v3 = vadd.f32 %v3780_v62, %v4748_v18  ;;  %v4093_v32 = vld [vmem:[%s5695_s5 + $0x78] sm:$0xff]   ;;  %v4094_v62 = vld [vmem:[%s5695_s5 + $0x70] sm:$0xff]  }
 0x220   : > { %v1364_v13 = vpop.f32.mrf.mxu1  ;;  %3942 = vmatprep.subr.bf16.mxu0 %v4093_v32 }
 0x221   : > { %v1471_v17 = vpack.c.bf16 %v1436_v54, %v1435_v6  ;;  %v1365_v12 = vadd.f32 %v1364_v13, %v4748_v18  ;;  %v1441_v47 = vmax.f32 %v1373_v3, 0.0  ;;  %3943 = vmatpush3.bf16.msra.mxu0 %v4093_v32  ;;  %v4096_v32 = vld [vmem:[%s5695_s5 + $0x60] sm:$0xff]  }
 0x222   : > { %v3781_v41 = vpop.f32.mrf.mxu1  ;;  %3944 = vmatprep.subr.bf16.mxu0 %v4094_v62 }
 0x223   : > { %v1376_v0 = vadd.f32 %v3781_v41, %v4748_v18  ;;  %3854 = vmatprep.mubr.bf16.mxu0 %v1471_v17  ;;  %v1439_v7 = vmax.f32 %v1365_v12, 0.0 }
 0x224   : > { %v1367_v37 = vpop.f32.mrf.mxu1  ;;  %3855 = vmatmul.mubr.bf16.gmra.mxu0 %v1472_v20  ;;  %v4095_v20 = vld [vmem:[%s5695_s5 + $0x68] sm:$0xff]  }
 0x225   : > { %v1368_v44 = vadd.f32 %v1367_v37, %v4748_v18  ;;  %v1442_v38 = vmax.f32 %v1376_v0, 0.0  ;;  %3945 = vmatpush3.bf16.msra.mxu0 %v4094_v62  ;;  %v1491_v18 = vld [vmem:[%s5696_s6] sm:$0x1]  ;;  %v5892_v37 = vmax.f32 %v4268_v55, 0.0  ;;  %v4097_v55 = vld [vmem:[%s5695_s5 + $0x58] sm:$0xff]   ;;  %v5895_v62 = vmax.f32 %v4283_v61, 0.0 }
 0x226   : > { %v1492_v6 = vunpack.c.l.bf16 %v1491_v18  ;;  %3946 = vmatprep.subr.bf16.mxu0 %v4095_v20  ;;  %v4098_v61 = vld [vmem:[%s5695_s5 + $0x50] sm:$0xff]  }
 0x227   : > { %v1440_v21 = vmax.f32 %v1368_v44, 0.0  ;;  %v1474_v31 = vpack.c.bf16 %v1442_v38, %v1441_v47  ;;  %v5893_v38 = vmax.f32 %v4271_v56, 0.0  ;;  %v5894_v47 = vmax.f32 %v4274_v57, 0.0 }
 0x228   : > { %v4839_v54 = vrot.slane %v1492_v6, %v4262_v50 }
 0x229   : > { %v1473_v52 = vpack.c.bf16 %v1440_v21, %v1439_v7  ;;  %3947 = vmatpush3.bf16.msra.mxu0 %v4095_v20 }
 0x22a   : > { %3948 = vmatprep.subr.bf16.mxu0 %v4096_v32 }
 0x22b   : > { %3858 = vmatprep.mubr.bf16.mxu0 %v1473_v52 }
 0x22c   : > { %3859 = vmatmul.mubr.bf16.gmra.mxu0 %v1474_v31 }
 0x22d   : > { %3949 = vmatpush3.bf16.msra.mxu0 %v4096_v32 }
 0x22e   : > { %3950 = vmatprep.subr.bf16.mxu0 %v4097_v55 }
 0x231   : > { %3951 = vmatpush3.bf16.msra.mxu0 %v4097_v55 }
 0x232   : > { %3952 = vmatprep.subr.bf16.mxu0 %v4098_v61 }
 0x235   : > { %3953 = vmatpush3.bf16.msra.mxu0 %v4098_v61 }
 0x274   : > { %v3800_v42 = vpop.f32.mrf.mxu0 }
 0x275   : > { %v1588_v41 = vadd.f32 %v3800_v42, %v4839_v54 }
 0x276   : > { %v1579_v13 = vpop.f32.mrf.mxu0 }
 0x277   : > { %v1580_v17 = vadd.f32 %v1579_v13, %v4839_v54  ;;  %v4858_v52 = vadd.f32 %v1588_v41, %v5894_v47  ;;  %v5897_v47 = vmax.f32 %v4304_v9, 0.0 }
 0x278   : > { %v3801_v12 = vpop.f32.mrf.mxu0 }
 0x279   : > { %v1591_v0 = vadd.f32 %v3801_v12, %v4839_v54  ;;  %v4849_v44 = vadd.f32 %v1580_v17, %v5892_v37  ;;  %v5786_v17 = vmax.f32 %v4858_v52, 0.0 }
 0x27a   : > { %v1582_v3 = vpop.f32.mrf.mxu0 }
 0x27b   : > { %v4853_v7 = vadd.f32 %v1591_v0, %v5893_v38  ;;  %v1583_v21 = vadd.f32 %v1582_v3, %v4839_v54  ;;  %v5818_v57 = vmax.f32 %v4849_v44, 0.0  ;;  %v5896_v38 = vmax.f32 %v4301_v8, 0.0  ;;  %v4099_v8 = vld [vmem:[%s5695_s5 + $0x48] sm:$0xff]  }
 0x27c   : > { %v3804_v31 = vpop.f32.mrf.mxu0  ;;  %3954 = vmatprep.subr.bf16.mxu0 %v4099_v8 }
 0x27d   : > { %v4868_v56 = vadd.f32 %v1583_v21, %v5895_v62  ;;  %v5815_v18 = vmax.f32 %v4853_v7, 0.0  ;;  %v1604_v20 = vadd.f32 %v3804_v31, %v4839_v54  ;;  %v5898_v62 = vmax.f32 %v4307_v10, 0.0  ;;  %3955 = vmatpush3.bf16.msra.mxu0 %v4099_v8 }
 0x27e   : > { %v1595_v6 = vpop.f32.mrf.mxu0 }
 0x27f   : > { %v5783_v42 = vmax.f32 %v4868_v56, 0.0  ;;  %v1596_v13 = vadd.f32 %v1595_v6, %v4839_v54  ;;  %v1963_v3 = vpack.c.bf16 %v5815_v18, %v5786_v17  ;;  %v4899_v6 = vadd.f32 %v1604_v20, %v5898_v62  ;;  %v5933_v18 = vld [vmem:[#allocation4_spill] sm:$0xff] }
 0x280   : > { %v3805_v41 = vpop.f32.mrf.mxu0 }
 0x281   : > { %v1607_v12 = vadd.f32 %v3805_v41, %v4839_v54  ;;  %v1962_v0 = vpack.c.bf16 %v5783_v42, %v5818_v57  ;;  %v4890_v21 = vadd.f32 %v1596_v13, %v5896_v38  ;;  %v5899_v13 = vmax.f32 %v4315_v14, 0.0  ;;  %v4100_v14 = vld [vmem:[%s5695_s5 + $0x40] sm:$0xff]  }
 0x282   : > { %v1598_v37 = vpop.f32.mrf.mxu0  ;;  %3956 = vmatprep.subr.bf16.mxu0 %v4100_v14  ;;  %v5941_v57 = vmax.f32 %v4600_v60, 0.0 }
 0x283   : > { %v4894_v31 = vadd.f32 %v1607_v12, %v5897_v47  ;;  %v1599_v32 = vadd.f32 %v1598_v37, %v4839_v54  ;;  %3878 = vmatprep.mubr.bf16.mxu1 %v1962_v0  ;;  %v5785_v55 = vmax.f32 %v4890_v21, 0.0  ;;  %v5810_v0 = vmax.f32 %v4899_v6, 0.0  ;;  %3957 = vmatpush3.bf16.msra.mxu0 %v4100_v14 }
 0x284   : > { %v3808_v41 = vpop.f32.mrf.mxu0  ;;  %3879 = vmatmul.mubr.bf16.vlgmr.msra.gmra.mxu1 %v1963_v3  ;;  %v5904_v14 = vmax.f32 %v4377_v48, 0.0 }
 0x285   : > { %v4906_v9 = vadd.f32 %v1599_v32, %v5899_v13  ;;  %v5787_v12 = vmax.f32 %v4894_v31, 0.0  ;;  %v1620_v3 = vadd.f32 %v3808_v41, %v4839_v54  ;;  %v5900_v41 = vmax.f32 %v4339_v28, 0.0 }
 0x286   : > { %v1611_v37 = vpop.f32.mrf.mxu0 }
 0x287   : > { %v5784_v10 = vmax.f32 %v4906_v9, 0.0  ;;  %v1612_v20 = vadd.f32 %v1611_v37, %v4839_v54  ;;  %v1965_v61 = vpack.c.bf16 %v5787_v12, %v5810_v0  ;;  %v5901_v37 = vmax.f32 %v4342_v29, 0.0  ;;  %v5928_v0 = vld [vmem:[#allocation2_spill] sm:$0xff] }
 0x288   : > { %v3809_v38 = vpop.f32.mrf.mxu0  ;;  %v5903_v12 = vmax.f32 %v4353_v34, 0.0 }
 0x289   : > { %v1623_v47 = vadd.f32 %v3809_v38, %v4839_v54  ;;  %v1964_v32 = vpack.c.bf16 %v5784_v10, %v5785_v55  ;;  %v4928_v13 = vadd.f32 %v1612_v20, %v5900_v41  ;;  %v5902_v10 = vmax.f32 %v4345_v30, 0.0 }
 0x28a   : > { %v1614_v62 = vpop.f32.mrf.mxu0 }
 0x28b   : > { %v4932_v42 = vadd.f32 %v1623_v47, %v5901_v37  ;;  %v1615_v38 = vadd.f32 %v1614_v62, %v4839_v54  ;;  %3882 = vmatprep.mubr.bf16.mxu1 %v1964_v32  ;;  %v4937_v55 = vadd.f32 %v1620_v3, %v5902_v10  ;;  %v5789_v47 = vmax.f32 %v4928_v13, 0.0 }
 0x28c   : > { %v3812_v17 = vpop.f32.mrf.mxu0  ;;  %3883 = vmatmul.mubr.bf16.gmra.mxu1 %v1965_v61 }
 0x28d   : > { %v4941_v28 = vadd.f32 %v1615_v38, %v5903_v12  ;;  %v5790_v20 = vmax.f32 %v4932_v42, 0.0  ;;  %v5793_v30 = vmax.f32 %v4937_v55, 0.0  ;;  %v1636_v10 = vadd.f32 %v3812_v17, %v4839_v54 }
 0x28e   : > { %v1627_v29 = vpop.f32.mrf.mxu0  ;;  %v5905_v17 = vmax.f32 %v4380_v49, 0.0 }
 0x28f   : > { %v5788_v62 = vmax.f32 %v4941_v28, 0.0  ;;  %v1628_v8 = vadd.f32 %v1627_v29, %v4839_v54  ;;  %v1967_v61 = vpack.c.bf16 %v5790_v20, %v5793_v30  ;;  %v5906_v29 = vmax.f32 %v4383_v51, 0.0 }
 0x290   : > { %v3813_v3 = vpop.f32.mrf.mxu0  ;;  %v5911_v30 = vmax.f32 %v4420_v33, 0.0 }
 0x291   : > { %v1639_v32 = vadd.f32 %v3813_v3, %v4839_v54  ;;  %v1966_v34 = vpack.c.bf16 %v5788_v62, %v5789_v47  ;;  %v4960_v41 = vadd.f32 %v1628_v8, %v5904_v14  ;;  %v4969_v3 = vadd.f32 %v1636_v10, %v5906_v29 }
 0x292   : > { %v1630_v12 = vpop.f32.mrf.mxu0  ;;  %v5907_v47 = vmax.f32 %v4388_v58, 0.0 }
 0x293   : > { %v4964_v37 = vadd.f32 %v1639_v32, %v5905_v17  ;;  %v1631_v38 = vadd.f32 %v1630_v12, %v4839_v54  ;;  %3886 = vmatprep.mubr.bf16.mxu1 %v1966_v34  ;;  %v5792_v49 = vmax.f32 %v4960_v41, 0.0  ;;  %v5803_v34 = vmax.f32 %v4969_v3, 0.0 }
 0x294   : > { %v3816_v62 = vpop.f32.mrf.mxu0  ;;  %3887 = vmatmul.mubr.bf16.gmra.mxu1 %v1967_v61  ;;  %v5908_v17 = vmax.f32 %v4409_v23, 0.0 }
 0x295   : > { %v4973_v20 = vadd.f32 %v1631_v38, %v5907_v47  ;;  %v5794_v48 = vmax.f32 %v4964_v37, 0.0  ;;  %v1652_v51 = vadd.f32 %v3816_v62, %v4839_v54  ;;  %v5909_v62 = vmax.f32 %v4412_v24, 0.0 }
 0x296   : > { %v1643_v8 = vpop.f32.mrf.mxu0 }
 0x297   : > { %v5791_v32 = vmax.f32 %v4973_v20, 0.0  ;;  %v1644_v12 = vadd.f32 %v1643_v8, %v4839_v54  ;;  %v1969_v14 = vpack.c.bf16 %v5794_v48, %v5803_v34  ;;  %v5923_v34 = vmax.f32 %v4509_v19, 0.0 }
 0x298   : > { %v3817_v10 = vpop.f32.mrf.mxu0 }
 0x299   : > { %v1655_v61 = vadd.f32 %v3817_v10, %v4839_v54  ;;  %v1968_v58 = vpack.c.bf16 %v5791_v32, %v5792_v49  ;;  %v4992_v38 = vadd.f32 %v1644_v12, %v5908_v17  ;;  %v5910_v10 = vmax.f32 %v4415_v25, 0.0 }
 0x29a   : > { %v1646_v47 = vpop.f32.mrf.mxu0 }
 0x29b   : > { %v4996_v29 = vadd.f32 %v1655_v61, %v5909_v62  ;;  %v1647_v8 = vadd.f32 %v1646_v47, %v4839_v54  ;;  %3890 = vmatprep.mubr.bf16.mxu1 %v1968_v58  ;;  %v5001_v32 = vadd.f32 %v1652_v51, %v5910_v10  ;;  %v5796_v24 = vmax.f32 %v4992_v38, 0.0 }
 0x29c   : > { %v3820_v49 = vpop.f32.mrf.mxu0  ;;  %3891 = vmatmul.mubr.bf16.gmra.mxu1 %v1969_v14  ;;  %v5912_v62 = vmax.f32 %v4439_v16, 0.0 }
 0x29d   : > { %v5005_v48 = vadd.f32 %v1647_v8, %v5911_v30  ;;  %v5797_v23 = vmax.f32 %v4996_v29, 0.0  ;;  %v5798_v58 = vmax.f32 %v5001_v32, 0.0  ;;  %v1668_v25 = vadd.f32 %v3820_v49, %v4839_v54 }
 0x29e   : > { %v1659_v12 = vpop.f32.mrf.mxu0  ;;  %v5913_v49 = vmax.f32 %v4442_v26, 0.0 }
 0x29f   : > { %v5795_v61 = vmax.f32 %v5005_v48, 0.0  ;;  %v1660_v47 = vadd.f32 %v1659_v12, %v4839_v54  ;;  %v1971_v30 = vpack.c.bf16 %v5797_v23, %v5798_v58  ;;  %v5915_v23 = vmax.f32 %v4448_v45, 0.0 }
 0x2a0   : > { %v3821_v51 = vpop.f32.mrf.mxu0 }
 0x2a1   : > { %v1671_v14 = vadd.f32 %v3821_v51, %v4839_v54  ;;  %v1970_v33 = vpack.c.bf16 %v5795_v61, %v5796_v24  ;;  %v5024_v8 = vadd.f32 %v1660_v47, %v5912_v62  ;;  %v5914_v51 = vmax.f32 %v4445_v4, 0.0 }
 0x2a2   : > { %v1662_v17 = vpop.f32.mrf.mxu0 }
 0x2a3   : > { %v5028_v10 = vadd.f32 %v1671_v14, %v5913_v49  ;;  %v1663_v12 = vadd.f32 %v1662_v17, %v4839_v54  ;;  %3894 = vmatprep.mubr.bf16.mxu1 %v1970_v33  ;;  %v5033_v61 = vadd.f32 %v1668_v25, %v5914_v51  ;;  %v5800_v26 = vmax.f32 %v5024_v8, 0.0 }
 0x2a4   : > { %v3824_v24 = vpop.f32.mrf.mxu0  ;;  %3895 = vmatmul.mubr.bf16.gmra.mxu1 %v1971_v30  ;;  %v5916_v49 = vmax.f32 %v4467_v39, 0.0 }
 0x2a5   : > { %v5037_v58 = vadd.f32 %v1663_v12, %v5915_v23  ;;  %v5801_v16 = vmax.f32 %v5028_v10, 0.0  ;;  %v5802_v33 = vmax.f32 %v5033_v61, 0.0  ;;  %v1684_v4 = vadd.f32 %v3824_v24, %v4839_v54 }
 0x2a6   : > { %v1675_v47 = vpop.f32.mrf.mxu0  ;;  %v5917_v24 = vmax.f32 %v4470_v40, 0.0 }
 0x2a7   : > { %v5799_v14 = vmax.f32 %v5037_v58, 0.0  ;;  %v1676_v17 = vadd.f32 %v1675_v47, %v4839_v54  ;;  %v1973_v23 = vpack.c.bf16 %v5801_v16, %v5802_v33  ;;  %v5919_v16 = vmax.f32 %v4476_v59, 0.0 }
 0x2a8   : > { %v3825_v25 = vpop.f32.mrf.mxu0 }
 0x2a9   : > { %v1687_v30 = vadd.f32 %v3825_v25, %v4839_v54  ;;  %v1972_v45 = vpack.c.bf16 %v5799_v14, %v5800_v26  ;;  %v5056_v12 = vadd.f32 %v1676_v17, %v5916_v49  ;;  %v5918_v25 = vmax.f32 %v4473_v35, 0.0 }
 0x2aa   : > { %v1678_v62 = vpop.f32.mrf.mxu0 }
 0x2ab   : > { %v5060_v51 = vadd.f32 %v1687_v30, %v5917_v24  ;;  %v1679_v47 = vadd.f32 %v1678_v62, %v4839_v54  ;;  %3898 = vmatprep.mubr.bf16.mxu1 %v1972_v45  ;;  %v5065_v14 = vadd.f32 %v1684_v4, %v5918_v25  ;;  %v5805_v40 = vmax.f32 %v5056_v12, 0.0  ;;  %v5920_v24 = vld [vmem:[#allocation3_spill] sm:$0xff] }
 0x2ac   : > { %v3828_v26 = vpop.f32.mrf.mxu0  ;;  %3899 = vmatmul.mubr.bf16.gmra.mxu1 %v1973_v23 }
 0x2ad   : > { %v5069_v33 = vadd.f32 %v1679_v47, %v5919_v16  ;;  %v5806_v39 = vmax.f32 %v5060_v51, 0.0  ;;  %v5807_v45 = vmax.f32 %v5065_v14, 0.0  ;;  %v1700_v35 = vadd.f32 %v3828_v26, %v4839_v54 }
 0x2ae   : > { %v1691_v17 = vpop.f32.mrf.mxu0  ;;  %v5921_v47 = vmax.f32 %v5920_v24, 0.0  ;;  %v5922_v26 = vmax.f32 %v4506_v1, 0.0 }
 0x2af   : > { %v5804_v30 = vmax.f32 %v5069_v33, 0.0  ;;  %v1692_v62 = vadd.f32 %v1691_v17, %v4839_v54  ;;  %v1975_v16 = vpack.c.bf16 %v5806_v39, %v5807_v45  ;;  %v5924_v39 = vmax.f32 %v4513_v2, 0.0 }
 0x2b0   : > { %v3829_v4 = vpop.f32.mrf.mxu0 }
 0x2b1   : > { %v1703_v23 = vadd.f32 %v3829_v4, %v4839_v54  ;;  %v1974_v59 = vpack.c.bf16 %v5804_v30, %v5805_v40  ;;  %v5088_v25 = vadd.f32 %v1692_v62, %v5921_v47  ;;  %v5097_v30 = vadd.f32 %v1700_v35, %v5923_v34 }
 0x2b2   : > { %v1694_v49 = vpop.f32.mrf.mxu0  ;;  %v5925_v47 = vmax.f32 %v4486_v36, 0.0 }
 0x2b3   : > { %v5092_v17 = vadd.f32 %v1703_v23, %v5922_v26  ;;  %v1695_v4 = vadd.f32 %v1694_v49, %v4839_v54  ;;  %3902 = vmatprep.mubr.bf16.mxu1 %v1974_v59  ;;  %v5809_v1 = vmax.f32 %v5088_v25, 0.0  ;;  %v5812_v59 = vmax.f32 %v5097_v30, 0.0 }
 0x2b4   : > { %v3832_v40 = vpop.f32.mrf.mxu0  ;;  %3903 = vmatmul.mubr.bf16.gmra.mxu1 %v1975_v16 }
 0x2b5   : > { %v5101_v45 = vadd.f32 %v1695_v4, %v5924_v39  ;;  %v5811_v62 = vmax.f32 %v5092_v17, 0.0  ;;  %v1716_v19 = vadd.f32 %v3832_v40, %v4839_v54  ;;  %v5926_v40 = vmax.f32 %v4546_v15, 0.0 }
 0x2b6   : > { %v1707_v24 = vpop.f32.mrf.mxu0 }
 0x2b7   : > { %v5808_v23 = vmax.f32 %v5101_v45, 0.0  ;;  %v1708_v49 = vadd.f32 %v1707_v24, %v4839_v54  ;;  %v1977_v39 = vpack.c.bf16 %v5811_v62, %v5812_v59  ;;  %v5929_v62 = vmax.f32 %v5928_v0, 0.0 }
 0x2b8   : > { %v3833_v34 = vpop.f32.mrf.mxu0 }
 0x2b9   : > { %v1719_v35 = vadd.f32 %v3833_v34, %v4839_v54  ;;  %v1976_v2 = vpack.c.bf16 %v5808_v23, %v5809_v1  ;;  %v5120_v26 = vadd.f32 %v1708_v49, %v5925_v47  ;;  %v5927_v34 = vmax.f32 %v4538_v11, 0.0 }
 0x2ba   : > { %v1710_v16 = vpop.f32.mrf.mxu0 }
 0x2bb   : > { %v5124_v4 = vadd.f32 %v1719_v35, %v5926_v40  ;;  %v1711_v24 = vadd.f32 %v1710_v16, %v4839_v54  ;;  %3906 = vmatprep.mubr.bf16.mxu1 %v1976_v2  ;;  %v5129_v23 = vadd.f32 %v1716_v19, %v5927_v34  ;;  %v5814_v15 = vmax.f32 %v5120_v26, 0.0 }
 0x2bc   : > { %v3836_v1 = vpop.f32.mrf.mxu0  ;;  %3907 = vmatmul.mubr.bf16.gmra.mxu1 %v1977_v39  ;;  %v5930_v40 = vmax.f32 %v4522_v46, 0.0 }
 0x2bd   : > { %v5133_v59 = vadd.f32 %v1711_v24, %v5929_v62  ;;  %v5816_v36 = vmax.f32 %v5124_v4, 0.0  ;;  %v5817_v2 = vmax.f32 %v5129_v23, 0.0  ;;  %v1732_v11 = vadd.f32 %v3836_v1, %v4839_v54 }
 0x2be   : > { %v1723_v49 = vpop.f32.mrf.mxu0  ;;  %v5931_v1 = vmax.f32 %v4576_v63, 0.0 }
 0x2bf   : > { %v5813_v35 = vmax.f32 %v5133_v59, 0.0  ;;  %v1724_v16 = vadd.f32 %v1723_v49, %v4839_v54  ;;  %v1979_v62 = vpack.c.bf16 %v5816_v36, %v5817_v2  ;;  %v5934_v36 = vmax.f32 %v5933_v18, 0.0 }
 0x2c0   : > { %v3837_v19 = vpop.f32.mrf.mxu0 }
 0x2c1   : > { %v1735_v39 = vadd.f32 %v3837_v19, %v4839_v54  ;;  %v1978_v0 = vpack.c.bf16 %v5813_v35, %v5814_v15  ;;  %v5152_v24 = vadd.f32 %v1724_v16, %v5930_v40  ;;  %v5932_v19 = vmax.f32 %v4572_v27, 0.0 }
 0x2c2   : > { %v1726_v47 = vpop.f32.mrf.mxu0 }
 0x2c3   : > { %v5156_v34 = vadd.f32 %v1735_v39, %v5931_v1  ;;  %v1727_v49 = vadd.f32 %v1726_v47, %v4839_v54  ;;  %3910 = vmatprep.mubr.bf16.mxu1 %v1978_v0  ;;  %v5161_v35 = vadd.f32 %v1732_v11, %v5932_v19  ;;  %v5820_v63 = vmax.f32 %v5152_v24, 0.0  ;;  %v5936_v1 = vld [vmem:[#allocation5_spill] sm:$0xff] }
 0x2c4   : > { %v3840_v15 = vpop.f32.mrf.mxu0  ;;  %3911 = vmatmul.mubr.bf16.gmra.mxu1 %v1979_v62 }
 0x2c5   : > { %v5165_v2 = vadd.f32 %v1727_v49, %v5934_v36  ;;  %v5822_v46 = vmax.f32 %v5156_v34, 0.0  ;;  %v5823_v0 = vmax.f32 %v5161_v35, 0.0  ;;  %v1748_v27 = vadd.f32 %v3840_v15, %v4839_v54 }
 0x2c6   : > { %v1739_v16 = vpop.f32.mrf.mxu0  ;;  %v5937_v49 = vmax.f32 %v5936_v1, 0.0  ;;  %v5939_v15 = vmax.f32 %v4604_v43, 0.0 }
 0x2c7   : > { %5935 = vst [vmem:[#allocation3_spill] sm:$0xff] %v5165_v2  ;;  %v5819_v39 = vmax.f32 %v5165_v2, 0.0  ;;  %v1740_v47 = vadd.f32 %v1739_v16, %v4839_v54  ;;  %v1981_v36 = vpack.c.bf16 %v5822_v46, %v5823_v0  ;;  %v5942_v2 = vld [vmem:[#allocation6_spill] sm:$0xff] }
 0x2c8   : > { %v3841_v11 = vpop.f32.mrf.mxu0  ;;  %v5943_v46 = vmax.f32 %v5942_v2, 0.0 }
 0x2c9   : > { %v1751_v62 = vadd.f32 %v3841_v11, %v4839_v54  ;;  %v1980_v18 = vpack.c.bf16 %v5819_v39, %v5820_v63  ;;  %v5184_v19 = vadd.f32 %v1740_v47, %v5937_v49  ;;  %v5193_v39 = vadd.f32 %v1748_v27, %v5941_v57  ;;  %v5945_v49 = vld [vmem:[#allocation7_spill] sm:$0xff] }
 0x2ca   : > { %v1742_v40 = vpop.f32.mrf.mxu0 }
 0x2cb   : > { %5938 = vst [vmem:[#allocation2_spill] sm:$0xff] %v5184_v19  ;;  %v5188_v16 = vadd.f32 %v1751_v62, %v5939_v15  ;;  %v1743_v11 = vadd.f32 %v1742_v40, %v4839_v54  ;;  %3914 = vmatprep.mubr.bf16.mxu1 %v1980_v18  ;;  %v5827_v43 = vmax.f32 %v5184_v19, 0.0  ;;  %v5830_v18 = vmax.f32 %v5193_v39, 0.0  ;;  %v5950_v19 = vld [vmem:[#allocation11_spill] sm:$0xff] }
 0x2cc   : > { %v3844_v63 = vpop.f32.mrf.mxu0  ;;  %3915 = vmatmul.mubr.bf16.gmra.mxu1 %v1981_v36  ;;  %v5946_v15 = vmax.f32 %v5945_v49, 0.0 }
 0x2cd   : > { %5940 = vst [vmem:[#allocation4_spill] sm:$0xff] %v5188_v16  ;;  %v5197_v0 = vadd.f32 %v1743_v11, %v5943_v46  ;;  %v5829_v47 = vmax.f32 %v5188_v16, 0.0  ;;  %v1764_v60 = vadd.f32 %v3844_v63, %v4839_v54  ;;  %v5948_v63 = vmax.f32 %v4634_v53, 0.0  ;;  %v5952_v16 = vld [vmem:[#allocation8_spill] sm:$0xff] }
 0x2ce   : > { %v1755_v1 = vpop.f32.mrf.mxu0 }
 0x2cf   : > { %5944 = vst [vmem:[#allocation5_spill] sm:$0xff] %v5197_v0  ;;  %v5826_v62 = vmax.f32 %v5197_v0, 0.0  ;;  %v1756_v40 = vadd.f32 %v1755_v1, %v4839_v54  ;;  %v1983_v46 = vpack.c.bf16 %v5829_v47, %v5830_v18  ;;  %v5951_v0 = vmax.f32 %v5950_v19, 0.0 }
 0x2d0   : > { %v3845_v57 = vpop.f32.mrf.mxu0  ;;  %v5953_v47 = vmax.f32 %v5952_v16, 0.0 }
 0x2d1   : > { %v1767_v27 = vadd.f32 %v3845_v57, %v4839_v54  ;;  %v1982_v2 = vpack.c.bf16 %v5826_v62, %v5827_v43  ;;  %v5216_v11 = vadd.f32 %v1756_v40, %v5946_v15  ;;  %v5225_v62 = vadd.f32 %v1764_v60, %v5951_v0  ;;  %v5955_v15 = vld [vmem:[#allocation9_spill] sm:$0xff] }
 0x2d2   : > { %v1758_v36 = vpop.f32.mrf.mxu0 }
 0x2d3   : > { %5947 = vst [vmem:[#allocation6_spill] sm:$0xff] %v5216_v11  ;;  %v5220_v1 = vadd.f32 %v1767_v27, %v5948_v63  ;;  %v1759_v57 = vadd.f32 %v1758_v36, %v4839_v54  ;;  %3918 = vmatprep.mubr.bf16.mxu1 %v1982_v2  ;;  %v5833_v53 = vmax.f32 %v5216_v11, 0.0  ;;  %v5836_v2 = vmax.f32 %v5225_v62, 0.0  ;;  %v5962_v11 = vld [vmem:[#allocation10_spill] sm:$0xff] }
 0x2d4   : > { %v3848_v43 = vpop.f32.mrf.mxu0  ;;  %3919 = vmatmul.mubr.bf16.gmra.mxu1 %v1983_v46  ;;  %v5956_v63 = vmax.f32 %v5955_v15, 0.0 }
 0x2d5   : > { %5949 = vst [vmem:[#allocation7_spill] sm:$0xff] %v5220_v1  ;;  %v5229_v18 = vadd.f32 %v1759_v57, %v5953_v47  ;;  %v5835_v40 = vmax.f32 %v5220_v1, 0.0  ;;  %v1780_v0 = vadd.f32 %v3848_v43, %v4839_v54  ;;  %v5958_v43 = vmax.f32 %v4660_v5, 0.0 }
 0x2d6   : > { %v1771_v49 = vpop.f32.mrf.mxu0 }
 0x2d7   : > { %5954 = vst [vmem:[#allocation11_spill] sm:$0xff] %v5229_v18  ;;  %v5832_v27 = vmax.f32 %v5229_v18, 0.0  ;;  %v1772_v36 = vadd.f32 %v1771_v49, %v4839_v54  ;;  %v1985_v47 = vpack.c.bf16 %v5835_v40, %v5836_v2  ;;  %v5960_v18 = vmax.f32 %v4656_v22, 0.0 }
 0x2d8   : > { %v3849_v19 = vpop.f32.mrf.mxu0  ;;  %v5963_v40 = vmax.f32 %v5962_v11, 0.0 }
 0x2d9   : > { %v1783_v60 = vadd.f32 %v3849_v19, %v4839_v54  ;;  %v1984_v16 = vpack.c.bf16 %v5832_v27, %v5833_v53  ;;  %v5248_v57 = vadd.f32 %v1772_v36, %v5956_v63  ;;  %v5257_v27 = vadd.f32 %v1780_v0, %v5960_v18  ;;  %v5965_v63 = vld [vmem:[#allocation12_spill] sm:$0xff] }
 0x2da   : > { %v1774_v46 = vpop.f32.mrf.mxu0 }
 0x2db   : > { %5957 = vst [vmem:[#allocation8_spill] sm:$0xff] %v5248_v57  ;;  %v5252_v49 = vadd.f32 %v1783_v60, %v5958_v43  ;;  %v1775_v19 = vadd.f32 %v1774_v46, %v4839_v54  ;;  %3922 = vmatprep.mubr.bf16.mxu1 %v1984_v16  ;;  %5961 = vst [vmem:[#allocation24_spill] sm:$0xff] %v5257_v27  ;;  %v5841_v5 = vmax.f32 %v5248_v57, 0.0  ;;  %v5843_v16 = vmax.f32 %v5257_v27, 0.0  ;;  %v5971_v57 = vld [vmem:[#allocation16_spill] sm:$0xff]  ;;  %v5974_v27 = vld [vmem:[#allocation13_spill] sm:$0xff] }
 0x2dc   : > { %v3852_v53 = vpop.f32.mrf.mxu0  ;;  %3923 = vmatmul.mubr.bf16.gmra.mxu1 %v1985_v47  ;;  %v5966_v43 = vmax.f32 %v5965_v63, 0.0 }
 0x2dd   : > { %5959 = vst [vmem:[#allocation9_spill] sm:$0xff] %v5252_v49  ;;  %v5261_v2 = vadd.f32 %v1775_v19, %v5963_v40  ;;  %v5844_v36 = vmax.f32 %v5252_v49, 0.0  ;;  %v1796_v22 = vadd.f32 %v3852_v53, %v4839_v54 }
 0x2de   : > { %v1787_v15 = vpop.f32.mrf.mxu0 }
 0x2df   : > { %5964 = vst [vmem:[#allocation10_spill] sm:$0xff] %v5261_v2  ;;  %v5840_v60 = vmax.f32 %v5261_v2, 0.0  ;;  %v1788_v46 = vadd.f32 %v1787_v15, %v4839_v54  ;;  %v1987_v40 = vpack.c.bf16 %v5844_v36, %v5843_v16  ;;  %v5968_v15 = vld [vmem:[#allocation17_spill] sm:$0xff]  ;;  %v5972_v2 = vmax.f32 %v5971_v57, 0.0 }
 0x2e0   : > { %v3853_v18 = vpop.f32.mrf.mxu0  ;;  %v5969_v53 = vmax.f32 %v5968_v15, 0.0  ;;  %v5975_v16 = vmax.f32 %v5974_v27, 0.0  ;;  %v5977_v15 = vld [vmem:[#allocation14_spill] sm:$0xff] }
 0x2e1   : > { %v1799_v0 = vadd.f32 %v3853_v18, %v4839_v54  ;;  %v1986_v11 = vpack.c.bf16 %v5840_v60, %v5841_v5  ;;  %v5280_v19 = vadd.f32 %v1788_v46, %v5966_v43  ;;  %v5289_v60 = vadd.f32 %v1796_v22, %v5972_v2 }
 0x2e2   : > { %v1790_v47 = vpop.f32.mrf.mxu0 }
 0x2e3   : > { %5967 = vst [vmem:[#allocation12_spill] sm:$0xff] %v5280_v19  ;;  %v5284_v1 = vadd.f32 %v1799_v0, %v5969_v53  ;;  %v1791_v18 = vadd.f32 %v1790_v47, %v4839_v54  ;;  %3926 = vmatprep.mubr.bf16.mxu1 %v1986_v11  ;;  %5973 = vst [vmem:[#allocation16_spill] sm:$0xff] %v5289_v60  ;;  %v5849_v43 = vmax.f32 %v5280_v19, 0.0  ;;  %v5852_v11 = vmax.f32 %v5289_v60, 0.0  ;;  %v5983_v19 = vld [vmem:[#allocation20_spill] sm:$0xff] }
 0x2e4   : > { %v3856_v5 = vpop.f32.mrf.mxu0  ;;  %3927 = vmatmul.mubr.bf16.gmra.mxu1 %v1987_v40  ;;  %v5978_v53 = vmax.f32 %v5977_v15, 0.0 }
 0x2e5   : > { %5970 = vst [vmem:[#allocation17_spill] sm:$0xff] %v5284_v1  ;;  %v5293_v36 = vadd.f32 %v1791_v18, %v5975_v16  ;;  %v5851_v46 = vmax.f32 %v5284_v1, 0.0  ;;  %v1812_v2 = vadd.f32 %v3856_v5, %v4839_v54  ;;  %v5985_v1 = vld [vmem:[#allocation15_spill] sm:$0xff] }
 0x2e6   : > { %v1803_v63 = vpop.f32.mrf.mxu0 }
 0x2e7   : > { %5976 = vst [vmem:[#allocation13_spill] sm:$0xff] %v5293_v36  ;;  %v5848_v0 = vmax.f32 %v5293_v36, 0.0  ;;  %v1804_v47 = vadd.f32 %v1803_v63, %v4839_v54  ;;  %v1989_v16 = vpack.c.bf16 %v5851_v46, %v5852_v11  ;;  %v5980_v63 = vld [vmem:[#allocation21_spill] sm:$0xff]  ;;  %v5984_v36 = vmax.f32 %v5983_v19, 0.0 }
 0x2e8   : > { %v3857_v57 = vpop.f32.mrf.mxu0  ;;  %v5981_v5 = vmax.f32 %v5980_v63, 0.0  ;;  %v5986_v46 = vmax.f32 %v5985_v1, 0.0  ;;  %v5988_v63 = vld [vmem:[#allocation18_spill] sm:$0xff] }
 0x2e9   : > { %v1815_v22 = vadd.f32 %v3857_v57, %v4839_v54  ;;  %v1988_v27 = vpack.c.bf16 %v5848_v0, %v5849_v43  ;;  %v5312_v18 = vadd.f32 %v1804_v47, %v5978_v53  ;;  %v5321_v0 = vadd.f32 %v1812_v2, %v5984_v36 }
 0x2ea   : > { %v1806_v40 = vpop.f32.mrf.mxu0 }
 0x2eb   : > { %5979 = vst [vmem:[#allocation14_spill] sm:$0xff] %v5312_v18  ;;  %v5316_v49 = vadd.f32 %v1815_v22, %v5981_v5  ;;  %v1807_v57 = vadd.f32 %v1806_v40, %v4839_v54  ;;  %3930 = vmatprep.mubr.bf16.mxu1 %v1988_v27  ;;  %v5857_v53 = vmax.f32 %v5312_v18, 0.0  ;;  %v5864_v27 = vmax.f32 %v5321_v0, 0.0  ;;  %v5994_v18 = vld [vmem:[#allocation22_spill] sm:$0xff] }
 0x2ec   : > { %v3860_v43 = vpop.f32.mrf.mxu0  ;;  %3931 = vmatmul.mubr.bf16.gmra.mxu1 %v1989_v16  ;;  %v5989_v5 = vmax.f32 %v5988_v63, 0.0 }
 0x2ed   : > { %5982 = vst [vmem:[#allocation21_spill] sm:$0xff] %v5316_v49  ;;  %v5325_v11 = vadd.f32 %v1807_v57, %v5986_v46  ;;  %v5859_v47 = vmax.f32 %v5316_v49, 0.0  ;;  %v1828_v36 = vadd.f32 %v3860_v43, %v4839_v54 }
 0x2ee   : > { %v1819_v15 = vpop.f32.mrf.mxu0 }
 0x2ef   : > { %5987 = vst [vmem:[#allocation20_spill] sm:$0xff] %v5325_v11  ;;  %v5856_v22 = vmax.f32 %v5325_v11, 0.0  ;;  %v1820_v40 = vadd.f32 %v1819_v15, %v4839_v54  ;;  %v1991_v46 = vpack.c.bf16 %v5859_v47, %v5864_v27  ;;  %v5991_v15 = vld [vmem:[#allocation23_spill] sm:$0xff]  ;;  %v5995_v11 = vmax.f32 %v5994_v18, 0.0 }
 0x2f0   : > { %v3861_v19 = vpop.f32.mrf.mxu0  ;;  %v5992_v43 = vmax.f32 %v5991_v15, 0.0 }
 0x2f1   : > { %v1831_v2 = vadd.f32 %v3861_v19, %v4839_v54  ;;  %v1990_v1 = vpack.c.bf16 %v5856_v22, %v5857_v53  ;;  %v5344_v57 = vadd.f32 %v1820_v40, %v5989_v5  ;;  %v5353_v22 = vadd.f32 %v1828_v36, %v5995_v11  ;;  %v5997_v53 = vld [vmem:[#allocation19_spill] sm:$0xff] }
 0x2f2   : > { %v1822_v16 = vpop.f32.mrf.mxu0  ;;  %v5998_v49 = vmax.f32 %v5997_v53, 0.0 }
 0x2f3   : > { %5990 = vst [vmem:[#allocation15_spill] sm:$0xff] %v5344_v57  ;;  %v5348_v60 = vadd.f32 %v1831_v2, %v5992_v43  ;;  %v1823_v19 = vadd.f32 %v1822_v16, %v4839_v54  ;;  %3934 = vmatprep.mubr.bf16.mxu1 %v1990_v1  ;;  %5996 = vst [vmem:[#allocation23_spill] sm:$0xff] %v5353_v22  ;;  %v5862_v40 = vmax.f32 %v5344_v57, 0.0  ;;  %v5863_v2 = vmax.f32 %v5353_v22, 0.0 }
 0x2f4   : > { %3935 = vmatmul.mubr.bf16.gmra.mxu1 %v1991_v46 }
 0x2f5   : > { %5993 = vst [vmem:[#allocation18_spill] sm:$0xff] %v5348_v60  ;;  %v5357_v47 = vadd.f32 %v1823_v19, %v5998_v49  ;;  %v5861_v63 = vmax.f32 %v5348_v60, 0.0  ;;  %v3403_v49 = vld [vmem:[%s5694_s4 + $0x1] sm:$0x1] }
 0x2f6   : > { %v2013_v18 = vunpack.c.l.bf16 %v3403_v49 }
 0x2f7   : > { %5999 = vst [vmem:[#allocation22_spill] sm:$0xff] %v5357_v47  ;;  %v5860_v5 = vmax.f32 %v5357_v47, 0.0  ;;  %v1993_v11 = vpack.c.bf16 %v5861_v63, %v5863_v2 }
 0x2f8   : > { %v5375_v36 = vrot.slane %v2013_v18, %v4262_v50 }
 0x2f9   : > { %v1992_v54 = vpack.c.bf16 %v5860_v5, %v5862_v40 }
 0x2fb   : > { %3938 = vmatprep.mubr.bf16.mxu1 %v1992_v54 }
 0x2fc   : > { %3939 = vmatmul.mubr.bf16.gmra.mxu1 %v1993_v11 }
 0x344   : > { %v3880_v53 = vpop.f32.mrf.mxu1 }
 0x345   : > { %v2109_v43 = vadd.f32 %v3880_v53, %v5375_v36 }
 0x346   : > { %v2100_v1 = vpop.f32.mrf.mxu1 }
 0x347   : > { %v2101_v16 = vadd.f32 %v2100_v1, %v5375_v36  ;;  %v2357_v49 = vmax.f32 %v2109_v43, 0.0 }
 0x348   : > { %v3881_v46 = vpop.f32.mrf.mxu1 }
 0x349   : > { %v2112_v15 = vadd.f32 %v3881_v46, %v5375_v36  ;;  %v2355_v63 = vmax.f32 %v2101_v16, 0.0 }
 0x34a   : > { %v2103_v19 = vpop.f32.mrf.mxu1 }
 0x34b   : > { %v2104_v54 = vadd.f32 %v2103_v19, %v5375_v36  ;;  %v2358_v11 = vmax.f32 %v2112_v15, 0.0 }
 0x34c   : > { %v3884_v5 = vpop.f32.mrf.mxu1 }
 0x34d   : > { %v2356_v40 = vmax.f32 %v2104_v54, 0.0  ;;  %v2420_v18 = vpack.c.bf16 %v2358_v11, %v2357_v49  ;;  %v2125_v46 = vadd.f32 %v3884_v5, %v5375_v36 }
 0x34e   : > { %v2116_v2 = vpop.f32.mrf.mxu1 }
 0x34f   : > { %v2419_v27 = vpack.c.bf16 %v2356_v40, %v2355_v63  ;;  %v2117_v60 = vadd.f32 %v2116_v2, %v5375_v36  ;;  %v2361_v43 = vmax.f32 %v2125_v46, 0.0 }
 0x350   : > { %v3885_v47 = vpop.f32.mrf.mxu1 }
 0x351   : > { %v2128_v1 = vadd.f32 %v3885_v47, %v5375_v36  ;;  %3958 = vmatprep.mubr.bf16.mxu0 %v2419_v27  ;;  %v2359_v16 = vmax.f32 %v2117_v60, 0.0 }
 0x352   : > { %v2119_v53 = vpop.f32.mrf.mxu1  ;;  %3959 = vmatmul.mubr.bf16.vlgmr.msra.gmra.mxu0 %v2420_v18 }
 0x353   : > { %v2120_v19 = vadd.f32 %v2119_v53, %v5375_v36  ;;  %v2362_v15 = vmax.f32 %v2128_v1, 0.0 }
 0x354   : > { %v3888_v57 = vpop.f32.mrf.mxu1 }
 0x355   : > { %v2360_v54 = vmax.f32 %v2120_v19, 0.0  ;;  %v2422_v40 = vpack.c.bf16 %v2362_v15, %v2361_v43  ;;  %v2141_v27 = vadd.f32 %v3888_v57, %v5375_v36 }
 0x356   : > { %v2132_v22 = vpop.f32.mrf.mxu1 }
 0x357   : > { %v2421_v63 = vpack.c.bf16 %v2360_v54, %v2359_v16  ;;  %v2133_v2 = vadd.f32 %v2132_v22, %v5375_v36  ;;  %v2365_v46 = vmax.f32 %v2141_v27, 0.0 }
 0x358   : > { %v3889_v11 = vpop.f32.mrf.mxu1 }
 0x359   : > { %v2144_v47 = vadd.f32 %v3889_v11, %v5375_v36  ;;  %3962 = vmatprep.mubr.bf16.mxu0 %v2421_v63  ;;  %v2363_v60 = vmax.f32 %v2133_v2, 0.0 }
 0x35a   : > { %v2135_v5 = vpop.f32.mrf.mxu1  ;;  %3963 = vmatmul.mubr.bf16.gmra.mxu0 %v2422_v40 }
 0x35b   : > { %v2136_v49 = vadd.f32 %v2135_v5, %v5375_v36  ;;  %v2366_v18 = vmax.f32 %v2144_v47, 0.0 }
 0x35c   : > { %v3892_v1 = vpop.f32.mrf.mxu1 }
 0x35d   : > { %v2364_v53 = vmax.f32 %v2136_v49, 0.0  ;;  %v2424_v15 = vpack.c.bf16 %v2366_v18, %v2365_v46  ;;  %v2157_v57 = vadd.f32 %v3892_v1, %v5375_v36 }
 0x35e   : > { %v2148_v19 = vpop.f32.mrf.mxu1 }
 0x35f   : > { %v2423_v16 = vpack.c.bf16 %v2364_v53, %v2363_v60  ;;  %v2149_v22 = vadd.f32 %v2148_v19, %v5375_v36  ;;  %v2369_v27 = vmax.f32 %v2157_v57, 0.0 }
 0x360   : > { %v3893_v54 = vpop.f32.mrf.mxu1 }
 0x361   : > { %v2160_v43 = vadd.f32 %v3893_v54, %v5375_v36  ;;  %3966 = vmatprep.mubr.bf16.mxu0 %v2423_v16  ;;  %v2367_v2 = vmax.f32 %v2149_v22, 0.0 }
 0x362   : > { %v2151_v63 = vpop.f32.mrf.mxu1  ;;  %3967 = vmatmul.mubr.bf16.gmra.mxu0 %v2424_v15 }
 0x363   : > { %v2152_v40 = vadd.f32 %v2151_v63, %v5375_v36  ;;  %v2370_v11 = vmax.f32 %v2160_v43, 0.0 }
 0x364   : > { %v3896_v47 = vpop.f32.mrf.mxu1 }
 0x365   : > { %v2368_v5 = vmax.f32 %v2152_v40, 0.0  ;;  %v2426_v18 = vpack.c.bf16 %v2370_v11, %v2369_v27  ;;  %v2173_v1 = vadd.f32 %v3896_v47, %v5375_v36 }
 0x366   : > { %v2164_v49 = vpop.f32.mrf.mxu1 }
 0x367   : > { %v2425_v60 = vpack.c.bf16 %v2368_v5, %v2367_v2  ;;  %v2165_v46 = vadd.f32 %v2164_v49, %v5375_v36  ;;  %v2373_v57 = vmax.f32 %v2173_v1, 0.0 }
 0x368   : > { %v3897_v53 = vpop.f32.mrf.mxu1 }
 0x369   : > { %v2176_v19 = vadd.f32 %v3897_v53, %v5375_v36  ;;  %3970 = vmatprep.mubr.bf16.mxu0 %v2425_v60  ;;  %v2371_v22 = vmax.f32 %v2165_v46, 0.0 }
 0x36a   : > { %v2167_v16 = vpop.f32.mrf.mxu1  ;;  %3971 = vmatmul.mubr.bf16.gmra.mxu0 %v2426_v18 }
 0x36b   : > { %v2168_v15 = vadd.f32 %v2167_v16, %v5375_v36  ;;  %v2374_v54 = vmax.f32 %v2176_v19, 0.0 }
 0x36c   : > { %v3900_v43 = vpop.f32.mrf.mxu1 }
 0x36d   : > { %v2372_v63 = vmax.f32 %v2168_v15, 0.0  ;;  %v2428_v11 = vpack.c.bf16 %v2374_v54, %v2373_v57  ;;  %v2189_v47 = vadd.f32 %v3900_v43, %v5375_v36 }
 0x36e   : > { %v2180_v40 = vpop.f32.mrf.mxu1 }
 0x36f   : > { %v2427_v2 = vpack.c.bf16 %v2372_v63, %v2371_v22  ;;  %v2181_v27 = vadd.f32 %v2180_v40, %v5375_v36  ;;  %v2377_v1 = vmax.f32 %v2189_v47, 0.0 }
 0x370   : > { %v3901_v5 = vpop.f32.mrf.mxu1 }
 0x371   : > { %v2192_v49 = vadd.f32 %v3901_v5, %v5375_v36  ;;  %3974 = vmatprep.mubr.bf16.mxu0 %v2427_v2  ;;  %v2375_v46 = vmax.f32 %v2181_v27, 0.0 }
 0x372   : > { %v2183_v60 = vpop.f32.mrf.mxu1  ;;  %3975 = vmatmul.mubr.bf16.gmra.mxu0 %v2428_v11 }
 0x373   : > { %v2184_v18 = vadd.f32 %v2183_v60, %v5375_v36  ;;  %v2378_v53 = vmax.f32 %v2192_v49, 0.0 }
 0x374   : > { %v3904_v19 = vpop.f32.mrf.mxu1 }
 0x375   : > { %v2376_v16 = vmax.f32 %v2184_v18, 0.0  ;;  %v2430_v54 = vpack.c.bf16 %v2378_v53, %v2377_v1  ;;  %v2205_v43 = vadd.f32 %v3904_v19, %v5375_v36 }
 0x376   : > { %v2196_v15 = vpop.f32.mrf.mxu1 }
 0x377   : > { %v2429_v22 = vpack.c.bf16 %v2376_v16, %v2375_v46  ;;  %v2197_v57 = vadd.f32 %v2196_v15, %v5375_v36  ;;  %v2381_v47 = vmax.f32 %v2205_v43, 0.0 }
 0x378   : > { %v3905_v63 = vpop.f32.mrf.mxu1 }
 0x379   : > { %v2208_v40 = vadd.f32 %v3905_v63, %v5375_v36  ;;  %3978 = vmatprep.mubr.bf16.mxu0 %v2429_v22  ;;  %v2379_v27 = vmax.f32 %v2197_v57, 0.0 }
 0x37a   : > { %v2199_v2 = vpop.f32.mrf.mxu1  ;;  %3979 = vmatmul.mubr.bf16.gmra.mxu0 %v2430_v54 }
 0x37b   : > { %v2200_v11 = vadd.f32 %v2199_v2, %v5375_v36  ;;  %v2382_v5 = vmax.f32 %v2208_v40, 0.0 }
 0x37c   : > { %v3908_v49 = vpop.f32.mrf.mxu1 }
 0x37d   : > { %v2380_v60 = vmax.f32 %v2200_v11, 0.0  ;;  %v2432_v53 = vpack.c.bf16 %v2382_v5, %v2381_v47  ;;  %v2221_v19 = vadd.f32 %v3908_v49, %v5375_v36 }
 0x37e   : > { %v2212_v18 = vpop.f32.mrf.mxu1 }
 0x37f   : > { %v2431_v46 = vpack.c.bf16 %v2380_v60, %v2379_v27  ;;  %v2213_v1 = vadd.f32 %v2212_v18, %v5375_v36  ;;  %v2385_v43 = vmax.f32 %v2221_v19, 0.0 }
 0x380   : > { %v3909_v16 = vpop.f32.mrf.mxu1 }
 0x381   : > { %v2224_v15 = vadd.f32 %v3909_v16, %v5375_v36  ;;  %3982 = vmatprep.mubr.bf16.mxu0 %v2431_v46  ;;  %v2383_v57 = vmax.f32 %v2213_v1, 0.0 }
 0x382   : > { %v2215_v22 = vpop.f32.mrf.mxu1  ;;  %3983 = vmatmul.mubr.bf16.gmra.mxu0 %v2432_v53 }
 0x383   : > { %v2216_v54 = vadd.f32 %v2215_v22, %v5375_v36  ;;  %v2386_v63 = vmax.f32 %v2224_v15, 0.0 }
 0x384   : > { %v3912_v40 = vpop.f32.mrf.mxu1 }
 0x385   : > { %v2384_v2 = vmax.f32 %v2216_v54, 0.0  ;;  %v2434_v5 = vpack.c.bf16 %v2386_v63, %v2385_v43  ;;  %v2237_v49 = vadd.f32 %v3912_v40, %v5375_v36 }
 0x386   : > { %v2228_v11 = vpop.f32.mrf.mxu1 }
 0x387   : > { %v2433_v27 = vpack.c.bf16 %v2384_v2, %v2383_v57  ;;  %v2229_v47 = vadd.f32 %v2228_v11, %v5375_v36  ;;  %v2389_v19 = vmax.f32 %v2237_v49, 0.0 }
 0x388   : > { %v3913_v60 = vpop.f32.mrf.mxu1 }
 0x389   : > { %v2240_v18 = vadd.f32 %v3913_v60, %v5375_v36  ;;  %3986 = vmatprep.mubr.bf16.mxu0 %v2433_v27  ;;  %v2387_v1 = vmax.f32 %v2229_v47, 0.0 }
 0x38a   : > { %v2231_v46 = vpop.f32.mrf.mxu1  ;;  %3987 = vmatmul.mubr.bf16.gmra.mxu0 %v2434_v5 }
 0x38b   : > { %v2232_v53 = vadd.f32 %v2231_v46, %v5375_v36  ;;  %v2390_v16 = vmax.f32 %v2240_v18, 0.0 }
 0x38c   : > { %v3916_v15 = vpop.f32.mrf.mxu1 }
 0x38d   : > { %v2388_v22 = vmax.f32 %v2232_v53, 0.0  ;;  %v2436_v63 = vpack.c.bf16 %v2390_v16, %v2389_v19  ;;  %v2253_v40 = vadd.f32 %v3916_v15, %v5375_v36 }
 0x38e   : > { %v2244_v54 = vpop.f32.mrf.mxu1 }
 0x38f   : > { %v2435_v57 = vpack.c.bf16 %v2388_v22, %v2387_v1  ;;  %v2245_v43 = vadd.f32 %v2244_v54, %v5375_v36  ;;  %v2393_v49 = vmax.f32 %v2253_v40, 0.0 }
 0x390   : > { %v3917_v2 = vpop.f32.mrf.mxu1 }
 0x391   : > { %v2256_v11 = vadd.f32 %v3917_v2, %v5375_v36  ;;  %3990 = vmatprep.mubr.bf16.mxu0 %v2435_v57  ;;  %v2391_v47 = vmax.f32 %v2245_v43, 0.0 }
 0x392   : > { %v2247_v27 = vpop.f32.mrf.mxu1  ;;  %3991 = vmatmul.mubr.bf16.gmra.mxu0 %v2436_v63 }
 0x393   : > { %v2248_v5 = vadd.f32 %v2247_v27, %v5375_v36  ;;  %v2394_v60 = vmax.f32 %v2256_v11, 0.0 }
 0x394   : > { %v3920_v18 = vpop.f32.mrf.mxu1 }
 0x395   : > { %v2392_v46 = vmax.f32 %v2248_v5, 0.0  ;;  %v2438_v16 = vpack.c.bf16 %v2394_v60, %v2393_v49  ;;  %v2269_v15 = vadd.f32 %v3920_v18, %v5375_v36 }
 0x396   : > { %v2260_v53 = vpop.f32.mrf.mxu1 }
 0x397   : > { %v2437_v1 = vpack.c.bf16 %v2392_v46, %v2391_v47  ;;  %v2261_v19 = vadd.f32 %v2260_v53, %v5375_v36  ;;  %v2397_v40 = vmax.f32 %v2269_v15, 0.0 }
 0x398   : > { %v3921_v22 = vpop.f32.mrf.mxu1 }
 0x399   : > { %v2272_v54 = vadd.f32 %v3921_v22, %v5375_v36  ;;  %3994 = vmatprep.mubr.bf16.mxu0 %v2437_v1  ;;  %v2395_v43 = vmax.f32 %v2261_v19, 0.0 }
 0x39a   : > { %v2263_v57 = vpop.f32.mrf.mxu1  ;;  %3995 = vmatmul.mubr.bf16.gmra.mxu0 %v2438_v16 }
 0x39b   : > { %v2264_v63 = vadd.f32 %v2263_v57, %v5375_v36  ;;  %v2398_v2 = vmax.f32 %v2272_v54, 0.0 }
 0x39c   : > { %v3924_v11 = vpop.f32.mrf.mxu1 }
 0x39d   : > { %v2396_v27 = vmax.f32 %v2264_v63, 0.0  ;;  %v2440_v60 = vpack.c.bf16 %v2398_v2, %v2397_v40  ;;  %v2285_v18 = vadd.f32 %v3924_v11, %v5375_v36 }
 0x39e   : > { %v2276_v5 = vpop.f32.mrf.mxu1 }
 0x39f   : > { %v2439_v47 = vpack.c.bf16 %v2396_v27, %v2395_v43  ;;  %v2277_v49 = vadd.f32 %v2276_v5, %v5375_v36  ;;  %v2401_v15 = vmax.f32 %v2285_v18, 0.0 }
 0x3a0   : > { %v3925_v46 = vpop.f32.mrf.mxu1 }
 0x3a1   : > { %v2288_v53 = vadd.f32 %v3925_v46, %v5375_v36  ;;  %3998 = vmatprep.mubr.bf16.mxu0 %v2439_v47  ;;  %v2399_v19 = vmax.f32 %v2277_v49, 0.0 }
 0x3a2   : > { %v2279_v1 = vpop.f32.mrf.mxu1  ;;  %3999 = vmatmul.mubr.bf16.gmra.mxu0 %v2440_v60 }
 0x3a3   : > { %v2280_v16 = vadd.f32 %v2279_v1, %v5375_v36  ;;  %v2402_v22 = vmax.f32 %v2288_v53, 0.0 }
 0x3a4   : > { %v3928_v54 = vpop.f32.mrf.mxu1 }
 0x3a5   : > { %v2400_v57 = vmax.f32 %v2280_v16, 0.0  ;;  %v2442_v2 = vpack.c.bf16 %v2402_v22, %v2401_v15  ;;  %v2301_v11 = vadd.f32 %v3928_v54, %v5375_v36 }
 0x3a6   : > { %v2292_v63 = vpop.f32.mrf.mxu1 }
 0x3a7   : > { %v2441_v43 = vpack.c.bf16 %v2400_v57, %v2399_v19  ;;  %v2293_v40 = vadd.f32 %v2292_v63, %v5375_v36  ;;  %v2405_v18 = vmax.f32 %v2301_v11, 0.0 }
 0x3a8   : > { %v3929_v27 = vpop.f32.mrf.mxu1 }
 0x3a9   : > { %v2304_v5 = vadd.f32 %v3929_v27, %v5375_v36  ;;  %4002 = vmatprep.mubr.bf16.mxu0 %v2441_v43  ;;  %v2403_v49 = vmax.f32 %v2293_v40, 0.0 }
 0x3aa   : > { %v2295_v47 = vpop.f32.mrf.mxu1  ;;  %4003 = vmatmul.mubr.bf16.gmra.mxu0 %v2442_v2 }
 0x3ab   : > { %v2296_v60 = vadd.f32 %v2295_v47, %v5375_v36  ;;  %v2406_v46 = vmax.f32 %v2304_v5, 0.0 }
 0x3ac   : > { %v3932_v53 = vpop.f32.mrf.mxu1 }
 0x3ad   : > { %v2404_v1 = vmax.f32 %v2296_v60, 0.0  ;;  %v2444_v22 = vpack.c.bf16 %v2406_v46, %v2405_v18  ;;  %v2317_v54 = vadd.f32 %v3932_v53, %v5375_v36 }
 0x3ae   : > { %v2308_v16 = vpop.f32.mrf.mxu1 }
 0x3af   : > { %v2443_v19 = vpack.c.bf16 %v2404_v1, %v2403_v49  ;;  %v2309_v15 = vadd.f32 %v2308_v16, %v5375_v36  ;;  %v2409_v11 = vmax.f32 %v2317_v54, 0.0 }
 0x3b0   : > { %v3933_v57 = vpop.f32.mrf.mxu1 }
 0x3b1   : > { %v2320_v63 = vadd.f32 %v3933_v57, %v5375_v36  ;;  %4006 = vmatprep.mubr.bf16.mxu0 %v2443_v19  ;;  %v2407_v40 = vmax.f32 %v2309_v15, 0.0 }
 0x3b2   : > { %v2311_v43 = vpop.f32.mrf.mxu1  ;;  %4007 = vmatmul.mubr.bf16.gmra.mxu0 %v2444_v22 }
 0x3b3   : > { %v2312_v2 = vadd.f32 %v2311_v43, %v5375_v36  ;;  %v2410_v27 = vmax.f32 %v2320_v63, 0.0 }
 0x3b4   : > { %v3936_v5 = vpop.f32.mrf.mxu1 }
 0x3b5   : > { %v2408_v47 = vmax.f32 %v2312_v2, 0.0  ;;  %v2446_v46 = vpack.c.bf16 %v2410_v27, %v2409_v11  ;;  %v2333_v53 = vadd.f32 %v3936_v5, %v5375_v36 }
 0x3b6   : > { %v2324_v60 = vpop.f32.mrf.mxu1 }
 0x3b7   : > { %v2445_v49 = vpack.c.bf16 %v2408_v47, %v2407_v40  ;;  %v2325_v18 = vadd.f32 %v2324_v60, %v5375_v36  ;;  %v2413_v54 = vmax.f32 %v2333_v53, 0.0 }
 0x3b8   : > { %v3937_v1 = vpop.f32.mrf.mxu1 }
 0x3b9   : > { %v2336_v16 = vadd.f32 %v3937_v1, %v5375_v36  ;;  %4010 = vmatprep.mubr.bf16.mxu0 %v2445_v49  ;;  %v2411_v15 = vmax.f32 %v2325_v18, 0.0 }
 0x3ba   : > { %v2327_v19 = vpop.f32.mrf.mxu1  ;;  %4011 = vmatmul.mubr.bf16.gmra.mxu0 %v2446_v46 }
 0x3bb   : > { %v2328_v22 = vadd.f32 %v2327_v19, %v5375_v36  ;;  %v2414_v57 = vmax.f32 %v2336_v16, 0.0 }
 0x3bc   : > { %v3940_v63 = vpop.f32.mrf.mxu1 }
 0x3bd   : > { %v2412_v43 = vmax.f32 %v2328_v22, 0.0  ;;  %v2448_v27 = vpack.c.bf16 %v2414_v57, %v2413_v54  ;;  %v2349_v5 = vadd.f32 %v3940_v63, %v5375_v36  ;;  %v3428_v57 = vld [vmem:[%s5696_s6 + $0x1] sm:$0x1] }
 0x3be   : > { %v2340_v2 = vpop.f32.mrf.mxu1 }
 0x3bf   : > { %v2447_v40 = vpack.c.bf16 %v2412_v43, %v2411_v15  ;;  %v2341_v11 = vadd.f32 %v2340_v2, %v5375_v36  ;;  %v2417_v19 = vmax.f32 %v2349_v5, 0.0  ;;  %v2470_v15 = vunpack.c.l.bf16 %v3428_v57 }
 0x3c0   : > { %v3941_v47 = vpop.f32.mrf.mxu1  ;;  %v6001_v5 = vmax.f32 %v4853_v7, 0.0 }
 0x3c1   : > { %v2352_v60 = vadd.f32 %v3941_v47, %v5375_v36  ;;  %4014 = vmatprep.mubr.bf16.mxu0 %v2447_v40  ;;  %v2415_v16 = vmax.f32 %v2341_v11, 0.0  ;;  %v5445_v43 = vrot.slane %v2470_v15, %v4262_v50  ;;  %v6000_v11 = vmax.f32 %v4849_v44, 0.0 }
 0x3c2   : > { %v2343_v49 = vpop.f32.mrf.mxu1  ;;  %4015 = vmatmul.mubr.bf16.gmra.mxu0 %v2448_v27  ;;  %v6002_v50 = vmax.f32 %v4858_v52, 0.0 }
 0x3c3   : > { %v2344_v46 = vadd.f32 %v2343_v49, %v5375_v36  ;;  %v2418_v1 = vmax.f32 %v2352_v60, 0.0 }
 0x3c5   : > { %v2416_v18 = vmax.f32 %v2344_v46, 0.0  ;;  %v2450_v22 = vpack.c.bf16 %v2418_v1, %v2417_v19 }
 0x3c7   : > { %v2449_v53 = vpack.c.bf16 %v2416_v18, %v2415_v16  ;;  %v6003_v18 = vmax.f32 %v4868_v56, 0.0  ;;  %v6005_v56 = vmax.f32 %v4890_v21, 0.0 }
 0x3c9   : > { %4018 = vmatprep.mubr.bf16.mxu0 %v2449_v53 }
 0x3ca   : > { %4019 = vmatmul.mubr.bf16.gmra.mxu0 %v2450_v22 }
 0x412   : > { %v3960_v63 = vpop.f32.mrf.mxu0 }
 0x413   : > { %v2566_v2 = vadd.f32 %v3960_v63, %v5445_v43 }
 0x414   : > { %v2557_v54 = vpop.f32.mrf.mxu0 }
 0x415   : > { %v2558_v36 = vadd.f32 %v2557_v54, %v5445_v43  ;;  %v2814_v1 = vadd.f32 %v2566_v2, %v6002_v50 }
 0x416   : > { %v3961_v40 = vpop.f32.mrf.mxu0 }
 0x417   : > { %v2569_v27 = vadd.f32 %v3961_v40, %v5445_v43  ;;  %v2812_v60 = vadd.f32 %v2558_v36, %v6000_v11  ;;  %v2878_v54 = vmax.f32 %v2814_v1, 0.0  ;;  %v6007_v1 = vmax.f32 %v4906_v9, 0.0 }
 0x418   : > { %v2560_v47 = vpop.f32.mrf.mxu0 }
 0x419   : > { %v2815_v49 = vadd.f32 %v2569_v27, %v6001_v5  ;;  %v2561_v46 = vadd.f32 %v2560_v47, %v5445_v43  ;;  %v2876_v15 = vmax.f32 %v2812_v60, 0.0  ;;  %v6004_v27 = vmax.f32 %v4899_v6, 0.0 }
 0x41a   : > { %v3964_v16 = vpop.f32.mrf.mxu0  ;;  %v6006_v60 = vmax.f32 %v4894_v31, 0.0 }
 0x41b   : > { %v2813_v19 = vadd.f32 %v2561_v46, %v6003_v18  ;;  %v2879_v53 = vmax.f32 %v2815_v49, 0.0  ;;  %v2582_v22 = vadd.f32 %v3964_v16, %v5445_v43 }
 0x41c   : > { %v2573_v57 = vpop.f32.mrf.mxu0 }
 0x41d   : > { %v2877_v63 = vmax.f32 %v2813_v19, 0.0  ;;  %v2574_v44 = vadd.f32 %v2573_v57, %v5445_v43  ;;  %v2947_v40 = vmax.f32 %v2878_v54, %v2879_v53  ;;  %v2818_v52 = vadd.f32 %v2582_v22, %v6004_v27 }
 0x41e   : > { %v3965_v7 = vpop.f32.mrf.mxu0 }
 0x41f   : > { %v2940_v36 = vmax.f32 %v2876_v15, %v2877_v63  ;;  %v2585_v2 = vadd.f32 %v3965_v7, %v5445_v43  ;;  %v2816_v11 = vadd.f32 %v2574_v44, %v6005_v56  ;;  %v2948_v18 = vrot.slane %v2947_v40, 4 }
 0x420   : > { %v2576_v47 = vpop.f32.mrf.mxu0  ;;  %v2882_v19 = vmax.f32 %v2818_v52, 0.0 }
 0x421   : > { %v2577_v5 = vadd.f32 %v2576_v47, %v5445_v43  ;;  %v2941_v49 = vrot.slane %v2940_v36, 4  ;;  %v2819_v46 = vadd.f32 %v2585_v2, %v6006_v60  ;;  %v2880_v57 = vmax.f32 %v2816_v11, 0.0 }
 0x422   : > { %v3968_v50 = vpop.f32.mrf.mxu0  ;;  %v2949_v31 = vmax.f32 %v2947_v40, %v2948_v18  ;;  %v6008_v2 = vmax.f32 %v4937_v55, 0.0  ;;  %v6011_v40 = vmax.f32 %v4941_v28, 0.0 }
 0x423   : > { %v2817_v16 = vadd.f32 %v2577_v5, %v6007_v1  ;;  %v2883_v6 = vmax.f32 %v2819_v46, 0.0  ;;  %v2598_v53 = vadd.f32 %v3968_v50, %v5445_v43  ;;  %v2942_v21 = vmax.f32 %v2940_v36, %v2941_v49 }
 0x424   : > { %v2589_v22 = vpop.f32.mrf.mxu0  ;;  %v6009_v5 = vmax.f32 %v4928_v13, 0.0  ;;  %v6010_v49 = vmax.f32 %v4932_v42, 0.0  ;;  %v2950_v18 = vrot.slane %v2949_v31, 2 }
 0x425   : > { %v2881_v15 = vmax.f32 %v2817_v16, 0.0  ;;  %v2961_v63 = vmax.f32 %v2882_v19, %v2883_v6  ;;  %v2590_v44 = vadd.f32 %v2589_v22, %v5445_v43  ;;  %v2822_v9 = vadd.f32 %v2598_v53, %v6008_v2 }
 0x426   : > { %v3969_v54 = vpop.f32.mrf.mxu0  ;;  %v2943_v36 = vrot.slane %v2942_v21, 2 }
 0x427   : > { %v2954_v7 = vmax.f32 %v2880_v57, %v2881_v15  ;;  %v2962_v27 = vrot.slane %v2961_v63, 4  ;;  %v2601_v47 = vadd.f32 %v3969_v54, %v5445_v43  ;;  %v2820_v60 = vadd.f32 %v2590_v44, %v6009_v5 }
 0x428   : > { %v2592_v52 = vpop.f32.mrf.mxu0  ;;  %v2886_v6 = vmax.f32 %v2822_v9, 0.0  ;;  %v2944_v44 = vmax.f32 %v2942_v21, %v2943_v36  ;;  %v6014_v21 = vmax.f32 %v4964_v37, 0.0 }
 0x429   : > { %v2955_v56 = vrot.slane %v2954_v7, 4  ;;  %v2593_v11 = vadd.f32 %v2592_v52, %v5445_v43  ;;  %v2823_v46 = vadd.f32 %v2601_v47, %v6010_v49  ;;  %v2963_v19 = vmax.f32 %v2961_v63, %v2962_v27 }
 0x42a   : > { %v3972_v50 = vpop.f32.mrf.mxu0  ;;  %v2884_v57 = vmax.f32 %v2820_v60, 0.0  ;;  %v6013_v60 = vmax.f32 %v4960_v41, 0.0 }
 0x42b   : > { %v2956_v1 = vmax.f32 %v2954_v7, %v2955_v56  ;;  %v2821_v16 = vadd.f32 %v2593_v11, %v6011_v40  ;;  %v2614_v55 = vadd.f32 %v3972_v50, %v5445_v43  ;;  %v2887_v53 = vmax.f32 %v2823_v46, 0.0 }
 0x42c   : > { %v2605_v22 = vpop.f32.mrf.mxu0  ;;  %v6012_v7 = vmax.f32 %v4969_v3, 0.0  ;;  %v2951_v56 = vmax.f32 %v2949_v31, %v2950_v18  ;;  %v2964_v5 = vrot.slane %v2963_v19, 2  ;;  %v2945_v50 = vrot.slane %v2944_v44, 1 }
 0x42d   : > { %v2957_v13 = vrot.slane %v2956_v1, 2  ;;  %v2885_v15 = vmax.f32 %v2821_v16, 0.0  ;;  %v2975_v54 = vmax.f32 %v2886_v6, %v2887_v53  ;;  %v2606_v42 = vadd.f32 %v2605_v22, %v5445_v43 }
 0x42e   : > { %v3973_v2 = vpop.f32.mrf.mxu0  ;;  %v2826_v28 = vadd.f32 %v2614_v55, %v6012_v7  ;;  %v6015_v55 = vmax.f32 %v4973_v20, 0.0  ;;  %v2952_v6 = vrot.slane %v2951_v56, 1  ;;  %v2965_v41 = vmax.f32 %v2963_v19, %v2964_v5 }
 0x42f   : > { %v2968_v47 = vmax.f32 %v2884_v57, %v2885_v15  ;;  %v2617_v52 = vadd.f32 %v3973_v2, %v5445_v43  ;;  %v2958_v63 = vmax.f32 %v2956_v1, %v2957_v13  ;;  %v2976_v27 = vrot.slane %v2975_v54, 4 }
 0x430   : > { %v2608_v9 = vpop.f32.mrf.mxu0  ;;  %v2824_v49 = vadd.f32 %v2606_v42, %v6013_v60  ;;  %v2890_v31 = vmax.f32 %v2826_v28, 0.0 }
 0x431   : > { %v2969_v11 = vrot.slane %v2968_v47, 4  ;;  %v2827_v36 = vadd.f32 %v2617_v52, %v6014_v21  ;;  %v2609_v46 = vadd.f32 %v2608_v9, %v5445_v43  ;;  %v2977_v3 = vmax.f32 %v2975_v54, %v2976_v27 }
 0x432   : > { %v3976_v40 = vpop.f32.mrf.mxu0  ;;  %v2959_v53 = vrot.slane %v2958_v63, 1  ;;  %v2888_v57 = vmax.f32 %v2824_v49, 0.0  ;;  %v2946_v54 = vmax.f32 %v2944_v44, %v2945_v50  ;;  %v2953_v9 = vmax.f32 %v2951_v56, %v2952_v6 }
 0x433   : > { %v2970_v16 = vmax.f32 %v2968_v47, %v2969_v11  ;;  %v2891_v1 = vmax.f32 %v2827_v36, 0.0  ;;  %v2825_v18 = vadd.f32 %v2609_v46, %v6015_v55  ;;  %v2630_v37 = vadd.f32 %v3976_v40, %v5445_v43 }
 0x434   : > { %v2621_v22 = vpop.f32.mrf.mxu0  ;;  %v2978_v2 = vrot.slane %v2977_v3, 2  ;;  %v6016_v47 = vmax.f32 %v5001_v32, 0.0  ;;  %v2966_v11 = vrot.slane %v2965_v41, 1  ;;  %v2960_v60 = vmax.f32 %v2958_v63, %v2959_v53 }
 0x435   : > { %v2971_v13 = vrot.slane %v2970_v16, 2  ;;  %v2989_v15 = vmax.f32 %v2890_v31, %v2891_v1  ;;  %v2889_v42 = vmax.f32 %v2825_v18, 0.0  ;;  %v2622_v19 = vadd.f32 %v2621_v22, %v5445_v43 }
 0x436   : > { %v2830_v20 = vadd.f32 %v2630_v37, %v6016_v47  ;;  %v3977_v7 = vpop.f32.mrf.mxu0  ;;  %v6017_v32 = vmax.f32 %v4996_v29, 0.0  ;;  %v3197_v50 = vsel %vm3196_vm3, %v2953_v9, %v2946_v54  ;;  %v2979_v40 = vmax.f32 %v2977_v3, %v2978_v2 }
 0x437   : > { %v2972_v28 = vmax.f32 %v2970_v16, %v2971_v13  ;;  %v2990_v52 = vrot.slane %v2989_v15, 4  ;;  %v2982_v5 = vmax.f32 %v2888_v57, %v2889_v42  ;;  %v2633_v27 = vadd.f32 %v3977_v7, %v5445_v43 }
 0x438   : > { %v2624_v44 = vpop.f32.mrf.mxu0  ;;  %v6018_v16 = vmax.f32 %v4992_v38, 0.0  ;;  %v2894_v18 = vmax.f32 %v2830_v20, 0.0  ;;  %v3199_v53 = vsel %vm3198_vm4, %v2960_v60, %v3197_v50  ;;  %v6019_v29 = vmax.f32 %v5005_v48, 0.0 }
 0x439   : > { %v2973_v49 = vrot.slane %v2972_v28, 1  ;;  %v2991_v21 = vmax.f32 %v2989_v15, %v2990_v52  ;;  %v2983_v36 = vrot.slane %v2982_v5, 4  ;;  %v2831_v46 = vadd.f32 %v2633_v27, %v6017_v32 }
 0x43a   : > { %v2828_v56 = vadd.f32 %v2622_v19, %v6018_v16  ;;  %v2625_v63 = vadd.f32 %v2624_v44, %v5445_v43  ;;  %v3980_v31 = vpop.f32.mrf.mxu0  ;;  %v2967_v3 = vmax.f32 %v2965_v41, %v2966_v11  ;;  %v2980_v54 = vrot.slane %v2979_v40, 1 }
 0x43b   : > { %v2992_v1 = vrot.slane %v2991_v21, 2  ;;  %v2984_v55 = vmax.f32 %v2982_v5, %v2983_v36  ;;  %v2895_v6 = vmax.f32 %v2831_v46, 0.0  ;;  %v2974_v37 = vmax.f32 %v2972_v28, %v2973_v49 }
 0x43c   : > { %v2829_v22 = vadd.f32 %v2625_v63, %v6019_v29  ;;  %v2646_v13 = vadd.f32 %v3980_v31, %v5445_v43  ;;  %v2637_v57 = vpop.f32.mrf.mxu0  ;;  %v2892_v2 = vmax.f32 %v2828_v56, 0.0  ;;  %v3201_v48 = vsel %vm3200_vm5, %v2967_v3, %v3199_v53 }
 0x43d   : > { %v2993_v15 = vmax.f32 %v2991_v21, %v2992_v1  ;;  %v2985_v38 = vrot.slane %v2984_v55, 2  ;;  %v3003_v42 = vmax.f32 %v2894_v18, %v2895_v6  ;;  %v2638_v20 = vadd.f32 %v2637_v57, %v5445_v43 }
 0x43e   : > { %v2893_v47 = vmax.f32 %v2829_v22, 0.0  ;;  %v3981_v19 = vpop.f32.mrf.mxu0  ;;  %v6020_v28 = vmax.f32 %v5033_v61, 0.0  ;;  %v3203_v5 = vsel %vm3202_vm6, %v2974_v37, %v3201_v48  ;;  %v6021_v49 = vmax.f32 %v5024_v8, 0.0 }
 0x43f   : > { %v2986_v7 = vmax.f32 %v2984_v55, %v2985_v38  ;;  %v2649_v41 = vadd.f32 %v3981_v19, %v5445_v43  ;;  %v2994_v27 = vrot.slane %v2993_v15, 1  ;;  %v3004_v44 = vrot.slane %v3003_v42, 4 }
 0x440   : > { %v2834_v52 = vadd.f32 %v2646_v13, %v6020_v28  ;;  %v2996_v9 = vmax.f32 %v2892_v2, %v2893_v47  ;;  %v2640_v11 = vpop.f32.mrf.mxu0  ;;  %v2832_v21 = vadd.f32 %v2638_v20, %v6021_v49  ;;  %v6022_v36 = vmax.f32 %v5028_v10, 0.0 }
 0x441   : > { %v2987_v60 = vrot.slane %v2986_v7, 1  ;;  %v2981_v46 = vmax.f32 %v2979_v40, %v2980_v54  ;;  %v2641_v50 = vadd.f32 %v2640_v11, %v5445_v43  ;;  %v2995_v55 = vmax.f32 %v2993_v15, %v2994_v27 }
 0x442   : > { %v2835_v32 = vadd.f32 %v2649_v41, %v6022_v36  ;;  %v2997_v61 = vrot.slane %v2996_v9, 4  ;;  %v3984_v16 = vpop.f32.mrf.mxu0  ;;  %v2898_v63 = vmax.f32 %v2834_v52, 0.0  ;;  %v6023_v10 = vmax.f32 %v5037_v58, 0.0 }
 0x443   : > { %v2988_v56 = vmax.f32 %v2986_v7, %v2987_v60  ;;  %v2662_v1 = vadd.f32 %v3984_v16, %v5445_v43  ;;  %v3205_v8 = vsel %vm3204_vm7, %v2981_v46, %v3203_v5  ;;  %v3005_v53 = vmax.f32 %v3003_v42, %v3004_v44 }
 0x444   : > { %v2899_v31 = vmax.f32 %v2835_v32, 0.0  ;;  %v2833_v40 = vadd.f32 %v2641_v50, %v6023_v10  ;;  %v2653_v18 = vpop.f32.mrf.mxu0  ;;  %v2896_v37 = vmax.f32 %v2832_v21, 0.0  ;;  %v2998_v13 = vmax.f32 %v2996_v9, %v2997_v61 }
 0x445   : > { %v3207_v6 = vsel %vm3206_vm8, %v2988_v56, %v3205_v8  ;;  %v2654_v3 = vadd.f32 %v2653_v18, %v5445_v43  ;;  %v6024_v54 = vmax.f32 %v5065_v14, 0.0  ;;  %v6025_v42 = vmax.f32 %v5056_v12, 0.0 }
 0x446   : > { %v3017_v29 = vmax.f32 %v2898_v63, %v2899_v31  ;;  %v3209_v22 = vsel %vm3208_vm9, %v2995_v55, %v3207_v6  ;;  %v2897_v57 = vmax.f32 %v2833_v40, 0.0  ;;  %v3985_v15 = vpop.f32.mrf.mxu0  ;;  %v6026_v48 = vmax.f32 %v5060_v51, 0.0 }
 0x447   : > { %3235 = vst [vmem:[%s5536_s28] sm:$0xff] %v3209_v22  ;;  %v2838_v2 = vadd.f32 %v2662_v1, %v6024_v54  ;;  %v2665_v58 = vadd.f32 %v3985_v15, %v5445_v43  ;;  %v2836_v19 = vadd.f32 %v2654_v3, %v6025_v42  ;;  %v3006_v52 = vrot.slane %v3005_v53, 2 }
 0x448   : > { %v3018_v38 = vrot.slane %v3017_v29, 4  ;;  %v3010_v47 = vmax.f32 %v2896_v37, %v2897_v57  ;;  %v2656_v20 = vpop.f32.mrf.mxu0  ;;  %v2999_v41 = vrot.slane %v2998_v13, 2  ;;  %v6027_v60 = vmax.f32 %v5069_v33, 0.0 }
 0x449   : > { %v2839_v7 = vadd.f32 %v2665_v58, %v6026_v48  ;;  %v2657_v28 = vadd.f32 %v2656_v20, %v5445_v43  ;;  %v2902_v11 = vmax.f32 %v2838_v2, 0.0  ;;  %v2900_v36 = vmax.f32 %v2836_v19, 0.0 }
 0x44a   : > { %v3011_v5 = vrot.slane %v3010_v47, 4  ;;  %v3988_v27 = vpop.f32.mrf.mxu0  ;;  %v3019_v9 = vmax.f32 %v3017_v29, %v3018_v38  ;;  %v3000_v46 = vmax.f32 %v2998_v13, %v2999_v41  ;;  %v3007_v56 = vmax.f32 %v3005_v53, %v3006_v52 }
 0x44b   : > { %v2903_v14 = vmax.f32 %v2839_v7, 0.0  ;;  %v2837_v44 = vadd.f32 %v2657_v28, %v6027_v60  ;;  %v2678_v21 = vadd.f32 %v3988_v27, %v5445_v43  ;;  %v6028_v33 = vmax.f32 %v5097_v30, 0.0 }
 0x44c   : > { %v3012_v49 = vmax.f32 %v3010_v47, %v3011_v5  ;;  %v2669_v12 = vpop.f32.mrf.mxu0  ;;  %v3020_v63 = vrot.slane %v3019_v9, 2  ;;  %v6029_v37 = vmax.f32 %v5088_v25, 0.0  ;;  %v3001_v13 = vrot.slane %v3000_v46, 1 }
 0x44d   : > { %v3031_v32 = vmax.f32 %v2902_v11, %v2903_v14  ;;  %v2901_v51 = vmax.f32 %v2837_v44, 0.0  ;;  %v2670_v50 = vadd.f32 %v2669_v12, %v5445_v43  ;;  %v2842_v8 = vadd.f32 %v2678_v21, %v6028_v33 }
 0x44e   : > { %v3013_v61 = vrot.slane %v3012_v49, 2  ;;  %v3989_v16 = vpop.f32.mrf.mxu0  ;;  %v6030_v53 = vmax.f32 %v5092_v17, 0.0  ;;  %v3008_v15 = vrot.slane %v3007_v56, 1  ;;  %v3021_v38 = vmax.f32 %v3019_v9, %v3020_v63 }
 0x44f   : > { %v3032_v31 = vrot.slane %v3031_v32, 4  ;;  %v3024_v1 = vmax.f32 %v2900_v36, %v2901_v51  ;;  %v2681_v10 = vadd.f32 %v3989_v16, %v5445_v43  ;;  %v2840_v29 = vadd.f32 %v2670_v50, %v6029_v37 }
 0x450   : > { %v3014_v55 = vmax.f32 %v3012_v49, %v3013_v61  ;;  %v2672_v40 = vpop.f32.mrf.mxu0  ;;  %v6031_v30 = vmax.f32 %v5101_v45, 0.0  ;;  %v2906_v20 = vmax.f32 %v2842_v8, 0.0  ;;  %v3002_v52 = vmax.f32 %v3000_v46, %v3001_v13 }
 0x451   : > { %v3033_v18 = vmax.f32 %v3031_v32, %v3032_v31  ;;  %v3025_v6 = vrot.slane %v3024_v1, 4  ;;  %v2673_v22 = vadd.f32 %v2672_v40, %v5445_v43  ;;  %v2843_v57 = vadd.f32 %v2681_v10, %v6030_v53 }
 0x452   : > { %v3992_v3 = vpop.f32.mrf.mxu0  ;;  %v3015_v58 = vrot.slane %v3014_v55, 1  ;;  %v2904_v48 = vmax.f32 %v2840_v29, 0.0  ;;  %v3009_v27 = vmax.f32 %v3007_v56, %v3008_v15  ;;  %v3022_v9 = vrot.slane %v3021_v38, 1 }
 0x453   : > { %v3026_v54 = vmax.f32 %v3024_v1, %v3025_v6  ;;  %v2841_v2 = vadd.f32 %v2673_v22, %v6031_v30  ;;  %v3034_v47 = vrot.slane %v3033_v18, 2  ;;  %v2907_v42 = vmax.f32 %v2843_v57, 0.0 }
 0x454   : > { %v2685_v19 = vpop.f32.mrf.mxu0  ;;  %v2694_v28 = vadd.f32 %v3992_v3, %v5445_v43  ;;  %v3016_v14 = vmax.f32 %v3014_v55, %v3015_v58  ;;  %v6032_v32 = vmax.f32 %v5129_v23, 0.0  ;;  %v3210_v61 = vsel %vm3196_vm3, %v3009_v27, %v3002_v52 }
 0x455   : > { %v3027_v25 = vrot.slane %v3026_v54, 2  ;;  %v2905_v7 = vmax.f32 %v2841_v2, 0.0  ;;  %v3045_v17 = vmax.f32 %v2906_v20, %v2907_v42  ;;  %v2686_v41 = vadd.f32 %v2685_v19, %v5445_v43 }
 0x456   : > { %v3993_v5 = vpop.f32.mrf.mxu0  ;;  %v3035_v60 = vmax.f32 %v3033_v18, %v3034_v47  ;;  %v2846_v51 = vadd.f32 %v2694_v28, %v6032_v32  ;;  %v6033_v16 = vmax.f32 %v5120_v26, 0.0  ;;  %v6034_v63 = vmax.f32 %v5124_v4, 0.0 }
 0x457   : > { %v3028_v11 = vmax.f32 %v3026_v54, %v3027_v25  ;;  %v3038_v45 = vmax.f32 %v2904_v48, %v2905_v7  ;;  %v3046_v44 = vrot.slane %v3045_v17, 4  ;;  %v2697_v49 = vadd.f32 %v3993_v5, %v5445_v43 }
 0x458   : > { %v2688_v21 = vpop.f32.mrf.mxu0  ;;  %v2844_v56 = vadd.f32 %v2686_v41, %v6033_v16  ;;  %v3023_v55 = vmax.f32 %v3021_v38, %v3022_v9  ;;  %v6035_v8 = vmax.f32 %v5133_v59, 0.0  ;;  %v3211_v40 = vsel %vm3198_vm4, %v3016_v14, %v3210_v61 }
 0x459   : > { %v3029_v12 = vrot.slane %v3028_v11, 1  ;;  %v3039_v36 = vrot.slane %v3038_v45, 4  ;;  %v2689_v46 = vadd.f32 %v2688_v21, %v5445_v43  ;;  %v3047_v50 = vmax.f32 %v3045_v17, %v3046_v44 }
 0x45a   : > { %v2847_v31 = vadd.f32 %v2697_v49, %v6034_v63  ;;  %v3996_v1 = vpop.f32.mrf.mxu0  ;;  %v3036_v22 = vrot.slane %v3035_v60, 1  ;;  %v2910_v13 = vmax.f32 %v2846_v51, 0.0  ;;  %v2908_v57 = vmax.f32 %v2844_v56, 0.0 }
 0x45b   : > { %v3040_v33 = vmax.f32 %v3038_v45, %v3039_v36  ;;  %v2845_v10 = vadd.f32 %v2689_v46, %v6035_v8  ;;  %v2710_v23 = vadd.f32 %v3996_v1, %v5445_v43  ;;  %v3030_v18 = vmax.f32 %v3028_v11, %v3029_v12  ;;  %v6039_v45 = vld [vmem:[#allocation3_spill] sm:$0xff] }
 0x45c   : > { %v3048_v6 = vrot.slane %v3047_v50, 2  ;;  %v2911_v37 = vmax.f32 %v2847_v31, 0.0  ;;  %v2701_v29 = vpop.f32.mrf.mxu0  ;;  %v6036_v3 = vmax.f32 %v5161_v35, 0.0  ;;  %v3212_v54 = vsel %vm3200_vm5, %v3023_v55, %v3211_v40 }
 0x45d   : > { %v3041_v26 = vrot.slane %v3040_v33, 2  ;;  %v2909_v53 = vmax.f32 %v2845_v10, 0.0  ;;  %v2702_v59 = vadd.f32 %v2701_v29, %v5445_v43  ;;  %v3213_v47 = vsel %vm3202_vm6, %v3030_v18, %v3212_v54 }
 0x45e   : > { %v3049_v4 = vmax.f32 %v3047_v50, %v3048_v6  ;;  %v2850_v15 = vadd.f32 %v2710_v23, %v6036_v3  ;;  %v3997_v38 = vpop.f32.mrf.mxu0  ;;  %v3059_v2 = vmax.f32 %v2910_v13, %v2911_v37  ;;  %v6037_v48 = vmax.f32 %v5152_v24, 0.0  ;;  %v6042_v23 = vld [vmem:[#allocation4_spill] sm:$0xff]  ;;  %v6044_v6 = vld [vmem:[#allocation2_spill] sm:$0xff]  ;;  %v6046_v3 = vld [vmem:[#allocation5_spill] sm:$0xff] }
 0x45f   : > { %v3042_v30 = vmax.f32 %v3040_v33, %v3041_v26  ;;  %v2713_v58 = vadd.f32 %v3997_v38, %v5445_v43  ;;  %v3052_v42 = vmax.f32 %v2908_v57, %v2909_v53  ;;  %v6038_v35 = vmax.f32 %v5156_v34, 0.0 }
 0x460   : > { %v3050_v20 = vrot.slane %v3049_v4, 1  ;;  %v2704_v19 = vpop.f32.mrf.mxu0  ;;  %v2848_v7 = vadd.f32 %v2702_v59, %v6037_v48  ;;  %v3037_v17 = vmax.f32 %v3035_v60, %v3036_v22  ;;  %v2914_v41 = vmax.f32 %v2850_v15, 0.0 }
 0x461   : > { %v3043_v25 = vrot.slane %v3042_v30, 1  ;;  %v2851_v28 = vadd.f32 %v2713_v58, %v6038_v35  ;;  %v2705_v52 = vadd.f32 %v2704_v19, %v5445_v43  ;;  %v3060_v9 = vrot.slane %v3059_v2, 4 }
 0x462   : > { %v4000_v5 = vpop.f32.mrf.mxu0  ;;  %v6040_v14 = vmax.f32 %v6039_v45, 0.0  ;;  %v3051_v49 = vmax.f32 %v3049_v4, %v3050_v20  ;;  %v3214_v21 = vsel %vm3204_vm7, %v3037_v17, %v3213_v47  ;;  %v3053_v24 = vrot.slane %v3052_v42, 4 }
 0x463   : > { %v3044_v27 = vmax.f32 %v3042_v30, %v3043_v25  ;;  %v2915_v11 = vmax.f32 %v2851_v28, 0.0  ;;  %v2726_v12 = vadd.f32 %v4000_v5, %v5445_v43  ;;  %v2912_v32 = vmax.f32 %v2848_v7, 0.0 }
 0x464   : > { %v2849_v44 = vadd.f32 %v2705_v52, %v6040_v14  ;;  %v2717_v34 = vpop.f32.mrf.mxu0  ;;  %v3061_v16 = vmax.f32 %v3059_v2, %v3060_v9  ;;  %v6041_v63 = vmax.f32 %v5193_v39, 0.0  ;;  %v3054_v55 = vmax.f32 %v3052_v42, %v3053_v24  ;;  %v6049_v9 = vld [vmem:[#allocation7_spill] sm:$0xff] }
 0x465   : > { %v3215_v36 = vsel %vm3206_vm8, %v3044_v27, %v3214_v21  ;;  %v3073_v60 = vmax.f32 %v2914_v41, %v2915_v11  ;;  %v2718_v61 = vadd.f32 %v2717_v34, %v5445_v43  ;;  %v6043_v40 = vmax.f32 %v6042_v23, 0.0 }
 0x466   : > { %v2913_v51 = vmax.f32 %v2849_v44, 0.0  ;;  %v3216_v46 = vsel %vm3208_vm9, %v3051_v49, %v3215_v36  ;;  %v4001_v50 = vpop.f32.mrf.mxu0  ;;  %v2854_v31 = vadd.f32 %v2726_v12, %v6041_v63  ;;  %v6045_v37 = vmax.f32 %v6044_v6, 0.0  ;;  %v6051_v44 = vld [vmem:[#allocation6_spill] sm:$0xff] }
 0x467   : > { %3236 = vst [vmem:[%s5536_s28 + $0x8] sm:$0xff] %v3216_v46  ;;  %v2729_v1 = vadd.f32 %v4001_v50, %v5445_v43  ;;  %v3074_v8 = vrot.slane %v3073_v60, 4  ;;  %v3062_v13 = vrot.slane %v3061_v16, 2  ;;  %v3055_v57 = vrot.slane %v3054_v55, 2  ;;  %v6053_v46 = vld [vmem:[#allocation11_spill] sm:$0xff] }
 0x468   : > { %v3066_v56 = vmax.f32 %v2912_v32, %v2913_v51  ;;  %v2720_v33 = vpop.f32.mrf.mxu0  ;;  %v2852_v29 = vadd.f32 %v2718_v61, %v6045_v37  ;;  %v2918_v4 = vmax.f32 %v2854_v31, 0.0  ;;  %v6047_v15 = vmax.f32 %v6046_v3, 0.0 }
 0x469   : > { %v2855_v18 = vadd.f32 %v2729_v1, %v6043_v40  ;;  %v2721_v22 = vadd.f32 %v2720_v33, %v5445_v43  ;;  %v3075_v30 = vmax.f32 %v3073_v60, %v3074_v8  ;;  %v3063_v25 = vmax.f32 %v3061_v16, %v3062_v13 }
 0x46a   : > { %v3067_v10 = vrot.slane %v3066_v56, 4  ;;  %v4004_v26 = vpop.f32.mrf.mxu0  ;;  %v2916_v47 = vmax.f32 %v2852_v29, 0.0  ;;  %v6048_v7 = vmax.f32 %v5225_v62, 0.0  ;;  %v3056_v52 = vmax.f32 %v3054_v55, %v3055_v57 }
 0x46b   : > { %v2919_v39 = vmax.f32 %v2855_v18, 0.0  ;;  %v2853_v59 = vadd.f32 %v2721_v22, %v6047_v15  ;;  %v2742_v38 = vadd.f32 %v4004_v26, %v5445_v43  ;;  %v3076_v5 = vrot.slane %v3075_v30, 2 }
 0x46c   : > { %v3068_v53 = vmax.f32 %v3066_v56, %v3067_v10  ;;  %v2733_v54 = vpop.f32.mrf.mxu0  ;;  %v6050_v11 = vmax.f32 %v6049_v9, 0.0  ;;  %v6052_v49 = vmax.f32 %v6051_v44, 0.0  ;;  %v3064_v34 = vrot.slane %v3063_v25, 1 }
 0x46d   : > { %v3087_v58 = vmax.f32 %v2918_v4, %v2919_v39  ;;  %v2917_v20 = vmax.f32 %v2853_v59, 0.0  ;;  %v2734_v42 = vadd.f32 %v2733_v54, %v5445_v43  ;;  %v2858_v35 = vadd.f32 %v2742_v38, %v6048_v7  ;;  %v6055_v39 = vld [vmem:[#allocation8_spill] sm:$0xff] }
 0x46e   : > { %v3069_v2 = vrot.slane %v3068_v53, 2  ;;  %v4005_v19 = vpop.f32.mrf.mxu0  ;;  %v3057_v60 = vrot.slane %v3056_v52, 1  ;;  %v6054_v61 = vmax.f32 %v6053_v46, 0.0  ;;  %v3077_v56 = vmax.f32 %v3075_v30, %v3076_v5  ;;  %v6057_v30 = vld [vmem:[#allocation9_spill] sm:$0xff] }
 0x46f   : > { %v3088_v48 = vrot.slane %v3087_v58, 4  ;;  %v2745_v28 = vadd.f32 %v4005_v19, %v5445_v43  ;;  %v3080_v17 = vmax.f32 %v2916_v47, %v2917_v20  ;;  %v2856_v21 = vadd.f32 %v2734_v42, %v6052_v49  ;;  %v6059_v19 = vld [vmem:[#allocation10_spill] sm:$0xff] }
 0x470   : > { %v2736_v41 = vpop.f32.mrf.mxu0  ;;  %v3070_v27 = vmax.f32 %v3068_v53, %v3069_v2  ;;  %v2922_v36 = vmax.f32 %v2858_v35, 0.0  ;;  %v3065_v23 = vmax.f32 %v3063_v25, %v3064_v34  ;;  %v3058_v37 = vmax.f32 %v3056_v52, %v3057_v60  ;;  %v6061_v52 = vld [vmem:[#allocation24_spill] sm:$0xff] }
 0x471   : > { %v2859_v45 = vadd.f32 %v2745_v28, %v6050_v11  ;;  %v3081_v14 = vrot.slane %v3080_v17, 4  ;;  %v2737_v24 = vadd.f32 %v2736_v41, %v5445_v43  ;;  %v3089_v62 = vmax.f32 %v3087_v58, %v3088_v48 }
 0x472   : > { %v4008_v12 = vpop.f32.mrf.mxu0  ;;  %v3071_v63 = vrot.slane %v3070_v27, 1  ;;  %v2920_v55 = vmax.f32 %v2856_v21, 0.0  ;;  %v6056_v57 = vmax.f32 %v6055_v39, 0.0  ;;  %v3078_v59 = vrot.slane %v3077_v56, 1 }
 0x473   : > { %v2923_v32 = vmax.f32 %v2859_v45, 0.0  ;;  %v3082_v51 = vmax.f32 %v3080_v17, %v3081_v14  ;;  %v2857_v50 = vadd.f32 %v2737_v24, %v6054_v61  ;;  %v3090_v40 = vrot.slane %v3089_v62, 2 }
 0x474   : > { %v2749_v16 = vpop.f32.mrf.mxu0  ;;  %v2758_v26 = vadd.f32 %v4008_v12, %v5445_v43  ;;  %v3072_v53 = vmax.f32 %v3070_v27, %v3071_v63  ;;  %v6058_v2 = vmax.f32 %v6057_v30, 0.0  ;;  %v6060_v25 = vmax.f32 %v6059_v19, 0.0 }
 0x475   : > { %v3101_v31 = vmax.f32 %v2922_v36, %v2923_v32  ;;  %v3083_v1 = vrot.slane %v3082_v51, 2  ;;  %v2921_v33 = vmax.f32 %v2857_v50, 0.0  ;;  %v2750_v8 = vadd.f32 %v2749_v16, %v5445_v43 }
 0x476   : > { %v4009_v10 = vpop.f32.mrf.mxu0  ;;  %v3091_v20 = vmax.f32 %v3089_v62, %v3090_v40  ;;  %v3217_v35 = vsel %vm3196_vm3, %v3065_v23, %v3058_v37  ;;  %v6062_v17 = vmax.f32 %v6061_v52, 0.0  ;;  %v3079_v12 = vmax.f32 %v3077_v56, %v3078_v59  ;;  %v6063_v62 = vld [vmem:[#allocation16_spill] sm:$0xff]  ;;  %v6067_v23 = vld [vmem:[#allocation17_spill] sm:$0xff] }
 0x477   : > { %v3102_v18 = vrot.slane %v3101_v31, 4  ;;  %v2761_v6 = vadd.f32 %v4009_v10, %v5445_v43  ;;  %v3084_v29 = vmax.f32 %v3082_v51, %v3083_v1  ;;  %v3094_v22 = vmax.f32 %v2920_v55, %v2921_v33 }
 0x478   : > { %v2752_v13 = vpop.f32.mrf.mxu0  ;;  %v2860_v3 = vadd.f32 %v2750_v8, %v6056_v57  ;;  %v2862_v41 = vadd.f32 %v2758_v26, %v6062_v17  ;;  %v3218_v27 = vsel %vm3198_vm4, %v3072_v53, %v3217_v35  ;;  %v3092_v34 = vrot.slane %v3091_v20, 1  ;;  %v6072_v17 = vld [vmem:[#allocation14_spill] sm:$0xff] }
 0x479   : > { %v3103_v4 = vmax.f32 %v3101_v31, %v3102_v18  ;;  %v2753_v15 = vadd.f32 %v2752_v13, %v5445_v43  ;;  %v3085_v38 = vrot.slane %v3084_v29, 1  ;;  %v3095_v54 = vrot.slane %v3094_v22, 4  ;;  %v6065_v31 = vld [vmem:[#allocation12_spill] sm:$0xff] }
 0x47a   : > { %v2863_v58 = vadd.f32 %v2761_v6, %v6058_v2  ;;  %v4012_v47 = vpop.f32.mrf.mxu0  ;;  %v2924_v11 = vmax.f32 %v2860_v3, 0.0  ;;  %v6064_v36 = vmax.f32 %v6063_v62, 0.0  ;;  %v2926_v51 = vmax.f32 %v2862_v41, 0.0 }
 0x47b   : > { %v3104_v42 = vrot.slane %v3103_v4, 2  ;;  %v2861_v48 = vadd.f32 %v2753_v15, %v6060_v25  ;;  %v2774_v7 = vadd.f32 %v4012_v47, %v5445_v43  ;;  %v3096_v28 = vmax.f32 %v3094_v22, %v3095_v54  ;;  %v6069_v22 = vld [vmem:[#allocation13_spill] sm:$0xff] }
 0x47c   : > { %v2765_v5 = vpop.f32.mrf.mxu0  ;;  %v3086_v14 = vmax.f32 %v3084_v29, %v3085_v38  ;;  %v2927_v49 = vmax.f32 %v2863_v58, 0.0  ;;  %v3219_v16 = vsel %vm3200_vm5, %v3079_v12, %v3218_v27  ;;  %v6066_v1 = vmax.f32 %v6065_v31, 0.0 }
 0x47d   : > { %v3105_v9 = vmax.f32 %v3103_v4, %v3104_v42  ;;  %v2925_v45 = vmax.f32 %v2861_v48, 0.0  ;;  %v3097_v44 = vrot.slane %v3096_v28, 2  ;;  %v2766_v21 = vadd.f32 %v2765_v5, %v5445_v43 }
 0x47e   : > { %v4013_v24 = vpop.f32.mrf.mxu0  ;;  %v2866_v32 = vadd.f32 %v2774_v7, %v6064_v36  ;;  %v3220_v56 = vsel %vm3202_vm6, %v3086_v14, %v3219_v16  ;;  %v3115_v10 = vmax.f32 %v2926_v51, %v2927_v49  ;;  %v6068_v40 = vmax.f32 %v6067_v23, 0.0 }
 0x47f   : > { %v3098_v60 = vmax.f32 %v3096_v28, %v3097_v44  ;;  %v3108_v46 = vmax.f32 %v2924_v11, %v2925_v45  ;;  %v2777_v61 = vadd.f32 %v4013_v24, %v5445_v43  ;;  %v3106_v63 = vrot.slane %v3105_v9, 1  ;;  %v6074_v45 = vld [vmem:[#allocation21_spill] sm:$0xff]  ;;  %v6076_v24 = vld [vmem:[#allocation20_spill] sm:$0xff] }
 0x480   : > { %v2768_v50 = vpop.f32.mrf.mxu0  ;;  %v2864_v55 = vadd.f32 %v2766_v21, %v6066_v1  ;;  %v3093_v37 = vmax.f32 %v3091_v20, %v3092_v34  ;;  %v2930_v29 = vmax.f32 %v2866_v32, 0.0  ;;  %v6070_v26 = vmax.f32 %v6069_v22, 0.0 }
 0x481   : > { %v2769_v33 = vadd.f32 %v2768_v50, %v5445_v43  ;;  %v3099_v8 = vrot.slane %v3098_v60, 1  ;;  %v2867_v18 = vadd.f32 %v2777_v61, %v6068_v40  ;;  %v3109_v4 = vrot.slane %v3108_v46, 4 }
 0x482   : > { %v4016_v6 = vpop.f32.mrf.mxu0  ;;  %v3107_v15 = vmax.f32 %v3105_v9, %v3106_v63  ;;  %v3221_v59 = vsel %vm3204_vm7, %v3093_v37, %v3220_v56  ;;  %v2928_v38 = vmax.f32 %v2864_v55, 0.0  ;;  %v3116_v2 = vrot.slane %v3115_v10, 4 }
 0x483   : > { %v2865_v13 = vadd.f32 %v2769_v33, %v6070_v26  ;;  %v3100_v53 = vmax.f32 %v3098_v60, %v3099_v8  ;;  %v2931_v39 = vmax.f32 %v2867_v18, 0.0  ;;  %v2790_v57 = vadd.f32 %v4016_v6, %v5445_v43  ;;  %v6078_v33 = vld [vmem:[#allocation23_spill] sm:$0xff] }
 0x484   : > { %v2781_v3 = vpop.f32.mrf.mxu0  ;;  %v3110_v25 = vmax.f32 %v3108_v46, %v3109_v4  ;;  %v6071_v48 = vmax.f32 %v5321_v0, 0.0  ;;  %v6073_v41 = vmax.f32 %v6072_v17, 0.0  ;;  %v3117_v9 = vmax.f32 %v3115_v10, %v3116_v2 }
 0x485   : > { %v2929_v54 = vmax.f32 %v2865_v13, 0.0  ;;  %v3222_v30 = vsel %vm3206_vm8, %v3100_v53, %v3221_v59  ;;  %v3129_v58 = vmax.f32 %v2930_v29, %v2931_v39  ;;  %v2782_v47 = vadd.f32 %v2781_v3, %v5445_v43  ;;  %v6080_v29 = vld [vmem:[#allocation15_spill] sm:$0xff]  ;;  %v6082_v13 = vld [vmem:[#allocation18_spill] sm:$0xff] }
 0x486   : > { %v4017_v20 = vpop.f32.mrf.mxu0  ;;  %v3223_v42 = vsel %vm3208_vm9, %v3107_v15, %v3222_v30  ;;  %v2870_v7 = vadd.f32 %v2790_v57, %v6071_v48  ;;  %v6075_v14 = vmax.f32 %v6074_v45, 0.0  ;;  %v6077_v12 = vmax.f32 %v6076_v24, 0.0  ;;  %v6084_v30 = vld [vmem:[#allocation22_spill] sm:$0xff] }
 0x487   : > { %v3122_v19 = vmax.f32 %v2928_v38, %v2929_v54  ;;  %3237 = vst [vmem:[%s5536_s28 + $0x10] sm:$0xff] %v3223_v42  ;;  %v2793_v35 = vadd.f32 %v4017_v20, %v5445_v43  ;;  %v2868_v5 = vadd.f32 %v2782_v47, %v6073_v41  ;;  %v3130_v11 = vrot.slane %v3129_v58, 4 }
 0x488   : > { %v2784_v28 = vpop.f32.mrf.mxu0  ;;  %v3111_v62 = vrot.slane %v3110_v25, 2  ;;  %v2934_v36 = vmax.f32 %v2870_v7, 0.0  ;;  %v3118_v50 = vrot.slane %v3117_v9, 2  ;;  %v6079_v56 = vmax.f32 %v6078_v33, 0.0 }
 0x489   : > { %v3123_v52 = vrot.slane %v3122_v19, 4  ;;  %v2785_v27 = vadd.f32 %v2784_v28, %v5445_v43  ;;  %v2871_v44 = vadd.f32 %v2793_v35, %v6075_v14  ;;  %v2932_v46 = vmax.f32 %v2868_v5, 0.0 }
 0x48a   : > { %v4020_v49 = vpop.f32.mrf.mxu0  ;;  %v3131_v16 = vmax.f32 %v3129_v58, %v3130_v11  ;;  %v3112_v23 = vmax.f32 %v3110_v25, %v3111_v62  ;;  %v6081_v22 = vmax.f32 %v6080_v29, 0.0  ;;  %v6083_v53 = vmax.f32 %v6082_v13, 0.0 }
 0x48b   : > { %v3124_v21 = vmax.f32 %v3122_v19, %v3123_v52  ;;  %v2869_v0 = vadd.f32 %v2785_v27, %v6077_v12  ;;  %v2806_v34 = vadd.f32 %v4020_v49, %v5445_v43  ;;  %v2935_v32 = vmax.f32 %v2871_v44, 0.0 }
 0x48c   : > { %v2797_v60 = vpop.f32.mrf.mxu0  ;;  %v3119_v57 = vmax.f32 %v3117_v9, %v3118_v50  ;;  %v3132_v3 = vrot.slane %v3131_v16, 2  ;;  %v6085_v2 = vmax.f32 %v6084_v30, 0.0  ;;  %v3113_v47 = vrot.slane %v3112_v23, 1 }
 0x48d   : > { %v3125_v51 = vrot.slane %v3124_v21, 2  ;;  %v2933_v61 = vmax.f32 %v2869_v0, 0.0  ;;  %v3143_v63 = vmax.f32 %v2934_v36, %v2935_v32  ;;  %v2798_v31 = vadd.f32 %v2797_v60, %v5445_v43 }
 0x48e   : > { %v4021_v1 = vpop.f32.mrf.mxu0  ;;  %v2874_v8 = vadd.f32 %v2806_v34, %v6079_v56  ;;  %v3120_v7 = vrot.slane %v3119_v57, 1  ;;  %v3133_v35 = vmax.f32 %v3131_v16, %v3132_v3  ;;  %v3114_v41 = vmax.f32 %v3112_v23, %v3113_v47 }
 0x48f   : > { %v3136_v55 = vmax.f32 %v2932_v46, %v2933_v61  ;;  %v2809_v10 = vadd.f32 %v4021_v1, %v5445_v43  ;;  %v3126_v40 = vmax.f32 %v3124_v21, %v3125_v51  ;;  %v3144_v18 = vrot.slane %v3143_v63, 4 }
 0x490   : > { %v2800_v6 = vpop.f32.mrf.mxu0  ;;  %v2872_v26 = vadd.f32 %v2798_v31, %v6081_v22  ;;  %v2938_v38 = vmax.f32 %v2874_v8, 0.0  ;;  %v3121_v45 = vmax.f32 %v3119_v57, %v3120_v7  ;;  %v3134_v14 = vrot.slane %v3133_v35, 1 }
 0x491   : > { %v3137_v37 = vrot.slane %v3136_v55, 4  ;;  %v2875_v4 = vadd.f32 %v2809_v10, %v6083_v53  ;;  %v2801_v39 = vadd.f32 %v2800_v6, %v5445_v43  ;;  %v3145_v15 = vmax.f32 %v3143_v63, %v3144_v18 }
 0x492   : > { %v3127_v20 = vrot.slane %v3126_v40, 1  ;;  %v2936_v19 = vmax.f32 %v2872_v26, 0.0  ;;  %v3224_v24 = vsel %vm3196_vm3, %v3121_v45, %v3114_v41  ;;  %v3135_v36 = vmax.f32 %v3133_v35, %v3134_v14 }
 0x493   : > { %v3138_v59 = vmax.f32 %v3136_v55, %v3137_v37  ;;  %v2939_v54 = vmax.f32 %v2875_v4, 0.0  ;;  %v2873_v58 = vadd.f32 %v2801_v39, %v6085_v2  ;;  %v3146_v28 = vrot.slane %v3145_v15, 2 }
 0x494   : > { %v3128_v5 = vmax.f32 %v3126_v40, %v3127_v20 }
 0x495   : > { %v3139_v42 = vrot.slane %v3138_v59, 2  ;;  %v3157_v25 = vmax.f32 %v2938_v38, %v2939_v54  ;;  %v2937_v48 = vmax.f32 %v2873_v58, 0.0  ;;  %v3147_v44 = vmax.f32 %v3145_v15, %v3146_v28 }
 0x496   : > { %v3225_v12 = vsel %vm3198_vm4, %v3128_v5, %v3224_v24 }
 0x497   : > { %v3140_v52 = vmax.f32 %v3138_v59, %v3139_v42  ;;  %v3158_v43 = vrot.slane %v3157_v25, 4  ;;  %v3150_v17 = vmax.f32 %v2936_v19, %v2937_v48  ;;  %v3148_v32 = vrot.slane %v3147_v44, 1 }
 0x498   : > { %v3226_v51 = vsel %vm3200_vm5, %v3135_v36, %v3225_v12 }
 0x499   : > { %v3141_v27 = vrot.slane %v3140_v52, 1  ;;  %v3159_v9 = vmax.f32 %v3157_v25, %v3158_v43  ;;  %v3151_v11 = vrot.slane %v3150_v17, 4  ;;  %v3149_v16 = vmax.f32 %v3147_v44, %v3148_v32 }
 0x49b   : > { %v3160_v49 = vrot.slane %v3159_v9, 2  ;;  %v3152_v21 = vmax.f32 %v3150_v17, %v3151_v11  ;;  %v3142_v0 = vmax.f32 %v3140_v52, %v3141_v27 }
 0x49d   : > { %v3161_v34 = vmax.f32 %v3159_v9, %v3160_v49  ;;  %v3153_v62 = vrot.slane %v3152_v21, 2  ;;  %v3227_v61 = vsel %vm3202_vm6, %v3142_v0, %v3226_v51 }
 0x49e   : > { %v3228_v1 = vsel %vm3204_vm7, %v3149_v16, %v3227_v61 }
 0x49f   : > { %v3154_v60 = vmax.f32 %v3152_v21, %v3153_v62  ;;  %v3162_v46 = vrot.slane %v3161_v34, 1 }
 0x4a1   : > { %v3155_v50 = vrot.slane %v3154_v60, 1  ;;  %v3163_v31 = vmax.f32 %v3161_v34, %v3162_v46 }
 0x4a3   : > { %v3156_v63 = vmax.f32 %v3154_v60, %v3155_v50 }
 0x4a5   : > { %v3229_v55 = vsel %vm3206_vm8, %v3156_v63, %v3228_v1 }
 0x4a6   : > { %v3230_v33 = vsel %vm3208_vm9, %v3163_v31, %v3229_v55 }
 0x4a7   : > { %3238 = vst [vmem:[%s5536_s28 + $0x18] sm:$0xff] %v3230_v33 }
 0x4a8 PF: > { %s17_s24 = sadd.s32 1, %s4107_s24  }
 0x4a9   : > { %p14_p5 = scmp.ge.s32.totalorder %s17_s24, 4  }
 0x4ab   :  { %16 = sbr.rel (!%p14_p5) target bundleno = 1 (0x1), region = 82 }

</bundles_post_ra>
